<compile_context>
chip_gen: v6e
topology: v6e:2x2x1
jax: 0.10.0
libtpu: 0.0.40
codegen_flags: <defaults>
</compile_context>

<pallas_src>
import functools

import jax
import jax.numpy as jnp
import numpy as np
from jax.experimental import pallas as pl
from jax.experimental.pallas import tpu as pltpu

KS = (3, 3, 5, 7)                   # depthwise kernel sizes of the 4 branches
MAXP = 3                            # max padding (K = 7)
TAPS = sum(K * K for K in KS)       # 92 packed depthwise tap weights


# ------------------------------ fused kernel -------------------------------

def _fused_block_kernel(C, H, W, nb, x_ref, ci_ref, dwt_ref, wc_ref, b_ref,
                        o_ref):
    """One grid step processes `nb` images (lane-dense (C, H*W) layout).

    x_ref  : (nb, C, HW)    unpadded input; channels on sublanes, flattened
                            spatial on lanes (HW a multiple of 128 preferred).
    ci_ref : (1, HW) int32  column index (p % W) of each flattened position.
    dwt_ref: (C, 92)        depthwise tap weights, branch-major, (dy+p)*K+(dx+p).
    wc_ref : (4, out_ch, C) composed (branch 1x1 -> final 1x1) weights per branch.
    b_ref  : (out_ch, 1)    fully folded bias (final + pointwise + depthwise).
    o_ref  : (nb, out_ch, HW)
    """
    HW = H * W
    PAD = MAXP * W + MAXP            # K=7 halo: 3 rows + 3 lanes on each side
    f32 = jnp.float32

    dwt = dwt_ref[...]               # (C, 92) — loaded once
    ci = ci_ref[...]                 # (1, HW) int32

    # Column-validity masks for horizontal offsets, built in-kernel (no (7,HW)
    # f32 operand streamed from HBM).  Only one compare needed per offset.
    col_mask = {}
    for dx in range(-MAXP, MAXP + 1):
        if dx == 0:
            continue
        cond = (ci < (W - dx)) if dx > 0 else (ci >= (-dx))
        col_mask[dx] = jnp.where(cond, 1.0, 0.0).astype(f32)     # (1, HW)

    # Branch-major start column of each branch's taps inside dwt.
    base, cb = [], 0
    for K in KS:
        base.append(cb)
        cb += K * K

    # Composed 1x1 weights: cast once for the bf16-native MXU (f32 accumulate).
    wcb = [wc_ref[b].astype(jnp.bfloat16) for b in range(4)]     # 4 x (out, C)
    bias = b_ref[...]                                            # (out_ch, 1)

    for i in range(nb):                              # static python loop
        # -------- depthwise taps: load x once, shift in-register ------------
        xi = x_ref[i]                                # (C, HW) single VMEM read
        zpad = jnp.zeros((C, PAD), f32)
        xp = jnp.concatenate([zpad, xi, zpad], axis=1)   # (C, HW + 2*PAD)

        accs = [None] * 4                            # per-branch (C, HW) f32
        for dx in range(-MAXP, MAXP + 1):
            parts = [None] * 4                       # per-branch partial, this dx
            for dy in range(-MAXP, MAXP + 1):
                # Uniform shift along the flattened spatial axis; the zero halo
                # in xp supplies the vertical (row-validity) zeros for free.
                s = dy * W + dx
                xs = xp[:, PAD + s:PAD + s + HW]     # (C, HW) in-register slice
                # Shared shifted tap reused by every branch that needs (dy,dx).
                for b, K in enumerate(KS):
                    p = (K - 1) // 2
                    if abs(dy) <= p and abs(dx) <= p:
                        c = base[b] + (dy + p) * K + (dx + p)
                        contrib = xs * dwt[:, c:c + 1]           # (C,1) bcast
                        parts[b] = contrib if parts[b] is None \
                            else parts[b] + contrib
            m = col_mask.get(dx)                     # None when dx == 0
            for b in range(4):
                if parts[b] is None:
                    continue
                pb = parts[b] if m is None else parts[b] * m
                accs[b] = pb if accs[b] is None else accs[b] + pb

        # -------- composed 1x1 stage: 4 accumulated small dots ---------------
        # (no (4C, HW) concat; bf16 operands, f32 accumulation on the MXU)
        y = bias
        for b in range(4):
            y = y + jnp.dot(wcb[b], accs[b].astype(jnp.bfloat16),
                            preferred_element_type=f32)
        o_ref[i] = y                                  # (out_ch, HW) lane-dense


# --------------------------------- module ----------------------------------

def _images_per_step(N):
    """Merge images per grid step to amortize fixed per-step overhead, but keep
    >= 2 grid steps so both TensorCores stay busy on v7x."""
    best = 1
    for nb in range(1, N + 1):
        if N % nb == 0 and N // nb >= 2:
            best = nb
    return best


class BasicBlockPallas:
    expansion = 1

    def __init__(self, in_ch, out_ch, key, stride=1):
        assert stride == 1, "only stride=1 supported"
        assert in_ch % 4 == 0
        self.in_ch, self.out_ch = in_ch, out_ch
        self.ks = KS
        mid = in_ch // 4
        keys = jax.random.split(key, 18)
        ki = iter(range(18))

        def u(k, shape, fan_in):  # deterministic, roughly Conv2d-like uniform init
            bound = 1.0 / np.sqrt(fan_in)
            return jax.random.uniform(k, shape, jnp.float32, -bound, bound)

        # depthwise params, PyTorch layout (C, 1, K, K) / (C,)
        self.dw_w, self.dw_b = [], []
        for K in self.ks:
            self.dw_w.append(u(keys[next(ki)], (in_ch, 1, K, K), K * K))
            self.dw_b.append(u(keys[next(ki)], (in_ch,), K * K))
        # pointwise params, PyTorch layout (Cout, Cin) / (Cout,)
        self.pw_w, self.pw_b = [], []
        for _ in range(4):
            self.pw_w.append(u(keys[next(ki)], (mid, in_ch), in_ch))
            self.pw_b.append(u(keys[next(ki)], (mid,), in_ch))
        self.final_w = u(keys[next(ki)], (out_ch, in_ch), in_ch)
        self.final_b = u(keys[next(ki)], (out_ch,), in_ch)

        # ---- precompose the three 1x1 convs + all biases (float64 numpy) ----
        # Valid because there is no nonlinearity between the convolutions.
        fw = np.asarray(self.final_w, np.float64)
        fb = np.asarray(self.final_b, np.float64)
        A, b_total = [], fb.copy()
        for i in range(4):
            wf_i = fw[:, i * mid:(i + 1) * mid]                     # (out, mid)
            a_i = wf_i @ np.asarray(self.pw_w[i], np.float64)       # (out, C)
            A.append(a_i)
            b_total = (b_total
                       + wf_i @ np.asarray(self.pw_b[i], np.float64)
                       + a_i @ np.asarray(self.dw_b[i], np.float64))
        # Pre-split composed weights: (4, out_ch, C) so the kernel never has to
        # build / slice an (out_ch, 4C) matrix or concat the 4C stack.
        self.wc = jnp.asarray(np.stack(A, axis=0), jnp.float32)
        self.bt = jnp.asarray(b_total, jnp.float32).reshape(out_ch, 1)
        # packed depthwise tap weights: (C, 9+9+25+49)
        self.dwt = jnp.concatenate(
            [self.dw_w[i][:, 0].reshape(in_ch, K * K)
             for i, K in enumerate(self.ks)], axis=1)

    def __call__(self, x_nchw):
        N, C, H, W = x_nchw.shape
        assert C == self.in_ch
        HW = H * W
        nb = _images_per_step(N)
        steps = N // nb

        # No host-side padding / transposes: NCHW -> (N, C, H*W) is free.
        xf = x_nchw.reshape(N, C, HW)
        # Tiny int32 column-index operand (masks are built in-kernel from it).
        col_idx = jnp.asarray((np.arange(HW) % W).astype(np.int32))[None, :]

        kern = functools.partial(_fused_block_kernel, C, H, W, nb)

        flops = 2 * N * HW * C * TAPS + 2 * N * HW * self.out_ch * 4 * C
        bytes_accessed = (4 * (N * C * HW + N * self.out_ch * HW)
                          + 4 * HW
                          + 4 * (C * TAPS + 4 * self.out_ch * C + self.out_ch))

        out_flat = pl.pallas_call(
            kern,
            out_shape=jax.ShapeDtypeStruct((N, self.out_ch, HW), jnp.float32),
            grid=(steps,),
            in_specs=[
                pl.BlockSpec((nb, C, HW), lambda g: (g, 0, 0)),
                pl.BlockSpec((1, HW), lambda g: (0, 0)),
                pl.BlockSpec((C, TAPS), lambda g: (0, 0)),
                pl.BlockSpec((4, self.out_ch, C), lambda g: (0, 0, 0)),
                pl.BlockSpec((self.out_ch, 1), lambda g: (0, 0)),
            ],
            out_specs=pl.BlockSpec((nb, self.out_ch, HW), lambda g: (g, 0, 0)),
            compiler_params=pltpu.CompilerParams(
                dimension_semantics=("parallel",),
                # Tiny blocks here; re-size together with row-band tiling when
                # H*W grows (v7x: 64 MiB physical, 32 MiB scoped default).
                vmem_limit_bytes=32 * 1024 * 1024),
            cost_estimate=pl.CostEstimate(
                flops=flops, transcendentals=0, bytes_accessed=bytes_accessed),
        )(xf, col_idx, self.dwt, self.wc, self.bt)

        return out_flat.reshape(N, self.out_ch, H, W)               # NCHW, free


# ---------------------------- pure-JAX reference ----------------------------

def ref_forward(block, x_nchw):
    C = block.in_ch
    hi = jax.lax.Precision.HIGHEST

    def dw(x, w, b, K):
        p = (K - 1) // 2
        y = jax.lax.conv_general_dilated(
            x, w, (1, 1), [(p, p), (p, p)],
            dimension_numbers=("NCHW", "OIHW", "NCHW"),
            feature_group_count=C, precision=hi)
        return y + b[None, :, None, None]

    def pw(x, w, b):
        return (jnp.einsum("nchw,oc->nohw", x, w, precision=hi)
                + b[None, :, None, None])

    outs = []
    for i, K in enumerate(block.ks):
        d = dw(x_nchw, block.dw_w[i], block.dw_b[i], K)
        outs.append(pw(d, block.pw_w[i], block.pw_b[i]))
    cat = jnp.concatenate(outs, axis=1)
    return pw(cat, block.final_w, block.final_b)


# ---------------------------------- main ------------------------------------

if __name__ == "__main__":
    key = jax.random.PRNGKey(0)
    k_x, k_p = jax.random.split(key)

    N, in_ch, out_ch, H, W = 2, 8, 16, 16, 16
    x = jax.random.normal(k_x, (N, in_ch, H, W), jnp.float32)  # NCHW, like PyTorch

    block = BasicBlockPallas(in_ch, out_ch, k_p, stride=1)

    out = jax.block_until_ready(block(x))
    assert out.shape == (N, out_ch, H, W), out.shape

    ref = jax.block_until_ready(ref_forward(block, x))
    # bf16 MXU operands (f32 accumulation) -> relaxed parity vs. f32 reference.
    np.testing.assert_allclose(np.asarray(out), np.asarray(ref),
                               rtol=2e-2, atol=2e-2)

    print("KERNEL_OK")
</pallas_src>

<mosaic_0001>
module attributes {stable_mosaic.version = 11 : i64} {
  func.func @_fused_block_kernel(%arg0: i32, %arg1: memref<1x8x256xf32, #tpu.memory_space<vmem>>, %arg2: memref<1x256xi32, #tpu.memory_space<vmem>>, %arg3: memref<8x92xf32, #tpu.memory_space<vmem>>, %arg4: memref<4x16x8xf32, #tpu.memory_space<vmem>>, %arg5: memref<16x1xf32, #tpu.memory_space<vmem>>, %arg6: memref<1x16x256xf32, #tpu.memory_space<vmem>>) attributes {dimension_semantics = [#tpu.dimension_semantics<parallel>], iteration_bounds = array<i64: 2>, scalar_prefetch = 0 : i64, scratch_operands = 0 : i64, tpu.core_type = #tpu.core_type<tc>, window_params = [{transform_indices = @transform_0, window_bounds = array<i64: 1, 8, 256>}, {pipeline_mode = #tpu.pipeline_mode<synchronous>, transform_indices = @transform_1, window_bounds = array<i64: 1, 256>}, {pipeline_mode = #tpu.pipeline_mode<synchronous>, transform_indices = @transform_2, window_bounds = array<i64: 8, 92>}, {pipeline_mode = #tpu.pipeline_mode<synchronous>, transform_indices = @transform_3, window_bounds = array<i64: 4, 16, 8>}, {pipeline_mode = #tpu.pipeline_mode<synchronous>, transform_indices = @transform_4, window_bounds = array<i64: 16, 1>}, {transform_indices = @transform_5, window_bounds = array<i64: 1, 16, 256>}]} {
    %c0 = arith.constant 0 : index
    %c0_0 = arith.constant 0 : index
    %0 = vector.load %arg3[%c0, %c0_0] : memref<8x92xf32, #tpu.memory_space<vmem>>, vector<8x92xf32>
    %c0_1 = arith.constant 0 : index
    %c0_2 = arith.constant 0 : index
    %1 = vector.load %arg2[%c0_1, %c0_2] : memref<1x256xi32, #tpu.memory_space<vmem>>, vector<1x256xi32>
    %c3_i32 = arith.constant 3 : i32
    %2 = vector.broadcast %c3_i32 : i32 to vector<1x256xi32>
    %3 = arith.cmpi sge, %1, %2 : vector<1x256xi32>
    %cst = arith.constant 1.000000e+00 : f32
    %cst_3 = arith.constant 0.000000e+00 : f32
    %4 = vector.broadcast %cst : f32 to vector<1x256xf32>
    %5 = vector.broadcast %cst_3 : f32 to vector<1x256xf32>
    %6 = arith.select %3, %4, %5 : vector<1x256xi1>, vector<1x256xf32>
    %c2_i32 = arith.constant 2 : i32
    %7 = vector.broadcast %c2_i32 : i32 to vector<1x256xi32>
    %8 = arith.cmpi sge, %1, %7 : vector<1x256xi32>
    %cst_4 = arith.constant 1.000000e+00 : f32
    %cst_5 = arith.constant 0.000000e+00 : f32
    %9 = vector.broadcast %cst_4 : f32 to vector<1x256xf32>
    %10 = vector.broadcast %cst_5 : f32 to vector<1x256xf32>
    %11 = arith.select %8, %9, %10 : vector<1x256xi1>, vector<1x256xf32>
    %c1_i32 = arith.constant 1 : i32
    %12 = vector.broadcast %c1_i32 : i32 to vector<1x256xi32>
    %13 = arith.cmpi sge, %1, %12 : vector<1x256xi32>
    %cst_6 = arith.constant 1.000000e+00 : f32
    %cst_7 = arith.constant 0.000000e+00 : f32
    %14 = vector.broadcast %cst_6 : f32 to vector<1x256xf32>
    %15 = vector.broadcast %cst_7 : f32 to vector<1x256xf32>
    %16 = arith.select %13, %14, %15 : vector<1x256xi1>, vector<1x256xf32>
    %c15_i32 = arith.constant 15 : i32
    %17 = vector.broadcast %c15_i32 : i32 to vector<1x256xi32>
    %18 = arith.cmpi slt, %1, %17 : vector<1x256xi32>
    %cst_8 = arith.constant 1.000000e+00 : f32
    %cst_9 = arith.constant 0.000000e+00 : f32
    %19 = vector.broadcast %cst_8 : f32 to vector<1x256xf32>
    %20 = vector.broadcast %cst_9 : f32 to vector<1x256xf32>
    %21 = arith.select %18, %19, %20 : vector<1x256xi1>, vector<1x256xf32>
    %c14_i32 = arith.constant 14 : i32
    %22 = vector.broadcast %c14_i32 : i32 to vector<1x256xi32>
    %23 = arith.cmpi slt, %1, %22 : vector<1x256xi32>
    %cst_10 = arith.constant 1.000000e+00 : f32
    %cst_11 = arith.constant 0.000000e+00 : f32
    %24 = vector.broadcast %cst_10 : f32 to vector<1x256xf32>
    %25 = vector.broadcast %cst_11 : f32 to vector<1x256xf32>
    %26 = arith.select %23, %24, %25 : vector<1x256xi1>, vector<1x256xf32>
    %c13_i32 = arith.constant 13 : i32
    %27 = vector.broadcast %c13_i32 : i32 to vector<1x256xi32>
    %28 = arith.cmpi slt, %1, %27 : vector<1x256xi32>
    %cst_12 = arith.constant 1.000000e+00 : f32
    %cst_13 = arith.constant 0.000000e+00 : f32
    %29 = vector.broadcast %cst_12 : f32 to vector<1x256xf32>
    %30 = vector.broadcast %cst_13 : f32 to vector<1x256xf32>
    %31 = arith.select %28, %29, %30 : vector<1x256xi1>, vector<1x256xf32>
    %c0_14 = arith.constant 0 : index
    %c0_15 = arith.constant 0 : index
    %c0_16 = arith.constant 0 : index
    %32 = vector.load %arg4[%c0_14, %c0_15, %c0_16] : memref<4x16x8xf32, #tpu.memory_space<vmem>>, vector<1x16x8xf32>
    %33 = vector.shape_cast %32 : vector<1x16x8xf32> to vector<16x8xf32>
    %34 = arith.truncf %33 : vector<16x8xf32> to vector<16x8xbf16>
    %c1 = arith.constant 1 : index
    %c0_17 = arith.constant 0 : index
    %c0_18 = arith.constant 0 : index
    %35 = vector.load %arg4[%c1, %c0_17, %c0_18] : memref<4x16x8xf32, #tpu.memory_space<vmem>>, vector<1x16x8xf32>
    %36 = vector.shape_cast %35 : vector<1x16x8xf32> to vector<16x8xf32>
    %37 = arith.truncf %36 : vector<16x8xf32> to vector<16x8xbf16>
    %c2 = arith.constant 2 : index
    %c0_19 = arith.constant 0 : index
    %c0_20 = arith.constant 0 : index
    %38 = vector.load %arg4[%c2, %c0_19, %c0_20] : memref<4x16x8xf32, #tpu.memory_space<vmem>>, vector<1x16x8xf32>
    %39 = vector.shape_cast %38 : vector<1x16x8xf32> to vector<16x8xf32>
    %40 = arith.truncf %39 : vector<16x8xf32> to vector<16x8xbf16>
    %c3 = arith.constant 3 : index
    %c0_21 = arith.constant 0 : index
    %c0_22 = arith.constant 0 : index
    %41 = vector.load %arg4[%c3, %c0_21, %c0_22] : memref<4x16x8xf32, #tpu.memory_space<vmem>>, vector<1x16x8xf32>
    %42 = vector.shape_cast %41 : vector<1x16x8xf32> to vector<16x8xf32>
    %43 = arith.truncf %42 : vector<16x8xf32> to vector<16x8xbf16>
    %c0_23 = arith.constant 0 : index
    %c0_24 = arith.constant 0 : index
    %44 = vector.load %arg5[%c0_23, %c0_24] : memref<16x1xf32, #tpu.memory_space<vmem>>, vector<16x1xf32>
    %c0_25 = arith.constant 0 : index
    %c0_26 = arith.constant 0 : index
    %c0_27 = arith.constant 0 : index
    %45 = vector.load %arg1[%c0_25, %c0_26, %c0_27] : memref<1x8x256xf32, #tpu.memory_space<vmem>>, vector<1x8x256xf32>
    %46 = vector.shape_cast %45 : vector<1x8x256xf32> to vector<8x256xf32>
    %cst_28 = arith.constant 0.000000e+00 : f32
    %47 = vector.broadcast %cst_28 : f32 to vector<8x51xf32>
    %48 = tpu.concatenate %47, %46, %47 in 1 : vector<8x51xf32>, vector<8x256xf32>, vector<8x51xf32> -> vector<8x358xf32>
    %49 = vector.extract_strided_slice %48 {offsets = [0, 0], sizes = [8, 256], strides = [1, 1]} : vector<8x358xf32> to vector<8x256xf32>
    %50 = vector.extract_strided_slice %0 {offsets = [0, 43], sizes = [8, 1], strides = [1, 1]} : vector<8x92xf32> to vector<8x1xf32>
    %51 = vector.broadcast %50 : vector<8x1xf32> to vector<8x256xf32>
    %52 = arith.mulf %49, %51 : vector<8x256xf32>
    %53 = vector.extract_strided_slice %48 {offsets = [0, 16], sizes = [8, 256], strides = [1, 1]} : vector<8x358xf32> to vector<8x256xf32>
    %54 = vector.extract_strided_slice %0 {offsets = [0, 50], sizes = [8, 1], strides = [1, 1]} : vector<8x92xf32> to vector<8x1xf32>
    %55 = vector.broadcast %54 : vector<8x1xf32> to vector<8x256xf32>
    %56 = arith.mulf %53, %55 : vector<8x256xf32>
    %57 = arith.addf %52, %56 : vector<8x256xf32>
    %58 = vector.extract_strided_slice %48 {offsets = [0, 32], sizes = [8, 256], strides = [1, 1]} : vector<8x358xf32> to vector<8x256xf32>
    %59 = vector.extract_strided_slice %0 {offsets = [0, 57], sizes = [8, 1], strides = [1, 1]} : vector<8x92xf32> to vector<8x1xf32>
    %60 = vector.broadcast %59 : vector<8x1xf32> to vector<8x256xf32>
    %61 = arith.mulf %58, %60 : vector<8x256xf32>
    %62 = arith.addf %57, %61 : vector<8x256xf32>
    %63 = vector.extract_strided_slice %48 {offsets = [0, 48], sizes = [8, 256], strides = [1, 1]} : vector<8x358xf32> to vector<8x256xf32>
    %64 = vector.extract_strided_slice %0 {offsets = [0, 64], sizes = [8, 1], strides = [1, 1]} : vector<8x92xf32> to vector<8x1xf32>
    %65 = vector.broadcast %64 : vector<8x1xf32> to vector<8x256xf32>
    %66 = arith.mulf %63, %65 : vector<8x256xf32>
    %67 = arith.addf %62, %66 : vector<8x256xf32>
    %68 = vector.extract_strided_slice %48 {offsets = [0, 64], sizes = [8, 256], strides = [1, 1]} : vector<8x358xf32> to vector<8x256xf32>
    %69 = vector.extract_strided_slice %0 {offsets = [0, 71], sizes = [8, 1], strides = [1, 1]} : vector<8x92xf32> to vector<8x1xf32>
    %70 = vector.broadcast %69 : vector<8x1xf32> to vector<8x256xf32>
    %71 = arith.mulf %68, %70 : vector<8x256xf32>
    %72 = arith.addf %67, %71 : vector<8x256xf32>
    %73 = vector.extract_strided_slice %48 {offsets = [0, 80], sizes = [8, 256], strides = [1, 1]} : vector<8x358xf32> to vector<8x256xf32>
    %74 = vector.extract_strided_slice %0 {offsets = [0, 78], sizes = [8, 1], strides = [1, 1]} : vector<8x92xf32> to vector<8x1xf32>
    %75 = vector.broadcast %74 : vector<8x1xf32> to vector<8x256xf32>
    %76 = arith.mulf %73, %75 : vector<8x256xf32>
    %77 = arith.addf %72, %76 : vector<8x256xf32>
    %78 = vector.extract_strided_slice %48 {offsets = [0, 96], sizes = [8, 256], strides = [1, 1]} : vector<8x358xf32> to vector<8x256xf32>
    %79 = vector.extract_strided_slice %0 {offsets = [0, 85], sizes = [8, 1], strides = [1, 1]} : vector<8x92xf32> to vector<8x1xf32>
    %80 = vector.broadcast %79 : vector<8x1xf32> to vector<8x256xf32>
    %81 = arith.mulf %78, %80 : vector<8x256xf32>
    %82 = arith.addf %77, %81 : vector<8x256xf32>
    %83 = vector.broadcast %6 : vector<1x256xf32> to vector<8x256xf32>
    %84 = arith.mulf %82, %83 : vector<8x256xf32>
    %85 = vector.extract_strided_slice %48 {offsets = [0, 1], sizes = [8, 256], strides = [1, 1]} : vector<8x358xf32> to vector<8x256xf32>
    %86 = vector.extract_strided_slice %0 {offsets = [0, 44], sizes = [8, 1], strides = [1, 1]} : vector<8x92xf32> to vector<8x1xf32>
    %87 = vector.broadcast %86 : vector<8x1xf32> to vector<8x256xf32>
    %88 = arith.mulf %85, %87 : vector<8x256xf32>
    %89 = vector.extract_strided_slice %48 {offsets = [0, 17], sizes = [8, 256], strides = [1, 1]} : vector<8x358xf32> to vector<8x256xf32>
    %90 = vector.extract_strided_slice %0 {offsets = [0, 18], sizes = [8, 1], strides = [1, 1]} : vector<8x92xf32> to vector<8x1xf32>
    %91 = vector.broadcast %90 : vector<8x1xf32> to vector<8x256xf32>
    %92 = arith.mulf %89, %91 : vector<8x256xf32>
    %93 = vector.extract_strided_slice %0 {offsets = [0, 51], sizes = [8, 1], strides = [1, 1]} : vector<8x92xf32> to vector<8x1xf32>
    %94 = vector.broadcast %93 : vector<8x1xf32> to vector<8x256xf32>
    %95 = arith.mulf %89, %94 : vector<8x256xf32>
    %96 = arith.addf %88, %95 : vector<8x256xf32>
    %97 = vector.extract_strided_slice %48 {offsets = [0, 33], sizes = [8, 256], strides = [1, 1]} : vector<8x358xf32> to vector<8x256xf32>
    %98 = vector.extract_strided_slice %0 {offsets = [0, 23], sizes = [8, 1], strides = [1, 1]} : vector<8x92xf32> to vector<8x1xf32>
    %99 = vector.broadcast %98 : vector<8x1xf32> to vector<8x256xf32>
    %100 = arith.mulf %97, %99 : vector<8x256xf32>
    %101 = arith.addf %92, %100 : vector<8x256xf32>
    %102 = vector.extract_strided_slice %0 {offsets = [0, 58], sizes = [8, 1], strides = [1, 1]} : vector<8x92xf32> to vector<8x1xf32>
    %103 = vector.broadcast %102 : vector<8x1xf32> to vector<8x256xf32>
    %104 = arith.mulf %97, %103 : vector<8x256xf32>
    %105 = arith.addf %96, %104 : vector<8x256xf32>
    %106 = vector.extract_strided_slice %48 {offsets = [0, 49], sizes = [8, 256], strides = [1, 1]} : vector<8x358xf32> to vector<8x256xf32>
    %107 = vector.extract_strided_slice %0 {offsets = [0, 28], sizes = [8, 1], strides = [1, 1]} : vector<8x92xf32> to vector<8x1xf32>
    %108 = vector.broadcast %107 : vector<8x1xf32> to vector<8x256xf32>
    %109 = arith.mulf %106, %108 : vector<8x256xf32>
    %110 = arith.addf %101, %109 : vector<8x256xf32>
    %111 = vector.extract_strided_slice %0 {offsets = [0, 65], sizes = [8, 1], strides = [1, 1]} : vector<8x92xf32> to vector<8x1xf32>
    %112 = vector.broadcast %111 : vector<8x1xf32> to vector<8x256xf32>
    %113 = arith.mulf %106, %112 : vector<8x256xf32>
    %114 = arith.addf %105, %113 : vector<8x256xf32>
    %115 = vector.extract_strided_slice %48 {offsets = [0, 65], sizes = [8, 256], strides = [1, 1]} : vector<8x358xf32> to vector<8x256xf32>
    %116 = vector.extract_strided_slice %0 {offsets = [0, 33], sizes = [8, 1], strides = [1, 1]} : vector<8x92xf32> to vector<8x1xf32>
    %117 = vector.broadcast %116 : vector<8x1xf32> to vector<8x256xf32>
    %118 = arith.mulf %115, %117 : vector<8x256xf32>
    %119 = arith.addf %110, %118 : vector<8x256xf32>
    %120 = vector.extract_strided_slice %0 {offsets = [0, 72], sizes = [8, 1], strides = [1, 1]} : vector<8x92xf32> to vector<8x1xf32>
    %121 = vector.broadcast %120 : vector<8x1xf32> to vector<8x256xf32>
    %122 = arith.mulf %115, %121 : vector<8x256xf32>
    %123 = arith.addf %114, %122 : vector<8x256xf32>
    %124 = vector.extract_strided_slice %48 {offsets = [0, 81], sizes = [8, 256], strides = [1, 1]} : vector<8x358xf32> to vector<8x256xf32>
    %125 = vector.extract_strided_slice %0 {offsets = [0, 38], sizes = [8, 1], strides = [1, 1]} : vector<8x92xf32> to vector<8x1xf32>
    %126 = vector.broadcast %125 : vector<8x1xf32> to vector<8x256xf32>
    %127 = arith.mulf %124, %126 : vector<8x256xf32>
    %128 = arith.addf %119, %127 : vector<8x256xf32>
    %129 = vector.extract_strided_slice %0 {offsets = [0, 79], sizes = [8, 1], strides = [1, 1]} : vector<8x92xf32> to vector<8x1xf32>
    %130 = vector.broadcast %129 : vector<8x1xf32> to vector<8x256xf32>
    %131 = arith.mulf %124, %130 : vector<8x256xf32>
    %132 = arith.addf %123, %131 : vector<8x256xf32>
    %133 = vector.extract_strided_slice %48 {offsets = [0, 97], sizes = [8, 256], strides = [1, 1]} : vector<8x358xf32> to vector<8x256xf32>
    %134 = vector.extract_strided_slice %0 {offsets = [0, 86], sizes = [8, 1], strides = [1, 1]} : vector<8x92xf32> to vector<8x1xf32>
    %135 = vector.broadcast %134 : vector<8x1xf32> to vector<8x256xf32>
    %136 = arith.mulf %133, %135 : vector<8x256xf32>
    %137 = arith.addf %132, %136 : vector<8x256xf32>
    %138 = vector.broadcast %11 : vector<1x256xf32> to vector<8x256xf32>
    %139 = arith.mulf %128, %138 : vector<8x256xf32>
    %140 = vector.broadcast %11 : vector<1x256xf32> to vector<8x256xf32>
    %141 = arith.mulf %137, %140 : vector<8x256xf32>
    %142 = arith.addf %84, %141 : vector<8x256xf32>
    %143 = vector.extract_strided_slice %48 {offsets = [0, 2], sizes = [8, 256], strides = [1, 1]} : vector<8x358xf32> to vector<8x256xf32>
    %144 = vector.extract_strided_slice %0 {offsets = [0, 45], sizes = [8, 1], strides = [1, 1]} : vector<8x92xf32> to vector<8x1xf32>
    %145 = vector.broadcast %144 : vector<8x1xf32> to vector<8x256xf32>
    %146 = arith.mulf %143, %145 : vector<8x256xf32>
    %147 = vector.extract_strided_slice %48 {offsets = [0, 18], sizes = [8, 256], strides = [1, 1]} : vector<8x358xf32> to vector<8x256xf32>
    %148 = vector.extract_strided_slice %0 {offsets = [0, 19], sizes = [8, 1], strides = [1, 1]} : vector<8x92xf32> to vector<8x1xf32>
    %149 = vector.broadcast %148 : vector<8x1xf32> to vector<8x256xf32>
    %150 = arith.mulf %147, %149 : vector<8x256xf32>
    %151 = vector.extract_strided_slice %0 {offsets = [0, 52], sizes = [8, 1], strides = [1, 1]} : vector<8x92xf32> to vector<8x1xf32>
    %152 = vector.broadcast %151 : vector<8x1xf32> to vector<8x256xf32>
    %153 = arith.mulf %147, %152 : vector<8x256xf32>
    %154 = arith.addf %146, %153 : vector<8x256xf32>
    %155 = vector.extract_strided_slice %48 {offsets = [0, 34], sizes = [8, 256], strides = [1, 1]} : vector<8x358xf32> to vector<8x256xf32>
    %156 = vector.extract_strided_slice %0 {offsets = [0, 0], sizes = [8, 1], strides = [1, 1]} : vector<8x92xf32> to vector<8x1xf32>
    %157 = vector.broadcast %156 : vector<8x1xf32> to vector<8x256xf32>
    %158 = arith.mulf %155, %157 : vector<8x256xf32>
    %159 = vector.extract_strided_slice %0 {offsets = [0, 9], sizes = [8, 1], strides = [1, 1]} : vector<8x92xf32> to vector<8x1xf32>
    %160 = vector.broadcast %159 : vector<8x1xf32> to vector<8x256xf32>
    %161 = arith.mulf %155, %160 : vector<8x256xf32>
    %162 = vector.extract_strided_slice %0 {offsets = [0, 24], sizes = [8, 1], strides = [1, 1]} : vector<8x92xf32> to vector<8x1xf32>
    %163 = vector.broadcast %162 : vector<8x1xf32> to vector<8x256xf32>
    %164 = arith.mulf %155, %163 : vector<8x256xf32>
    %165 = arith.addf %150, %164 : vector<8x256xf32>
    %166 = vector.extract_strided_slice %0 {offsets = [0, 59], sizes = [8, 1], strides = [1, 1]} : vector<8x92xf32> to vector<8x1xf32>
    %167 = vector.broadcast %166 : vector<8x1xf32> to vector<8x256xf32>
    %168 = arith.mulf %155, %167 : vector<8x256xf32>
    %169 = arith.addf %154, %168 : vector<8x256xf32>
    %170 = vector.extract_strided_slice %48 {offsets = [0, 50], sizes = [8, 256], strides = [1, 1]} : vector<8x358xf32> to vector<8x256xf32>
    %171 = vector.extract_strided_slice %0 {offsets = [0, 3], sizes = [8, 1], strides = [1, 1]} : vector<8x92xf32> to vector<8x1xf32>
    %172 = vector.broadcast %171 : vector<8x1xf32> to vector<8x256xf32>
    %173 = arith.mulf %170, %172 : vector<8x256xf32>
    %174 = arith.addf %158, %173 : vector<8x256xf32>
    %175 = vector.extract_strided_slice %0 {offsets = [0, 12], sizes = [8, 1], strides = [1, 1]} : vector<8x92xf32> to vector<8x1xf32>
    %176 = vector.broadcast %175 : vector<8x1xf32> to vector<8x256xf32>
    %177 = arith.mulf %170, %176 : vector<8x256xf32>
    %178 = arith.addf %161, %177 : vector<8x256xf32>
    %179 = vector.extract_strided_slice %0 {offsets = [0, 29], sizes = [8, 1], strides = [1, 1]} : vector<8x92xf32> to vector<8x1xf32>
    %180 = vector.broadcast %179 : vector<8x1xf32> to vector<8x256xf32>
    %181 = arith.mulf %170, %180 : vector<8x256xf32>
    %182 = arith.addf %165, %181 : vector<8x256xf32>
    %183 = vector.extract_strided_slice %0 {offsets = [0, 66], sizes = [8, 1], strides = [1, 1]} : vector<8x92xf32> to vector<8x1xf32>
    %184 = vector.broadcast %183 : vector<8x1xf32> to vector<8x256xf32>
    %185 = arith.mulf %170, %184 : vector<8x256xf32>
    %186 = arith.addf %169, %185 : vector<8x256xf32>
    %187 = vector.extract_strided_slice %48 {offsets = [0, 66], sizes = [8, 256], strides = [1, 1]} : vector<8x358xf32> to vector<8x256xf32>
    %188 = vector.extract_strided_slice %0 {offsets = [0, 6], sizes = [8, 1], strides = [1, 1]} : vector<8x92xf32> to vector<8x1xf32>
    %189 = vector.broadcast %188 : vector<8x1xf32> to vector<8x256xf32>
    %190 = arith.mulf %187, %189 : vector<8x256xf32>
    %191 = arith.addf %174, %190 : vector<8x256xf32>
    %192 = vector.extract_strided_slice %0 {offsets = [0, 15], sizes = [8, 1], strides = [1, 1]} : vector<8x92xf32> to vector<8x1xf32>
    %193 = vector.broadcast %192 : vector<8x1xf32> to vector<8x256xf32>
    %194 = arith.mulf %187, %193 : vector<8x256xf32>
    %195 = arith.addf %178, %194 : vector<8x256xf32>
    %196 = vector.extract_strided_slice %0 {offsets = [0, 34], sizes = [8, 1], strides = [1, 1]} : vector<8x92xf32> to vector<8x1xf32>
    %197 = vector.broadcast %196 : vector<8x1xf32> to vector<8x256xf32>
    %198 = arith.mulf %187, %197 : vector<8x256xf32>
    %199 = arith.addf %182, %198 : vector<8x256xf32>
    %200 = vector.extract_strided_slice %0 {offsets = [0, 73], sizes = [8, 1], strides = [1, 1]} : vector<8x92xf32> to vector<8x1xf32>
    %201 = vector.broadcast %200 : vector<8x1xf32> to vector<8x256xf32>
    %202 = arith.mulf %187, %201 : vector<8x256xf32>
    %203 = arith.addf %186, %202 : vector<8x256xf32>
    %204 = vector.extract_strided_slice %48 {offsets = [0, 82], sizes = [8, 256], strides = [1, 1]} : vector<8x358xf32> to vector<8x256xf32>
    %205 = vector.extract_strided_slice %0 {offsets = [0, 39], sizes = [8, 1], strides = [1, 1]} : vector<8x92xf32> to vector<8x1xf32>
    %206 = vector.broadcast %205 : vector<8x1xf32> to vector<8x256xf32>
    %207 = arith.mulf %204, %206 : vector<8x256xf32>
    %208 = arith.addf %199, %207 : vector<8x256xf32>
    %209 = vector.extract_strided_slice %0 {offsets = [0, 80], sizes = [8, 1], strides = [1, 1]} : vector<8x92xf32> to vector<8x1xf32>
    %210 = vector.broadcast %209 : vector<8x1xf32> to vector<8x256xf32>
    %211 = arith.mulf %204, %210 : vector<8x256xf32>
    %212 = arith.addf %203, %211 : vector<8x256xf32>
    %213 = vector.extract_strided_slice %48 {offsets = [0, 98], sizes = [8, 256], strides = [1, 1]} : vector<8x358xf32> to vector<8x256xf32>
    %214 = vector.extract_strided_slice %0 {offsets = [0, 87], sizes = [8, 1], strides = [1, 1]} : vector<8x92xf32> to vector<8x1xf32>
    %215 = vector.broadcast %214 : vector<8x1xf32> to vector<8x256xf32>
    %216 = arith.mulf %213, %215 : vector<8x256xf32>
    %217 = arith.addf %212, %216 : vector<8x256xf32>
    %218 = vector.broadcast %16 : vector<1x256xf32> to vector<8x256xf32>
    %219 = arith.mulf %191, %218 : vector<8x256xf32>
    %220 = vector.broadcast %16 : vector<1x256xf32> to vector<8x256xf32>
    %221 = arith.mulf %195, %220 : vector<8x256xf32>
    %222 = vector.broadcast %16 : vector<1x256xf32> to vector<8x256xf32>
    %223 = arith.mulf %208, %222 : vector<8x256xf32>
    %224 = arith.addf %139, %223 : vector<8x256xf32>
    %225 = vector.broadcast %16 : vector<1x256xf32> to vector<8x256xf32>
    %226 = arith.mulf %217, %225 : vector<8x256xf32>
    %227 = arith.addf %142, %226 : vector<8x256xf32>
    %228 = vector.extract_strided_slice %48 {offsets = [0, 3], sizes = [8, 256], strides = [1, 1]} : vector<8x358xf32> to vector<8x256xf32>
    %229 = vector.extract_strided_slice %0 {offsets = [0, 46], sizes = [8, 1], strides = [1, 1]} : vector<8x92xf32> to vector<8x1xf32>
    %230 = vector.broadcast %229 : vector<8x1xf32> to vector<8x256xf32>
    %231 = arith.mulf %228, %230 : vector<8x256xf32>
    %232 = vector.extract_strided_slice %48 {offsets = [0, 19], sizes = [8, 256], strides = [1, 1]} : vector<8x358xf32> to vector<8x256xf32>
    %233 = vector.extract_strided_slice %0 {offsets = [0, 20], sizes = [8, 1], strides = [1, 1]} : vector<8x92xf32> to vector<8x1xf32>
    %234 = vector.broadcast %233 : vector<8x1xf32> to vector<8x256xf32>
    %235 = arith.mulf %232, %234 : vector<8x256xf32>
    %236 = vector.extract_strided_slice %0 {offsets = [0, 53], sizes = [8, 1], strides = [1, 1]} : vector<8x92xf32> to vector<8x1xf32>
    %237 = vector.broadcast %236 : vector<8x1xf32> to vector<8x256xf32>
    %238 = arith.mulf %232, %237 : vector<8x256xf32>
    %239 = arith.addf %231, %238 : vector<8x256xf32>
    %240 = vector.extract_strided_slice %48 {offsets = [0, 35], sizes = [8, 256], strides = [1, 1]} : vector<8x358xf32> to vector<8x256xf32>
    %241 = vector.extract_strided_slice %0 {offsets = [0, 1], sizes = [8, 1], strides = [1, 1]} : vector<8x92xf32> to vector<8x1xf32>
    %242 = vector.broadcast %241 : vector<8x1xf32> to vector<8x256xf32>
    %243 = arith.mulf %240, %242 : vector<8x256xf32>
    %244 = vector.extract_strided_slice %0 {offsets = [0, 10], sizes = [8, 1], strides = [1, 1]} : vector<8x92xf32> to vector<8x1xf32>
    %245 = vector.broadcast %244 : vector<8x1xf32> to vector<8x256xf32>
    %246 = arith.mulf %240, %245 : vector<8x256xf32>
    %247 = vector.extract_strided_slice %0 {offsets = [0, 25], sizes = [8, 1], strides = [1, 1]} : vector<8x92xf32> to vector<8x1xf32>
    %248 = vector.broadcast %247 : vector<8x1xf32> to vector<8x256xf32>
    %249 = arith.mulf %240, %248 : vector<8x256xf32>
    %250 = arith.addf %235, %249 : vector<8x256xf32>
    %251 = vector.extract_strided_slice %0 {offsets = [0, 60], sizes = [8, 1], strides = [1, 1]} : vector<8x92xf32> to vector<8x1xf32>
    %252 = vector.broadcast %251 : vector<8x1xf32> to vector<8x256xf32>
    %253 = arith.mulf %240, %252 : vector<8x256xf32>
    %254 = arith.addf %239, %253 : vector<8x256xf32>
    %255 = vector.extract_strided_slice %48 {offsets = [0, 51], sizes = [8, 256], strides = [1, 1]} : vector<8x358xf32> to vector<8x256xf32>
    %256 = vector.extract_strided_slice %0 {offsets = [0, 4], sizes = [8, 1], strides = [1, 1]} : vector<8x92xf32> to vector<8x1xf32>
    %257 = vector.broadcast %256 : vector<8x1xf32> to vector<8x256xf32>
    %258 = arith.mulf %255, %257 : vector<8x256xf32>
    %259 = arith.addf %243, %258 : vector<8x256xf32>
    %260 = vector.extract_strided_slice %0 {offsets = [0, 13], sizes = [8, 1], strides = [1, 1]} : vector<8x92xf32> to vector<8x1xf32>
    %261 = vector.broadcast %260 : vector<8x1xf32> to vector<8x256xf32>
    %262 = arith.mulf %255, %261 : vector<8x256xf32>
    %263 = arith.addf %246, %262 : vector<8x256xf32>
    %264 = vector.extract_strided_slice %0 {offsets = [0, 30], sizes = [8, 1], strides = [1, 1]} : vector<8x92xf32> to vector<8x1xf32>
    %265 = vector.broadcast %264 : vector<8x1xf32> to vector<8x256xf32>
    %266 = arith.mulf %255, %265 : vector<8x256xf32>
    %267 = arith.addf %250, %266 : vector<8x256xf32>
    %268 = vector.extract_strided_slice %0 {offsets = [0, 67], sizes = [8, 1], strides = [1, 1]} : vector<8x92xf32> to vector<8x1xf32>
    %269 = vector.broadcast %268 : vector<8x1xf32> to vector<8x256xf32>
    %270 = arith.mulf %255, %269 : vector<8x256xf32>
    %271 = arith.addf %254, %270 : vector<8x256xf32>
    %272 = vector.extract_strided_slice %48 {offsets = [0, 67], sizes = [8, 256], strides = [1, 1]} : vector<8x358xf32> to vector<8x256xf32>
    %273 = vector.extract_strided_slice %0 {offsets = [0, 7], sizes = [8, 1], strides = [1, 1]} : vector<8x92xf32> to vector<8x1xf32>
    %274 = vector.broadcast %273 : vector<8x1xf32> to vector<8x256xf32>
    %275 = arith.mulf %272, %274 : vector<8x256xf32>
    %276 = arith.addf %259, %275 : vector<8x256xf32>
    %277 = vector.extract_strided_slice %0 {offsets = [0, 16], sizes = [8, 1], strides = [1, 1]} : vector<8x92xf32> to vector<8x1xf32>
    %278 = vector.broadcast %277 : vector<8x1xf32> to vector<8x256xf32>
    %279 = arith.mulf %272, %278 : vector<8x256xf32>
    %280 = arith.addf %263, %279 : vector<8x256xf32>
    %281 = vector.extract_strided_slice %0 {offsets = [0, 35], sizes = [8, 1], strides = [1, 1]} : vector<8x92xf32> to vector<8x1xf32>
    %282 = vector.broadcast %281 : vector<8x1xf32> to vector<8x256xf32>
    %283 = arith.mulf %272, %282 : vector<8x256xf32>
    %284 = arith.addf %267, %283 : vector<8x256xf32>
    %285 = vector.extract_strided_slice %0 {offsets = [0, 74], sizes = [8, 1], strides = [1, 1]} : vector<8x92xf32> to vector<8x1xf32>
    %286 = vector.broadcast %285 : vector<8x1xf32> to vector<8x256xf32>
    %287 = arith.mulf %272, %286 : vector<8x256xf32>
    %288 = arith.addf %271, %287 : vector<8x256xf32>
    %289 = vector.extract_strided_slice %48 {offsets = [0, 83], sizes = [8, 256], strides = [1, 1]} : vector<8x358xf32> to vector<8x256xf32>
    %290 = vector.extract_strided_slice %0 {offsets = [0, 40], sizes = [8, 1], strides = [1, 1]} : vector<8x92xf32> to vector<8x1xf32>
    %291 = vector.broadcast %290 : vector<8x1xf32> to vector<8x256xf32>
    %292 = arith.mulf %289, %291 : vector<8x256xf32>
    %293 = arith.addf %284, %292 : vector<8x256xf32>
    %294 = vector.extract_strided_slice %0 {offsets = [0, 81], sizes = [8, 1], strides = [1, 1]} : vector<8x92xf32> to vector<8x1xf32>
    %295 = vector.broadcast %294 : vector<8x1xf32> to vector<8x256xf32>
    %296 = arith.mulf %289, %295 : vector<8x256xf32>
    %297 = arith.addf %288, %296 : vector<8x256xf32>
    %298 = vector.extract_strided_slice %48 {offsets = [0, 99], sizes = [8, 256], strides = [1, 1]} : vector<8x358xf32> to vector<8x256xf32>
    %299 = vector.extract_strided_slice %0 {offsets = [0, 88], sizes = [8, 1], strides = [1, 1]} : vector<8x92xf32> to vector<8x1xf32>
    %300 = vector.broadcast %299 : vector<8x1xf32> to vector<8x256xf32>
    %301 = arith.mulf %298, %300 : vector<8x256xf32>
    %302 = arith.addf %297, %301 : vector<8x256xf32>
    %303 = arith.addf %219, %276 : vector<8x256xf32>
    %304 = arith.addf %221, %280 : vector<8x256xf32>
    %305 = arith.addf %224, %293 : vector<8x256xf32>
    %306 = arith.addf %227, %302 : vector<8x256xf32>
    %307 = vector.extract_strided_slice %48 {offsets = [0, 4], sizes = [8, 256], strides = [1, 1]} : vector<8x358xf32> to vector<8x256xf32>
    %308 = vector.extract_strided_slice %0 {offsets = [0, 47], sizes = [8, 1], strides = [1, 1]} : vector<8x92xf32> to vector<8x1xf32>
    %309 = vector.broadcast %308 : vector<8x1xf32> to vector<8x256xf32>
    %310 = arith.mulf %307, %309 : vector<8x256xf32>
    %311 = vector.extract_strided_slice %48 {offsets = [0, 20], sizes = [8, 256], strides = [1, 1]} : vector<8x358xf32> to vector<8x256xf32>
    %312 = vector.extract_strided_slice %0 {offsets = [0, 21], sizes = [8, 1], strides = [1, 1]} : vector<8x92xf32> to vector<8x1xf32>
    %313 = vector.broadcast %312 : vector<8x1xf32> to vector<8x256xf32>
    %314 = arith.mulf %311, %313 : vector<8x256xf32>
    %315 = vector.extract_strided_slice %0 {offsets = [0, 54], sizes = [8, 1], strides = [1, 1]} : vector<8x92xf32> to vector<8x1xf32>
    %316 = vector.broadcast %315 : vector<8x1xf32> to vector<8x256xf32>
    %317 = arith.mulf %311, %316 : vector<8x256xf32>
    %318 = arith.addf %310, %317 : vector<8x256xf32>
    %319 = vector.extract_strided_slice %48 {offsets = [0, 36], sizes = [8, 256], strides = [1, 1]} : vector<8x358xf32> to vector<8x256xf32>
    %320 = vector.extract_strided_slice %0 {offsets = [0, 2], sizes = [8, 1], strides = [1, 1]} : vector<8x92xf32> to vector<8x1xf32>
    %321 = vector.broadcast %320 : vector<8x1xf32> to vector<8x256xf32>
    %322 = arith.mulf %319, %321 : vector<8x256xf32>
    %323 = vector.extract_strided_slice %0 {offsets = [0, 11], sizes = [8, 1], strides = [1, 1]} : vector<8x92xf32> to vector<8x1xf32>
    %324 = vector.broadcast %323 : vector<8x1xf32> to vector<8x256xf32>
    %325 = arith.mulf %319, %324 : vector<8x256xf32>
    %326 = vector.extract_strided_slice %0 {offsets = [0, 26], sizes = [8, 1], strides = [1, 1]} : vector<8x92xf32> to vector<8x1xf32>
    %327 = vector.broadcast %326 : vector<8x1xf32> to vector<8x256xf32>
    %328 = arith.mulf %319, %327 : vector<8x256xf32>
    %329 = arith.addf %314, %328 : vector<8x256xf32>
    %330 = vector.extract_strided_slice %0 {offsets = [0, 61], sizes = [8, 1], strides = [1, 1]} : vector<8x92xf32> to vector<8x1xf32>
    %331 = vector.broadcast %330 : vector<8x1xf32> to vector<8x256xf32>
    %332 = arith.mulf %319, %331 : vector<8x256xf32>
    %333 = arith.addf %318, %332 : vector<8x256xf32>
    %334 = vector.extract_strided_slice %48 {offsets = [0, 52], sizes = [8, 256], strides = [1, 1]} : vector<8x358xf32> to vector<8x256xf32>
    %335 = vector.extract_strided_slice %0 {offsets = [0, 5], sizes = [8, 1], strides = [1, 1]} : vector<8x92xf32> to vector<8x1xf32>
    %336 = vector.broadcast %335 : vector<8x1xf32> to vector<8x256xf32>
    %337 = arith.mulf %334, %336 : vector<8x256xf32>
    %338 = arith.addf %322, %337 : vector<8x256xf32>
    %339 = vector.extract_strided_slice %0 {offsets = [0, 14], sizes = [8, 1], strides = [1, 1]} : vector<8x92xf32> to vector<8x1xf32>
    %340 = vector.broadcast %339 : vector<8x1xf32> to vector<8x256xf32>
    %341 = arith.mulf %334, %340 : vector<8x256xf32>
    %342 = arith.addf %325, %341 : vector<8x256xf32>
    %343 = vector.extract_strided_slice %0 {offsets = [0, 31], sizes = [8, 1], strides = [1, 1]} : vector<8x92xf32> to vector<8x1xf32>
    %344 = vector.broadcast %343 : vector<8x1xf32> to vector<8x256xf32>
    %345 = arith.mulf %334, %344 : vector<8x256xf32>
    %346 = arith.addf %329, %345 : vector<8x256xf32>
    %347 = vector.extract_strided_slice %0 {offsets = [0, 68], sizes = [8, 1], strides = [1, 1]} : vector<8x92xf32> to vector<8x1xf32>
    %348 = vector.broadcast %347 : vector<8x1xf32> to vector<8x256xf32>
    %349 = arith.mulf %334, %348 : vector<8x256xf32>
    %350 = arith.addf %333, %349 : vector<8x256xf32>
    %351 = vector.extract_strided_slice %48 {offsets = [0, 68], sizes = [8, 256], strides = [1, 1]} : vector<8x358xf32> to vector<8x256xf32>
    %352 = vector.extract_strided_slice %0 {offsets = [0, 8], sizes = [8, 1], strides = [1, 1]} : vector<8x92xf32> to vector<8x1xf32>
    %353 = vector.broadcast %352 : vector<8x1xf32> to vector<8x256xf32>
    %354 = arith.mulf %351, %353 : vector<8x256xf32>
    %355 = arith.addf %338, %354 : vector<8x256xf32>
    %356 = vector.extract_strided_slice %0 {offsets = [0, 17], sizes = [8, 1], strides = [1, 1]} : vector<8x92xf32> to vector<8x1xf32>
    %357 = vector.broadcast %356 : vector<8x1xf32> to vector<8x256xf32>
    %358 = arith.mulf %351, %357 : vector<8x256xf32>
    %359 = arith.addf %342, %358 : vector<8x256xf32>
    %360 = vector.extract_strided_slice %0 {offsets = [0, 36], sizes = [8, 1], strides = [1, 1]} : vector<8x92xf32> to vector<8x1xf32>
    %361 = vector.broadcast %360 : vector<8x1xf32> to vector<8x256xf32>
    %362 = arith.mulf %351, %361 : vector<8x256xf32>
    %363 = arith.addf %346, %362 : vector<8x256xf32>
    %364 = vector.extract_strided_slice %0 {offsets = [0, 75], sizes = [8, 1], strides = [1, 1]} : vector<8x92xf32> to vector<8x1xf32>
    %365 = vector.broadcast %364 : vector<8x1xf32> to vector<8x256xf32>
    %366 = arith.mulf %351, %365 : vector<8x256xf32>
    %367 = arith.addf %350, %366 : vector<8x256xf32>
    %368 = vector.extract_strided_slice %48 {offsets = [0, 84], sizes = [8, 256], strides = [1, 1]} : vector<8x358xf32> to vector<8x256xf32>
    %369 = vector.extract_strided_slice %0 {offsets = [0, 41], sizes = [8, 1], strides = [1, 1]} : vector<8x92xf32> to vector<8x1xf32>
    %370 = vector.broadcast %369 : vector<8x1xf32> to vector<8x256xf32>
    %371 = arith.mulf %368, %370 : vector<8x256xf32>
    %372 = arith.addf %363, %371 : vector<8x256xf32>
    %373 = vector.extract_strided_slice %0 {offsets = [0, 82], sizes = [8, 1], strides = [1, 1]} : vector<8x92xf32> to vector<8x1xf32>
    %374 = vector.broadcast %373 : vector<8x1xf32> to vector<8x256xf32>
    %375 = arith.mulf %368, %374 : vector<8x256xf32>
    %376 = arith.addf %367, %375 : vector<8x256xf32>
    %377 = vector.extract_strided_slice %48 {offsets = [0, 100], sizes = [8, 256], strides = [1, 1]} : vector<8x358xf32> to vector<8x256xf32>
    %378 = vector.extract_strided_slice %0 {offsets = [0, 89], sizes = [8, 1], strides = [1, 1]} : vector<8x92xf32> to vector<8x1xf32>
    %379 = vector.broadcast %378 : vector<8x1xf32> to vector<8x256xf32>
    %380 = arith.mulf %377, %379 : vector<8x256xf32>
    %381 = arith.addf %376, %380 : vector<8x256xf32>
    %382 = vector.broadcast %21 : vector<1x256xf32> to vector<8x256xf32>
    %383 = arith.mulf %355, %382 : vector<8x256xf32>
    %384 = arith.addf %303, %383 : vector<8x256xf32>
    %385 = vector.broadcast %21 : vector<1x256xf32> to vector<8x256xf32>
    %386 = arith.mulf %359, %385 : vector<8x256xf32>
    %387 = arith.addf %304, %386 : vector<8x256xf32>
    %388 = vector.broadcast %21 : vector<1x256xf32> to vector<8x256xf32>
    %389 = arith.mulf %372, %388 : vector<8x256xf32>
    %390 = arith.addf %305, %389 : vector<8x256xf32>
    %391 = vector.broadcast %21 : vector<1x256xf32> to vector<8x256xf32>
    %392 = arith.mulf %381, %391 : vector<8x256xf32>
    %393 = arith.addf %306, %392 : vector<8x256xf32>
    %394 = vector.extract_strided_slice %48 {offsets = [0, 5], sizes = [8, 256], strides = [1, 1]} : vector<8x358xf32> to vector<8x256xf32>
    %395 = vector.extract_strided_slice %0 {offsets = [0, 48], sizes = [8, 1], strides = [1, 1]} : vector<8x92xf32> to vector<8x1xf32>
    %396 = vector.broadcast %395 : vector<8x1xf32> to vector<8x256xf32>
    %397 = arith.mulf %394, %396 : vector<8x256xf32>
    %398 = vector.extract_strided_slice %48 {offsets = [0, 21], sizes = [8, 256], strides = [1, 1]} : vector<8x358xf32> to vector<8x256xf32>
    %399 = vector.extract_strided_slice %0 {offsets = [0, 22], sizes = [8, 1], strides = [1, 1]} : vector<8x92xf32> to vector<8x1xf32>
    %400 = vector.broadcast %399 : vector<8x1xf32> to vector<8x256xf32>
    %401 = arith.mulf %398, %400 : vector<8x256xf32>
    %402 = vector.extract_strided_slice %0 {offsets = [0, 55], sizes = [8, 1], strides = [1, 1]} : vector<8x92xf32> to vector<8x1xf32>
    %403 = vector.broadcast %402 : vector<8x1xf32> to vector<8x256xf32>
    %404 = arith.mulf %398, %403 : vector<8x256xf32>
    %405 = arith.addf %397, %404 : vector<8x256xf32>
    %406 = vector.extract_strided_slice %48 {offsets = [0, 37], sizes = [8, 256], strides = [1, 1]} : vector<8x358xf32> to vector<8x256xf32>
    %407 = vector.extract_strided_slice %0 {offsets = [0, 27], sizes = [8, 1], strides = [1, 1]} : vector<8x92xf32> to vector<8x1xf32>
    %408 = vector.broadcast %407 : vector<8x1xf32> to vector<8x256xf32>
    %409 = arith.mulf %406, %408 : vector<8x256xf32>
    %410 = arith.addf %401, %409 : vector<8x256xf32>
    %411 = vector.extract_strided_slice %0 {offsets = [0, 62], sizes = [8, 1], strides = [1, 1]} : vector<8x92xf32> to vector<8x1xf32>
    %412 = vector.broadcast %411 : vector<8x1xf32> to vector<8x256xf32>
    %413 = arith.mulf %406, %412 : vector<8x256xf32>
    %414 = arith.addf %405, %413 : vector<8x256xf32>
    %415 = vector.extract_strided_slice %48 {offsets = [0, 53], sizes = [8, 256], strides = [1, 1]} : vector<8x358xf32> to vector<8x256xf32>
    %416 = vector.extract_strided_slice %0 {offsets = [0, 32], sizes = [8, 1], strides = [1, 1]} : vector<8x92xf32> to vector<8x1xf32>
    %417 = vector.broadcast %416 : vector<8x1xf32> to vector<8x256xf32>
    %418 = arith.mulf %415, %417 : vector<8x256xf32>
    %419 = arith.addf %410, %418 : vector<8x256xf32>
    %420 = vector.extract_strided_slice %0 {offsets = [0, 69], sizes = [8, 1], strides = [1, 1]} : vector<8x92xf32> to vector<8x1xf32>
    %421 = vector.broadcast %420 : vector<8x1xf32> to vector<8x256xf32>
    %422 = arith.mulf %415, %421 : vector<8x256xf32>
    %423 = arith.addf %414, %422 : vector<8x256xf32>
    %424 = vector.extract_strided_slice %48 {offsets = [0, 69], sizes = [8, 256], strides = [1, 1]} : vector<8x358xf32> to vector<8x256xf32>
    %425 = vector.extract_strided_slice %0 {offsets = [0, 37], sizes = [8, 1], strides = [1, 1]} : vector<8x92xf32> to vector<8x1xf32>
    %426 = vector.broadcast %425 : vector<8x1xf32> to vector<8x256xf32>
    %427 = arith.mulf %424, %426 : vector<8x256xf32>
    %428 = arith.addf %419, %427 : vector<8x256xf32>
    %429 = vector.extract_strided_slice %0 {offsets = [0, 76], sizes = [8, 1], strides = [1, 1]} : vector<8x92xf32> to vector<8x1xf32>
    %430 = vector.broadcast %429 : vector<8x1xf32> to vector<8x256xf32>
    %431 = arith.mulf %424, %430 : vector<8x256xf32>
    %432 = arith.addf %423, %431 : vector<8x256xf32>
    %433 = vector.extract_strided_slice %48 {offsets = [0, 85], sizes = [8, 256], strides = [1, 1]} : vector<8x358xf32> to vector<8x256xf32>
    %434 = vector.extract_strided_slice %0 {offsets = [0, 42], sizes = [8, 1], strides = [1, 1]} : vector<8x92xf32> to vector<8x1xf32>
    %435 = vector.broadcast %434 : vector<8x1xf32> to vector<8x256xf32>
    %436 = arith.mulf %433, %435 : vector<8x256xf32>
    %437 = arith.addf %428, %436 : vector<8x256xf32>
    %438 = vector.extract_strided_slice %0 {offsets = [0, 83], sizes = [8, 1], strides = [1, 1]} : vector<8x92xf32> to vector<8x1xf32>
    %439 = vector.broadcast %438 : vector<8x1xf32> to vector<8x256xf32>
    %440 = arith.mulf %433, %439 : vector<8x256xf32>
    %441 = arith.addf %432, %440 : vector<8x256xf32>
    %442 = vector.extract_strided_slice %48 {offsets = [0, 101], sizes = [8, 256], strides = [1, 1]} : vector<8x358xf32> to vector<8x256xf32>
    %443 = vector.extract_strided_slice %0 {offsets = [0, 90], sizes = [8, 1], strides = [1, 1]} : vector<8x92xf32> to vector<8x1xf32>
    %444 = vector.broadcast %443 : vector<8x1xf32> to vector<8x256xf32>
    %445 = arith.mulf %442, %444 : vector<8x256xf32>
    %446 = arith.addf %441, %445 : vector<8x256xf32>
    %447 = vector.broadcast %26 : vector<1x256xf32> to vector<8x256xf32>
    %448 = arith.mulf %437, %447 : vector<8x256xf32>
    %449 = arith.addf %390, %448 : vector<8x256xf32>
    %450 = vector.broadcast %26 : vector<1x256xf32> to vector<8x256xf32>
    %451 = arith.mulf %446, %450 : vector<8x256xf32>
    %452 = arith.addf %393, %451 : vector<8x256xf32>
    %453 = vector.extract_strided_slice %48 {offsets = [0, 6], sizes = [8, 256], strides = [1, 1]} : vector<8x358xf32> to vector<8x256xf32>
    %454 = vector.extract_strided_slice %0 {offsets = [0, 49], sizes = [8, 1], strides = [1, 1]} : vector<8x92xf32> to vector<8x1xf32>
    %455 = vector.broadcast %454 : vector<8x1xf32> to vector<8x256xf32>
    %456 = arith.mulf %453, %455 : vector<8x256xf32>
    %457 = vector.extract_strided_slice %48 {offsets = [0, 22], sizes = [8, 256], strides = [1, 1]} : vector<8x358xf32> to vector<8x256xf32>
    %458 = vector.extract_strided_slice %0 {offsets = [0, 56], sizes = [8, 1], strides = [1, 1]} : vector<8x92xf32> to vector<8x1xf32>
    %459 = vector.broadcast %458 : vector<8x1xf32> to vector<8x256xf32>
    %460 = arith.mulf %457, %459 : vector<8x256xf32>
    %461 = arith.addf %456, %460 : vector<8x256xf32>
    %462 = vector.extract_strided_slice %48 {offsets = [0, 38], sizes = [8, 256], strides = [1, 1]} : vector<8x358xf32> to vector<8x256xf32>
    %463 = vector.extract_strided_slice %0 {offsets = [0, 63], sizes = [8, 1], strides = [1, 1]} : vector<8x92xf32> to vector<8x1xf32>
    %464 = vector.broadcast %463 : vector<8x1xf32> to vector<8x256xf32>
    %465 = arith.mulf %462, %464 : vector<8x256xf32>
    %466 = arith.addf %461, %465 : vector<8x256xf32>
    %467 = vector.extract_strided_slice %48 {offsets = [0, 54], sizes = [8, 256], strides = [1, 1]} : vector<8x358xf32> to vector<8x256xf32>
    %468 = vector.extract_strided_slice %0 {offsets = [0, 70], sizes = [8, 1], strides = [1, 1]} : vector<8x92xf32> to vector<8x1xf32>
    %469 = vector.broadcast %468 : vector<8x1xf32> to vector<8x256xf32>
    %470 = arith.mulf %467, %469 : vector<8x256xf32>
    %471 = arith.addf %466, %470 : vector<8x256xf32>
    %472 = vector.extract_strided_slice %48 {offsets = [0, 70], sizes = [8, 256], strides = [1, 1]} : vector<8x358xf32> to vector<8x256xf32>
    %473 = vector.extract_strided_slice %0 {offsets = [0, 77], sizes = [8, 1], strides = [1, 1]} : vector<8x92xf32> to vector<8x1xf32>
    %474 = vector.broadcast %473 : vector<8x1xf32> to vector<8x256xf32>
    %475 = arith.mulf %472, %474 : vector<8x256xf32>
    %476 = arith.addf %471, %475 : vector<8x256xf32>
    %477 = vector.extract_strided_slice %48 {offsets = [0, 86], sizes = [8, 256], strides = [1, 1]} : vector<8x358xf32> to vector<8x256xf32>
    %478 = vector.extract_strided_slice %0 {offsets = [0, 84], sizes = [8, 1], strides = [1, 1]} : vector<8x92xf32> to vector<8x1xf32>
    %479 = vector.broadcast %478 : vector<8x1xf32> to vector<8x256xf32>
    %480 = arith.mulf %477, %479 : vector<8x256xf32>
    %481 = arith.addf %476, %480 : vector<8x256xf32>
    %482 = vector.extract_strided_slice %48 {offsets = [0, 102], sizes = [8, 256], strides = [1, 1]} : vector<8x358xf32> to vector<8x256xf32>
    %483 = vector.extract_strided_slice %0 {offsets = [0, 91], sizes = [8, 1], strides = [1, 1]} : vector<8x92xf32> to vector<8x1xf32>
    %484 = vector.broadcast %483 : vector<8x1xf32> to vector<8x256xf32>
    %485 = arith.mulf %482, %484 : vector<8x256xf32>
    %486 = arith.addf %481, %485 : vector<8x256xf32>
    %487 = vector.broadcast %31 : vector<1x256xf32> to vector<8x256xf32>
    %488 = arith.mulf %486, %487 : vector<8x256xf32>
    %489 = arith.addf %452, %488 : vector<8x256xf32>
    %490 = arith.truncf %384 : vector<8x256xf32> to vector<8x256xbf16>
    %cst_29 = arith.constant dense<0.000000e+00> : vector<16x256xf32>
    %491 = tpu.matmul %34, %490, %cst_29 {dimension_numbers = #tpu.dot_dimension_numbers<[1], [0], [0], [1], [0, 0, 1, 1], [], []>} : vector<16x8xbf16>, vector<8x256xbf16>, vector<16x256xf32> -> vector<16x256xf32>
    %492 = vector.broadcast %44 : vector<16x1xf32> to vector<16x256xf32>
    %493 = arith.addf %492, %491 : vector<16x256xf32>
    %494 = arith.truncf %387 : vector<8x256xf32> to vector<8x256xbf16>
    %cst_30 = arith.constant dense<0.000000e+00> : vector<16x256xf32>
    %495 = tpu.matmul %37, %494, %cst_30 {dimension_numbers = #tpu.dot_dimension_numbers<[1], [0], [0], [1], [0, 0, 1, 1], [], []>} : vector<16x8xbf16>, vector<8x256xbf16>, vector<16x256xf32> -> vector<16x256xf32>
    %496 = arith.addf %493, %495 : vector<16x256xf32>
    %497 = arith.truncf %449 : vector<8x256xf32> to vector<8x256xbf16>
    %cst_31 = arith.constant dense<0.000000e+00> : vector<16x256xf32>
    %498 = tpu.matmul %40, %497, %cst_31 {dimension_numbers = #tpu.dot_dimension_numbers<[1], [0], [0], [1], [0, 0, 1, 1], [], []>} : vector<16x8xbf16>, vector<8x256xbf16>, vector<16x256xf32> -> vector<16x256xf32>
    %499 = arith.addf %496, %498 : vector<16x256xf32>
    %500 = arith.truncf %489 : vector<8x256xf32> to vector<8x256xbf16>
    %cst_32 = arith.constant dense<0.000000e+00> : vector<16x256xf32>
    %501 = tpu.matmul %43, %500, %cst_32 {dimension_numbers = #tpu.dot_dimension_numbers<[1], [0], [0], [1], [0, 0, 1, 1], [], []>} : vector<16x8xbf16>, vector<8x256xbf16>, vector<16x256xf32> -> vector<16x256xf32>
    %502 = arith.addf %499, %501 : vector<16x256xf32>
    %c0_33 = arith.constant 0 : index
    %c0_34 = arith.constant 0 : index
    %c0_35 = arith.constant 0 : index
    %503 = vector.load %arg6[%c0_33, %c0_34, %c0_35] : memref<1x16x256xf32, #tpu.memory_space<vmem>>, vector<1x16x256xf32>
    %504 = vector.shape_cast %503 : vector<1x16x256xf32> to vector<16x256xf32>
    %505 = vector.shape_cast %502 : vector<16x256xf32> to vector<1x16x256xf32>
    tpu.vector_store %arg6[%c0_33, %c0_34, %c0_35], %505 {strides = array<i32>} : memref<1x16x256xf32, #tpu.memory_space<vmem>>, vector<1x16x256xf32>,
    return
  }
  func.func @transform_0(%arg0: i32) -> (i32, i32, i32) {
    %c0_i32 = arith.constant 0 : i32
    %c0_i32_0 = arith.constant 0 : i32
    %c0_i32_1 = arith.constant 0 : i32
    return %arg0, %c0_i32, %c0_i32_0 : i32, i32, i32
  }
  func.func @transform_1(%arg0: i32) -> (i32, i32) {
    %c0_i32 = arith.constant 0 : i32
    %c0_i32_0 = arith.constant 0 : i32
    %c0_i32_1 = arith.constant 0 : i32
    return %c0_i32, %c0_i32_0 : i32, i32
  }
  func.func @transform_2(%arg0: i32) -> (i32, i32) {
    %c0_i32 = arith.constant 0 : i32
    %c0_i32_0 = arith.constant 0 : i32
    %c0_i32_1 = arith.constant 0 : i32
    return %c0_i32, %c0_i32_0 : i32, i32
  }
  func.func @transform_3(%arg0: i32) -> (i32, i32, i32) {
    %c0_i32 = arith.constant 0 : i32
    %c0_i32_0 = arith.constant 0 : i32
    %c0_i32_1 = arith.constant 0 : i32
    %c0_i32_2 = arith.constant 0 : i32
    return %c0_i32, %c0_i32_0, %c0_i32_1 : i32, i32, i32
  }
  func.func @transform_4(%arg0: i32) -> (i32, i32) {
    %c0_i32 = arith.constant 0 : i32
    %c0_i32_0 = arith.constant 0 : i32
    %c0_i32_1 = arith.constant 0 : i32
    return %c0_i32, %c0_i32_0 : i32, i32
  }
  func.func @transform_5(%arg0: i32) -> (i32, i32, i32) {
    %c0_i32 = arith.constant 0 : i32
    %c0_i32_0 = arith.constant 0 : i32
    %c0_i32_1 = arith.constant 0 : i32
    return %arg0, %c0_i32, %c0_i32_0 : i32, i32, i32
  }
}

</mosaic_0001>

<bundles_post_ra>
// kernel: tpu_custom_call.1
= control target key start
LH: loop header
LB: loop body
LE: loop exit
PB: predicated region body
PF: predicated region fallthrough
CT: control target
= control target key end

     0   :  { %10 = vsyncpa [#allocation3], 0  ;;  %s5620_s0 = inlined_call_operand.vmem [shape: f32[2,8,256], index: 0, kind: input, shape index: {}]   ;;  %s5621_s1 = inlined_call_operand.vmem [shape: s32[1,256], index: 1, kind: input, shape index: {}]   ;;  %s5622_s2 = inlined_call_operand.vmem [shape: f32[8,92], index: 2, kind: input, shape index: {}]   ;;  %s5623_s3 = inlined_call_operand.vmem [shape: f32[4,16,8], index: 3, kind: input, shape index: {}]   ;;  %s5624_s4 = inlined_call_operand.vmem [shape: f32[16,1], index: 4, kind: input, shape index: {}]   ;;  %s5625_s5 = inlined_call_operand.hbm [shape: f32[2,16,256], index: 5, kind: output, shape index: {}]  }
   0x1   :  { %12 = vsyncpa [#allocation3 + $0x1], 0  ;;  %s3510_s18 = smov 0   ;;  %s3512_s19 = smov 0  }
   0x2   :  { %s3514_s20 = smov 0   ;;  %s3516_s21 = smov 0  }
   0x3 LB: > { %s3531_s22 = sadd.s32 4294967295, %s3356_s21   ;;  %s2956_s23 = sadd.s32 4294967294, %s3356_s21   ;;  %s3356_s21 = sphi %s3516_s21, %s5852_s21   ;;  %s3352_s20 = sphi %s3514_s20, %s5851_s20   ;;  %s3348_s19 = sphi %s3512_s19, %s5850_s19   ;;  %s3344_s18 = sphi %s3510_s18, %s5849_s18  }
   0x4   : > { %s3535_s24 = sadd.s32 1, %s3356_s21   ;;  %s135_s25 = sadd.s32 1, %s3352_s20 }
   0x5   : > { %s132_s26 = ssub.s32 %s3356_s21, %s3535_s24  ;;  %p145_p0 = scmp.ne.s32.totalorder %s3352_s20, %s3348_s19 }
   0x6   : > { %p133_p1 = scmp.eq.s32.totalorder %s132_s26, 0  ;;  %p146_p2 = scmp.eq.s32.totalorder %s3531_s22, 1 }
   0x7   : > { %p151_p3 = scmp.ne.s32.totalorder %s3348_s19, %s3344_s18  ;;  %p152_p4 = scmp.eq.s32.totalorder %s2956_s23, 1 }
   0x8   : > { %s3546_s27 = scalar_select %p133_p1, %s3352_s20, %s135_s25  }
   0x9   : > { %p3548_p5 = por %p146_p2, %p145_p0  ;;  %p3552_p6 = por %p152_p4, %p151_p3 }
   0xa   : > { %p2959_p7 = scmp.ge.s32.totalorder %s3356_s21, 1  ;;  %p190_p8 = scmp.lt.s32.totalorder %s3356_s21, 3 }
   0xc   : > { %p191_p9 = pnand %p2959_p7, %p190_p8 }
   0xe   : > { %194 = sbr.rel (%p191_p9) target bundleno = 4910 (0x132e), region = 40 }
  0x13   : > { %v3561_v0 = vld [vmem:[%s5622_s2] sm:$0xff]  ;;  %p218_p10 = scmp.lt.s32.totalorder %s3531_s22, 1  ;;  %v3358_v1 = vmov 43   ;;  %v3359_v2 = vmov 18   ;;  %v3360_v3 = vmov 50   ;;  %s3361_s12 = smov 51  }
  0x14   : > { %3144 = vset.pattern.permute.xlu1 %v3358_v1  ;;  %3152 = vset.pattern.permute.xlu0 %v3359_v2  ;;  %v3362_v6 = vmov 57   ;;  %v3363_v7 = vmov 64   ;;  %v3364_v8 = vmov 23   ;;  %v3365_v9 = vmov 71   ;;  %s3378_s13 = smov 112   ;;  %s3379_s14 = smov 96  }
  0x15   : > { %272 = vperm.xlu1 %3144, %v3561_v0   ;;  %s219_s7 = scalar_select %p218_p10, %s3531_s22, 1  ;;  %v3366_v10 = vmov 78   ;;  %v3367_v11 = vmov 85   ;;  %v3368_v12 = vmov 44   ;;  %v3369_v13 = vmov 51  }
  0x16   : > { %v3370_v14 = vmov 58   ;;  %v3371_v15 = vmov 28   ;;  %v3372_v16 = vmov 65   ;;  %v3373_v17 = vmov 33   ;;  %s3380_s15 = smov 80   ;;  %s3381_s16 = smov 64  }
  0x17   : > { %s2982_s8 = sshll.u32 %s219_s7, 4  ;;  %v3374_v18 = vmov 72   ;;  %v3375_v19 = vmov 38   ;;  %v3376_v20 = vmov 79   ;;  %v3377_v21 = vmov 86   ;;  %s3382_s17 = smov 48  }
  0x18   : > { %s222_s11 = scalar_lea.vmem %s5620_s0, %s2982_s8  ;;  %vm263_vm0 = vcmask 416768   ;;  %s3383_s23 = smov 32   ;;  %vm293_vm2 = vcmask 916480   ;;  %vm316_vm3 = vcmask 785408   ;;  %vm339_vm4 = vcmask 654336  }
  0x19   : > { %3145 = vset.pattern.permute.xlu1 %v3360_v3  ;;  %v255_v4 = vld [vmem:[%s222_s11] sm:$0xff]  ;;  %v256_v5 = vld [vmem:[%s222_s11 + $0x8] sm:$0xff]  ;;  %s3387_s30 = smov 17   ;;  %s3388_s6 = smov 1   ;;  %vm362_vm5 = vcmask 523264   ;;  %vm385_vm6 = vcmask 392192  }
  0x1a   : > { %278 = vperm.xlu1 %3145, %v3561_v0   ;;  %259 = vrot.lane.b32.xlu0 %v255_v4, %s3361_s12  ;;  %vm408_vm7 = vcmask 261120   ;;  %vm707_vm8 = vcmask 7168   ;;  %s3404_s7 = smov 127   ;;  %s3406_s8 = smov 34   ;;  %vm1123_vm10 = vcmask 146432   ;;  %vm1152_vm11 = vcmask 15360  }
  0x1b   : > { %s3407_s9 = smov 18   ;;  %s3410_s10 = smov 2   ;;  %vm1984_vm14 = vcmask 293888   ;;  %vm2033_vm15 = vcmask 162816  }
  0x1c   : > { %s3411_s11 = smov 126  }
  0x1e   : > { %3146 = vset.pattern.permute.xlu1 %v3362_v6  ;;  %261 = vrot.lane.b32.xlu0 %v256_v5, %s3361_s12 }
  0x1f   : > { %301 = vperm.xlu1 %3146, %v3561_v0  }
  0x22   : > { %436 = vperm.xlu0 %3152, %v3561_v0  }
  0x23   : > { %3147 = vset.pattern.permute.xlu1 %v3363_v7 }
  0x24   : > { %324 = vperm.xlu1 %3147, %v3561_v0  }
  0x26   : > { %3154 = vset.pattern.permute.xlu0 %v3364_v8 }
  0x27   : > { %467 = vperm.xlu0 %3154, %v3561_v0  }
  0x28   : > { %3148 = vset.pattern.permute.xlu1 %v3365_v9 }
  0x29   : > { %347 = vperm.xlu1 %3148, %v3561_v0  }
  0x2d   : > { %3149 = vset.pattern.permute.xlu1 %v3366_v10 }
  0x2e   : > { %370 = vperm.xlu1 %3149, %v3561_v0  }
  0x32   : > { %3150 = vset.pattern.permute.xlu1 %v3367_v11 }
  0x33   : > { %393 = vperm.xlu1 %3150, %v3561_v0  }
  0x37   : > { %3151 = vset.pattern.permute.xlu1 %v3368_v12 }
  0x38   : > { %429 = vperm.xlu1 %3151, %v3561_v0  }
  0x3c   : > { %3153 = vset.pattern.permute.xlu1 %v3369_v13 }
  0x3d   : > { %443 = vperm.xlu1 %3153, %v3561_v0  }
  0x41   : > { %3155 = vset.pattern.permute.xlu1 %v3370_v14 }
  0x42   : > { %491 = vperm.xlu1 %3155, %v3561_v0  }
  0x46   : > { %3156 = vset.pattern.permute.xlu1 %v3371_v15 }
  0x47   : > { %515 = vperm.xlu1 %3156, %v3561_v0  }
  0x4b   : > { %3157 = vset.pattern.permute.xlu1 %v3372_v16 }
  0x4c   : > { %539 = vperm.xlu1 %3157, %v3561_v0  }
  0x50   : > { %3158 = vset.pattern.permute.xlu1 %v3373_v17 }
  0x51   : > { %563 = vperm.xlu1 %3158, %v3561_v0  }
  0x55   : > { %3159 = vset.pattern.permute.xlu1 %v3374_v18 }
  0x56   : > { %587 = vperm.xlu1 %3159, %v3561_v0  }
  0x5a   : > { %3160 = vset.pattern.permute.xlu1 %v3375_v19 }
  0x5b   : > { %611 = vperm.xlu1 %3160, %v3561_v0  }
  0x5f   : > { %3161 = vset.pattern.permute.xlu1 %v3376_v20 }
  0x60   : > { %635 = vperm.xlu1 %3161, %v3561_v0  }
  0x64   : > { %3162 = vset.pattern.permute.xlu1 %v3377_v21  ;;  %v3384_v21 = vmov 19  }
  0x8c   : > { %v260_v22 = vpop.permute.xlu0 %259 }
  0x8d   : > { %v3588_v25 = vsel %vm263_vm0, 0.0, %v260_v22 }
  0x90   : > { %v3586_v23 = vpop.permute.xlu1 %272  ;;  %v262_v24 = vpop.permute.xlu0 %261 }
  0x91   : > { %5685 = vst [vmem:[#allocation5_spill] sm:$0xff] %v3586_v23  ;;  %v3590_v26 = vsel %vm263_vm0, %v260_v22, %v262_v24  ;;  %v3594_v30 = vsel %vm263_vm0, %v262_v24, 0.0  ;;  %v3385_v24 = vmov 45   ;;  %vm2353_vm0 = vcmask 171008  }
  0x92   : > { %3173 = vset.pattern.permute.xlu0 %v3385_v24 }
  0x95   : > { %v279_v27 = vpop.permute.xlu1 %278 }
  0x96   : > { %v281_v28 = vmul.f32 %v279_v27, %v3588_v25  ;;  %v282_v29 = vmul.f32 %v279_v27, %v3590_v26  ;;  %v283_v32 = vmul.f32 %v279_v27, %v3594_v30 }
  0x98   : > { %287 = vrot.lane.b32.xlu0 %v281_v28, %s3378_s13  ;;  %289 = vrot.lane.b32.xlu1 %v282_v29, %s3378_s13 }
  0x9a   : > { %v302_v31 = vpop.permute.xlu1 %301 }
  0x9b   : > { %v305_v33 = vmul.f32 %v302_v31, %v3590_v26  ;;  %v304_v34 = vmul.f32 %v302_v31, %v3588_v25  ;;  %v306_v37 = vmul.f32 %v302_v31, %v3594_v30 }
  0x9c   : > { %291 = vrot.lane.b32.xlu0 %v283_v32, %s3378_s13 }
  0x9d   : > { %312 = vrot.lane.b32.xlu1 %v305_v33, %s3379_s14  ;;  %v3625_v50 = vpop.permute.xlu0 %436 }
  0x9e   : > { %5686 = vst [vmem:[#allocation6_spill] sm:$0xff] %v3625_v50 }
  0x9f   : > { %v325_v35 = vpop.permute.xlu1 %324 }
  0xa0   : > { %310 = vrot.lane.b32.xlu0 %v304_v34, %s3379_s14  ;;  %v328_v36 = vmul.f32 %v325_v35, %v3590_v26  ;;  %v327_v40 = vmul.f32 %v325_v35, %v3588_v25  ;;  %v329_v42 = vmul.f32 %v325_v35, %v3594_v30 }
  0xa2   : > { %335 = vrot.lane.b32.xlu1 %v328_v36, %s3380_s15  ;;  %v468_v56 = vpop.permute.xlu0 %467 }
  0xa3   : > { %v470_v58 = vmul.f32 %v468_v56, %v3588_v25  ;;  %v471_v61 = vmul.f32 %v468_v56, %v3590_v26  ;;  %v472_v2 = vmul.f32 %v468_v56, %v3594_v30 }
  0xa4   : > { %v348_v38 = vpop.permute.xlu1 %347  ;;  %314 = vrot.lane.b32.xlu0 %v306_v37, %s3379_s14 }
  0xa5   : > { %v351_v39 = vmul.f32 %v348_v38, %v3590_v26  ;;  %v350_v45 = vmul.f32 %v348_v38, %v3588_v25  ;;  %v352_v47 = vmul.f32 %v348_v38, %v3594_v30 }
  0xa7   : > { %358 = vrot.lane.b32.xlu1 %v351_v39, %s3381_s16 }
  0xa8   : > { %333 = vrot.lane.b32.xlu0 %v327_v40, %s3380_s15 }
  0xa9   : > { %v371_v41 = vpop.permute.xlu1 %370 }
  0xaa   : > { %v374_v43 = vmul.f32 %v371_v41, %v3590_v26  ;;  %v373_v49 = vmul.f32 %v371_v41, %v3588_v25  ;;  %v375_v53 = vmul.f32 %v371_v41, %v3594_v30 }
  0xac   : > { %337 = vrot.lane.b32.xlu0 %v329_v42, %s3380_s15  ;;  %381 = vrot.lane.b32.xlu1 %v374_v43, %s3382_s17 }
  0xae   : > { %v394_v44 = vpop.permute.xlu1 %393 }
  0xaf   : > { %v397_v46 = vmul.f32 %v394_v44, %v3590_v26  ;;  %v396_v57 = vmul.f32 %v394_v44, %v3588_v25  ;;  %v398_v60 = vmul.f32 %v394_v44, %v3594_v30 }
  0xb0   : > { %356 = vrot.lane.b32.xlu0 %v350_v45, %s3381_s16 }
  0xb1   : > { %404 = vrot.lane.b32.xlu1 %v397_v46, %s3383_s23 }
  0xb3   : > { %v3621_v48 = vpop.permute.xlu1 %429 }
  0xb4   : > { %360 = vrot.lane.b32.xlu0 %v352_v47, %s3381_s16 }
  0xb8   : > { %v444_v51 = vpop.permute.xlu1 %443  ;;  %379 = vrot.lane.b32.xlu0 %v373_v49, %s3382_s17  ;;  %v416_v49 = vlaneseq }
  0xb9   : > { %v446_v52 = vmul.f32 %v444_v51, %v3588_v25  ;;  %v448_v55 = vmul.f32 %v444_v51, %v3594_v30  ;;  %v447_v62 = vmul.f32 %v444_v51, %v3590_v26 }
  0xbb   : > { %452 = vrot.lane.b32.xlu1 %v446_v52, %s3378_s13  ;;  %v3724_v52 = vld [vmem:[%s5621_s1] sm:$0x3] }
  0xbc   : > { %383 = vrot.lane.b32.xlu0 %v375_v53, %s3382_s17  ;;  %v417_v53 = vshrl.u32 %v416_v49, 7  ;;  %vm228_vm1 = vcmp.ge.s32.totalorder %v3724_v52, 2  ;;  %vm230_vm9 = vcmp.ge.s32.totalorder %v3724_v52, 1 }
  0xbd   : > { %v492_v54 = vpop.permute.xlu1 %491 }
  0xbe   : > { %v495_v1 = vmul.f32 %v492_v54, %v3590_v26  ;;  %v494_v5 = vmul.f32 %v492_v54, %v3588_v25  ;;  %v496_v8 = vmul.f32 %v492_v54, %v3594_v30 }
  0xbf   : > { %456 = vrot.lane.b32.xlu1 %v448_v55, %s3378_s13  ;;  %v5628_v55 = vmov 0.0  }
  0xc0   : > { %402 = vrot.lane.b32.xlu0 %v396_v57, %s3383_s23  ;;  %v229_v56 = vsel %vm228_vm1, 1.0, %v5628_v55  ;;  %v3730_v57 = vsub.s32 1, %v417_v53 }
  0xc2   : > { %v516_v59 = vpop.permute.xlu1 %515  ;;  %5698 = vst [vmem:[#allocation18_spill] sm:$0xff] %v3730_v57 }
  0xc3   : > { %476 = vrot.lane.b32.xlu1 %v470_v58, %s3378_s13  ;;  %v519_v4 = vmul.f32 %v516_v59, %v3590_v26  ;;  %v518_v10 = vmul.f32 %v516_v59, %v3588_v25  ;;  %v520_v13 = vmul.f32 %v516_v59, %v3594_v30  ;;  %v3732_v58 = vsub.s32 0, %v417_v53 }
  0xc4   : > { %406 = vrot.lane.b32.xlu0 %v398_v60, %s3383_s23  ;;  %v690_v60 = vrot.slane %v229_v56, %v3730_v57 }
  0xc5   : > { %5699 = vst [vmem:[#allocation19_spill] sm:$0xff] %v3732_v58  ;;  %v686_v59 = vrot.slane %v229_v56, %v3732_v58 }
  0xc7   : > { %v540_v63 = vpop.permute.xlu1 %539  ;;  %478 = vrot.lane.b32.xlu1 %v471_v61, %s3378_s13 }
  0xc8   : > { %454 = vrot.lane.b32.xlu0 %v447_v62, %s3378_s13  ;;  %v543_v6 = vmul.f32 %v540_v63, %v3590_v26  ;;  %v542_v16 = vmul.f32 %v540_v63, %v3588_v25  ;;  %v544_v18 = vmul.f32 %v540_v63, %v3594_v30 }
  0xcb   : > { %502 = vrot.lane.b32.xlu1 %v495_v1, %s3379_s14  ;;  %v3163_v1 = vpack.i.bf16 %v690_v60, %v686_v59 }
  0xcc   : > { %v564_v3 = vpop.permute.xlu1 %563  ;;  %480 = vrot.lane.b32.xlu0 %v472_v2, %s3378_s13 }
  0xcd   : > { %v567_v9 = vmul.f32 %v564_v3, %v3590_v26  ;;  %v566_v19 = vmul.f32 %v564_v3, %v3588_v25  ;;  %v568_v20 = vmul.f32 %v564_v3, %v3594_v30  ;;  %v3389_v3 = vmov 52  }
  0xcf   : > { %526 = vrot.lane.b32.xlu1 %v519_v4, %s3379_s14  ;;  %v5626_v4 = vmov 0  }
  0xd0   : > { %500 = vrot.lane.b32.xlu0 %v494_v5, %s3379_s14  ;;  %2652 = vmatprep.mubr.bf16.mxu0 %v5626_v4  ;;  %v3391_v5 = vmov 9  }
  0xd1   : > { %v588_v7 = vpop.permute.xlu1 %587  ;;  %2732 = vmatprep.mubr.bf16.mxu1 %v5626_v4 }
  0xd2   : > { %v591_v12 = vmul.f32 %v588_v7, %v3590_v26  ;;  %v590_v22 = vmul.f32 %v588_v7, %v3588_v25  ;;  %v592_v27 = vmul.f32 %v588_v7, %v3594_v30 }
  0xd3   : > { %550 = vrot.lane.b32.xlu1 %v543_v6, %s3380_s15 }
  0xd4   : > { %504 = vrot.lane.b32.xlu0 %v496_v8, %s3379_s14 }
  0xd6   : > { %v612_v11 = vpop.permute.xlu1 %611 }
  0xd7   : > { %574 = vrot.lane.b32.xlu1 %v567_v9, %s3380_s15  ;;  %v615_v14 = vmul.f32 %v612_v11, %v3590_v26  ;;  %v614_v28 = vmul.f32 %v612_v11, %v3588_v25  ;;  %v616_v29 = vmul.f32 %v612_v11, %v3594_v30 }
  0xd8   : > { %524 = vrot.lane.b32.xlu0 %v518_v10, %s3379_s14 }
  0xdb   : > { %598 = vrot.lane.b32.xlu1 %v591_v12, %s3381_s16  ;;  %v636_v15 = vpop.permute.xlu1 %635 }
  0xdc   : > { %528 = vrot.lane.b32.xlu0 %v520_v13, %s3379_s14  ;;  %v639_v17 = vmul.f32 %v636_v15, %v3590_v26  ;;  %v638_v31 = vmul.f32 %v636_v15, %v3588_v25  ;;  %v640_v32 = vmul.f32 %v636_v15, %v3594_v30  ;;  %v3392_v13 = vmov 24  }
  0xdf   : > { %622 = vrot.lane.b32.xlu1 %v615_v14, %s3381_s16  ;;  %v3393_v14 = vmov 59  }
  0xe0   : > { %548 = vrot.lane.b32.xlu0 %v542_v16, %s3380_s15 }
  0xe3   : > { %646 = vrot.lane.b32.xlu1 %v639_v17, %s3382_s17 }
  0xe4   : > { %552 = vrot.lane.b32.xlu0 %v544_v18, %s3380_s15 }
  0xe7   : > { %659 = vperm.xlu1 %3162, %v3561_v0  }
  0xe8   : > { %572 = vrot.lane.b32.xlu0 %v566_v19, %s3380_s15 }
  0xeb   : > { %3174 = vset.pattern.permute.xlu1 %v3384_v21 }
  0xec   : > { %576 = vrot.lane.b32.xlu0 %v568_v20, %s3380_s15 }
  0xf0   : > { %596 = vrot.lane.b32.xlu0 %v590_v22, %s3381_s16 }
  0xf4   : > { %600 = vrot.lane.b32.xlu0 %v592_v27, %s3381_s16 }
  0xf8   : > { %620 = vrot.lane.b32.xlu0 %v614_v28, %s3381_s16 }
  0xfc   : > { %624 = vrot.lane.b32.xlu0 %v616_v29, %s3381_s16 }
 0x100   : > { %644 = vrot.lane.b32.xlu0 %v638_v31, %s3382_s17 }
 0x104   : > { %648 = vrot.lane.b32.xlu0 %v640_v32, %s3382_s17 }
 0x10a   : > { %v3689_v33 = vpop.permute.xlu1 %289  ;;  %v3763_v15 = vpop.permute.xlu0 %287 }
 0x10b   : > { %5687 = vst [vmem:[#allocation7_spill] sm:$0xff] %v3689_v33  ;;  %5701 = vst [vmem:[#allocation21_spill] sm:$0xff] %v3763_v15 }
 0x10e   : > { %v3765_v16 = vpop.permute.xlu0 %291 }
 0x10f   : > { %v3691_v34 = vpop.permute.xlu1 %312  ;;  %5702 = vst [vmem:[#allocation22_spill] sm:$0xff] %v3765_v16 }
 0x110   : > { %5688 = vst [vmem:[#allocation8_spill] sm:$0xff] %v3691_v34 }
 0x112   : > { %v3767_v17 = vpop.permute.xlu0 %310 }
 0x113   : > { %5703 = vst [vmem:[#allocation23_spill] sm:$0xff] %v3767_v17 }
 0x114   : > { %v3693_v35 = vpop.permute.xlu1 %335 }
 0x115   : > { %5689 = vst [vmem:[#allocation9_spill] sm:$0xff] %v3693_v35 }
 0x116   : > { %v3769_v18 = vpop.permute.xlu0 %314 }
 0x117   : > { %5704 = vst [vmem:[#allocation24_spill] sm:$0xff] %v3769_v18 }
 0x119   : > { %v3695_v36 = vpop.permute.xlu1 %358 }
 0x11a   : > { %5690 = vst [vmem:[#allocation10_spill] sm:$0xff] %v3695_v36  ;;  %v3771_v19 = vpop.permute.xlu0 %333  ;;  %v3395_v36 = vmov 12  }
 0x11b   : > { %5705 = vst [vmem:[#allocation25_spill] sm:$0xff] %v3771_v19 }
 0x11e   : > { %v3697_v37 = vpop.permute.xlu1 %381  ;;  %v3773_v20 = vpop.permute.xlu0 %337 }
 0x11f   : > { %5691 = vst [vmem:[#allocation11_spill] sm:$0xff] %v3697_v37  ;;  %5706 = vst [vmem:[#allocation26_spill] sm:$0xff] %v3773_v20 }
 0x122   : > { %v3775_v21 = vpop.permute.xlu0 %356 }
 0x123   : > { %v3699_v38 = vpop.permute.xlu1 %404  ;;  %5707 = vst [vmem:[#allocation27_spill] sm:$0xff] %v3775_v21 }
 0x124   : > { %5692 = vst [vmem:[#allocation12_spill] sm:$0xff] %v3699_v38 }
 0x126   : > { %v3777_v22 = vpop.permute.xlu0 %360 }
 0x127   : > { %5708 = vst [vmem:[#allocation28_spill] sm:$0xff] %v3777_v22 }
 0x12a   : > { %v3779_v24 = vpop.permute.xlu0 %379 }
 0x12b   : > { %5709 = vst [vmem:[#allocation29_spill] sm:$0xff] %v3779_v24 }
 0x12d   : > { %v3701_v39 = vpop.permute.xlu1 %452 }
 0x12e   : > { %v3781_v27 = vpop.permute.xlu0 %383 }
 0x12f   : > { %5710 = vst [vmem:[#allocation30_spill] sm:$0xff] %v3781_v27 }
 0x131   : > { %v3703_v40 = vpop.permute.xlu1 %456 }
 0x132   : > { %v3783_v28 = vpop.permute.xlu0 %402 }
 0x133   : > { %5711 = vst [vmem:[#allocation31_spill] sm:$0xff] %v3783_v28 }
 0x135   : > { %v3705_v41 = vpop.permute.xlu1 %476 }
 0x136   : > { %5693 = vst [vmem:[#allocation13_spill] sm:$0xff] %v3705_v41  ;;  %v3787_v31 = vpop.permute.xlu0 %406 }
 0x137   : > { %5712 = vst [vmem:[#allocation32_spill] sm:$0xff] %v3787_v31 }
 0x139   : > { %v3707_v42 = vpop.permute.xlu1 %478 }
 0x13a   : > { %5694 = vst [vmem:[#allocation14_spill] sm:$0xff] %v3707_v42  ;;  %v3791_v49 = vpop.permute.xlu0 %454 }
 0x13d   : > { %v3709_v43 = vpop.permute.xlu1 %502 }
 0x13e   : > { %v3797_v60 = vpop.permute.xlu0 %480 }
 0x13f   : > { %5714 = vst [vmem:[#allocation34_spill] sm:$0xff] %v3797_v60 }
 0x141   : > { %v3711_v44 = vpop.permute.xlu1 %526 }
 0x142   : > { %5695 = vst [vmem:[#allocation15_spill] sm:$0xff] %v3711_v44 }
 0x145   : > { %v3713_v45 = vpop.permute.xlu1 %550 }
 0x149   : > { %v3715_v46 = vpop.permute.xlu1 %574 }
 0x14a   : > { %5696 = vst [vmem:[#allocation16_spill] sm:$0xff] %v3715_v46 }
 0x14d   : > { %v3717_v47 = vpop.permute.xlu1 %598 }
 0x151   : > { %v3719_v51 = vpop.permute.xlu1 %622 }
 0x152   : > { %5697 = vst [vmem:[#allocation17_spill] sm:$0xff] %v3719_v51 }
 0x155   : > { %v3727_v54 = vpop.permute.xlu1 %646 }
 0x162   : > { %v660_v61 = vpop.permute.xlu1 %659 }
 0x163   : > { %v663_v62 = vmul.f32 %v660_v61, %v3590_v26  ;;  %v662_v63 = vmul.f32 %v660_v61, %v3588_v25  ;;  %v664_v2 = vmul.f32 %v660_v61, %v3594_v30 }
 0x165   : > { %670 = vrot.lane.b32.xlu1 %v663_v62, %s3383_s23  ;;  %668 = vrot.lane.b32.xlu0 %v662_v63, %s3383_s23  ;;  %v3802_v62 = vpop.permute.xlu0 %500  ;;  %v3394_v63 = vmov 3  }
 0x169   : > { %3164 = vrot.lane.b32.xlu1 %v3163_v1, %s3387_s30  ;;  %672 = vrot.lane.b32.xlu0 %v664_v2, %s3383_s23 }
 0x16d   : > { %739 = vperm.xlu1 %3174, %v3561_v0   ;;  %3169 = vrot.lane.b32.xlu0 %v3163_v1, %s3388_s6  ;;  %v3804_v1 = vpop.permute.xlu0 %504  ;;  %s3460_s6 = smov 36  }
 0x171   : > { %3175 = vset.pattern.permute.xlu1 %v3389_v3  ;;  %732 = vperm.xlu0 %3173, %v3561_v0   ;;  %v3806_v2 = vpop.permute.xlu0 %524 }
 0x172   : > { %746 = vperm.xlu1 %3175, %v3561_v0   ;;  %5715 = vst [vmem:[#allocation35_spill] sm:$0xff] %v3806_v2 }
 0x175   : > { %3177 = vset.pattern.permute.xlu0 %v3391_v5  ;;  %v3808_v3 = vpop.permute.xlu0 %528 }
 0x176   : > { %3176 = vset.pattern.permute.xlu1 %v5626_v4  ;;  %5716 = vst [vmem:[#allocation36_spill] sm:$0xff] %v3808_v3 }
 0x179   : > { %v3810_v5 = vpop.permute.xlu0 %548 }
 0x1d7   : > { %v3748_v6 = vpop.permute.xlu1 %670 }
 0x1db   : > { %v3750_v7 = vpop.permute.xlu1 %3164 }
 0x1dc   : > { %5700 = vst [vmem:[#allocation20_spill] sm:$0xff] %v3750_v7 }
 0x1e8   : > { %v3752_v8 = vpop.permute.xlu1 %739 }
 0x1e9   : > { %v744_v60 = vmul.f32 %v3752_v8, %v3594_v30 }
 0x1ed   : > { %v747_v9 = vpop.permute.xlu1 %746 }
 0x1ee   : > { %v750_v10 = vmul.f32 %v747_v9, %v3590_v26  ;;  %v749_v11 = vmul.f32 %v747_v9, %v3588_v25  ;;  %v751_v12 = vmul.f32 %v747_v9, %v3594_v30  ;;  %v3812_v9 = vpop.permute.xlu0 %552 }
 0x1f0   : > { %757 = vrot.lane.b32.xlu1 %v750_v10, %s3378_s13  ;;  %755 = vrot.lane.b32.xlu0 %v749_v11, %s3378_s13 }
 0x1f2   : > { %v3814_v10 = vpop.permute.xlu0 %572 }
 0x1f3   : > { %5717 = vst [vmem:[#allocation37_spill] sm:$0xff] %v3814_v10  ;;  %v506_v10 = vsel %vm316_vm3, %v3802_v62, %v3709_v43 }
 0x1f4   : > { %770 = vperm.xlu1 %3176, %v3561_v0   ;;  %759 = vrot.lane.b32.xlu0 %v751_v12, %s3378_s13 }
 0x1f6   : > { %v3816_v11 = vpop.permute.xlu0 %576 }
 0x1f7   : > { %5718 = vst [vmem:[#allocation38_spill] sm:$0xff] %v3816_v11  ;;  %v555_v11 = vsel %vm339_vm4, %v3713_v45, %v3812_v9 }
 0x1f8   : > { %3178 = vset.pattern.permute.xlu1 %v3392_v13  ;;  %777 = vperm.xlu0 %3177, %v3561_v0  }
 0x1f9   : > { %784 = vperm.xlu1 %3178, %v3561_v0  }
 0x1fa   : > { %v3818_v12 = vpop.permute.xlu0 %596 }
 0x1fc   : > { %3179 = vset.pattern.permute.xlu0 %v3393_v14 }
 0x1fd   : > { %3180 = vset.pattern.permute.xlu1 %v3394_v63 }
 0x1fe   : > { %v3820_v13 = vpop.permute.xlu0 %600 }
 0x202   : > { %v3822_v14 = vpop.permute.xlu0 %620 }
 0x203   : > { %5719 = vst [vmem:[#allocation39_spill] sm:$0xff] %v3822_v14 }
 0x262   : > { %v3785_v29 = vpop.permute.xlu1 %757 }
 0x26f   : > { %v3789_v32 = vpop.permute.xlu1 %770 }
 0x270   : > { %5713 = vst [vmem:[#allocation33_spill] sm:$0xff] %v3789_v32 }
 0x274   : > { %v785_v53 = vpop.permute.xlu1 %784 }
 0x275   : > { %v787_v56 = vmul.f32 %v785_v53, %v3588_v25  ;;  %v788_v59 = vmul.f32 %v785_v53, %v3590_v26  ;;  %v789_v61 = vmul.f32 %v785_v53, %v3594_v30  ;;  %v3824_v53 = vpop.permute.xlu0 %624 }
 0x276   : > { %5720 = vst [vmem:[#allocation40_spill] sm:$0xff] %v3824_v53 }
 0x277   : > { %793 = vrot.lane.b32.xlu1 %v787_v56, %s3378_s13  ;;  %795 = vrot.lane.b32.xlu0 %v788_v59, %s3378_s13 }
 0x279   : > { %v3826_v56 = vpop.permute.xlu0 %644 }
 0x27b   : > { %797 = vrot.lane.b32.xlu1 %v789_v61, %s3378_s13  ;;  %808 = vperm.xlu0 %3179, %v3561_v0  }
 0x27d   : > { %v3828_v59 = vpop.permute.xlu0 %648 }
 0x281   : > { %v3830_v61 = vpop.permute.xlu0 %668 }
 0x285   : > { %v3832_v63 = vpop.permute.xlu0 %672 }
 0x289   : > { %v3834_v4 = vpop.permute.xlu0 %3169 }
 0x28a   : > { %v3172_v62 = vunpack.i.h.bf16 %v3834_v4 }
 0x28d   : > { %v3836_v55 = vpop.permute.xlu0 %732 }
 0x291   : > { %v3838_v31 = vpop.permute.xlu0 %755 }
 0x295   : > { %v3840_v28 = vpop.permute.xlu0 %759 }
 0x299   : > { %v3842_v38 = vpop.permute.xlu0 %777 }
 0x29a   : > { %5721 = vst [vmem:[#allocation41_spill] sm:$0xff] %v3842_v38 }
 0x2e9   : > { %v3844_v27 = vpop.permute.xlu0 %795  ;;  %v3853_v20 = vpop.permute.xlu1 %793 }
 0x2ed   : > { %v3855_v19 = vpop.permute.xlu1 %797 }
 0x2f6   : > { %v809_v24 = vpop.permute.xlu0 %808 }
 0x2f7   : > { %v813_v37 = vmul.f32 %v809_v24, %v3594_v30  ;;  %v811_v22 = vmul.f32 %v809_v24, %v3588_v25  ;;  %v812_v21 = vmul.f32 %v809_v24, %v3590_v26 }
 0x2f9   : > { %821 = vrot.lane.b32.xlu0 %v813_v37, %s3379_s14  ;;  %817 = vrot.lane.b32.xlu1 %v811_v22, %s3379_s14 }
 0x2fd   : > { %819 = vrot.lane.b32.xlu1 %v812_v21, %s3379_s14 }
 0x301   : > { %832 = vperm.xlu1 %3180, %v3561_v0  }
 0x305   : > { %3181 = vset.pattern.permute.xlu1 %v3395_v36  ;;  %v3396_v36 = vmov 29  }
 0x36b   : > { %v3857_v35 = vpop.permute.xlu1 %817 }
 0x36f   : > { %v3859_v18 = vpop.permute.xlu1 %819 }
 0x37c   : > { %v833_v17 = vpop.permute.xlu1 %832 }
 0x37d   : > { %v836_v37 = vmul.f32 %v833_v17, %v3590_v26  ;;  %v835_v22 = vmul.f32 %v833_v17, %v3588_v25  ;;  %v837_v21 = vmul.f32 %v833_v17, %v3594_v30  ;;  %v3397_v17 = vmov 66  }
 0x37f   : > { %843 = vrot.lane.b32.xlu1 %v836_v37, %s3378_s13  ;;  %841 = vrot.lane.b32.xlu0 %v835_v22, %s3378_s13 }
 0x383   : > { %856 = vperm.xlu1 %3181, %v3561_v0   ;;  %845 = vrot.lane.b32.xlu0 %v837_v21, %s3378_s13 }
 0x387   : > { %3182 = vset.pattern.permute.xlu1 %v3396_v36 }
 0x3f1   : > { %v3868_v24 = vpop.permute.xlu1 %843 }
 0x3f2   : > { %5722 = vst [vmem:[#allocation42_spill] sm:$0xff] %v3868_v24 }
 0x3fe   : > { %v857_v34 = vpop.permute.xlu1 %856 }
 0x3ff   : > { %v860_v16 = vmul.f32 %v857_v34, %v3590_v26  ;;  %v859_v23 = vmul.f32 %v857_v34, %v3588_v25  ;;  %v861_v37 = vmul.f32 %v857_v34, %v3594_v30  ;;  %v3398_v34 = vmov 6  }
 0x401   : > { %867 = vrot.lane.b32.xlu1 %v860_v16, %s3378_s13  ;;  %865 = vrot.lane.b32.xlu0 %v859_v23, %s3378_s13 }
 0x405   : > { %880 = vperm.xlu1 %3182, %v3561_v0   ;;  %869 = vrot.lane.b32.xlu0 %v861_v37, %s3378_s13 }
 0x409   : > { %3183 = vset.pattern.permute.xlu1 %v3397_v17 }
 0x473   : > { %v3877_v22 = vpop.permute.xlu1 %867 }
 0x474   : > { %5723 = vst [vmem:[#allocation43_spill] sm:$0xff] %v3877_v22 }
 0x480   : > { %v881_v21 = vpop.permute.xlu1 %880 }
 0x481   : > { %v884_v36 = vmul.f32 %v881_v21, %v3590_v26  ;;  %v883_v15 = vmul.f32 %v881_v21, %v3588_v25  ;;  %v885_v23 = vmul.f32 %v881_v21, %v3594_v30  ;;  %v3399_v21 = vmov 15  }
 0x483   : > { %891 = vrot.lane.b32.xlu1 %v884_v36, %s3379_s14  ;;  %889 = vrot.lane.b32.xlu0 %v883_v15, %s3379_s14 }
 0x487   : > { %904 = vperm.xlu1 %3183, %v3561_v0   ;;  %893 = vrot.lane.b32.xlu0 %v885_v23, %s3379_s14 }
 0x48b   : > { %3184 = vset.pattern.permute.xlu1 %v3398_v34 }
 0x4f5   : > { %v3886_v16 = vpop.permute.xlu1 %891 }
 0x502   : > { %v905_v37 = vpop.permute.xlu1 %904 }
 0x503   : > { %v908_v17 = vmul.f32 %v905_v37, %v3590_v26  ;;  %v907_v33 = vmul.f32 %v905_v37, %v3588_v25  ;;  %v909_v15 = vmul.f32 %v905_v37, %v3594_v30  ;;  %v3400_v37 = vmov 34  }
 0x505   : > { %915 = vrot.lane.b32.xlu1 %v908_v17, %s3380_s15  ;;  %913 = vrot.lane.b32.xlu0 %v907_v33, %s3380_s15 }
 0x509   : > { %928 = vperm.xlu1 %3184, %v3561_v0   ;;  %917 = vrot.lane.b32.xlu0 %v909_v15, %s3380_s15 }
 0x50d   : > { %3185 = vset.pattern.permute.xlu1 %v3399_v21 }
 0x577   : > { %v3895_v36 = vpop.permute.xlu1 %915 }
 0x584   : > { %v929_v23 = vpop.permute.xlu1 %928 }
 0x585   : > { %v931_v34 = vmul.f32 %v929_v23, %v3588_v25  ;;  %v932_v53 = vmul.f32 %v929_v23, %v3590_v26  ;;  %v933_v33 = vmul.f32 %v929_v23, %v3594_v30  ;;  %v3401_v23 = vmov 73  }
 0x587   : > { %939 = vrot.lane.b32.xlu1 %v932_v53, %s3379_s14  ;;  %937 = vrot.lane.b32.xlu0 %v931_v34, %s3379_s14 }
 0x58b   : > { %952 = vperm.xlu1 %3185, %v3561_v0   ;;  %941 = vrot.lane.b32.xlu0 %v933_v33, %s3379_s14 }
 0x58f   : > { %3186 = vset.pattern.permute.xlu1 %v3400_v37 }
 0x5f9   : > { %v3904_v17 = vpop.permute.xlu1 %939 }
 0x5fa   : > { %5724 = vst [vmem:[#allocation44_spill] sm:$0xff] %v3904_v17 }
 0x606   : > { %v953_v15 = vpop.permute.xlu1 %952 }
 0x607   : > { %v955_v21 = vmul.f32 %v953_v15, %v3588_v25  ;;  %v956_v7 = vmul.f32 %v953_v15, %v3590_v26  ;;  %v957_v53 = vmul.f32 %v953_v15, %v3594_v30  ;;  %v3402_v15 = vmov 39  }
 0x609   : > { %963 = vrot.lane.b32.xlu1 %v956_v7, %s3379_s14  ;;  %961 = vrot.lane.b32.xlu0 %v955_v21, %s3379_s14 }
 0x60d   : > { %976 = vperm.xlu1 %3186, %v3561_v0   ;;  %965 = vrot.lane.b32.xlu0 %v957_v53, %s3379_s14 }
 0x611   : > { %3187 = vset.pattern.permute.xlu1 %v3401_v23 }
 0x67b   : > { %v3913_v34 = vpop.permute.xlu1 %963 }
 0x67c   : > { %5725 = vst [vmem:[#allocation45_spill] sm:$0xff] %v3913_v34 }
 0x688   : > { %v977_v33 = vpop.permute.xlu1 %976 }
 0x689   : > { %v979_v37 = vmul.f32 %v977_v33, %v3588_v25  ;;  %v980_v14 = vmul.f32 %v977_v33, %v3590_v26  ;;  %v981_v7 = vmul.f32 %v977_v33, %v3594_v30  ;;  %v3403_v33 = vmov 80  }
 0x68b   : > { %987 = vrot.lane.b32.xlu1 %v980_v14, %s3380_s15  ;;  %985 = vrot.lane.b32.xlu0 %v979_v37, %s3380_s15  ;;  %v459_v37 = vsel %vm293_vm2, %v3791_v49, %v3703_v40 }
 0x68f   : > { %1000 = vperm.xlu1 %3187, %v3561_v0   ;;  %989 = vrot.lane.b32.xlu0 %v981_v7, %s3380_s15  ;;  %v433_v7 = vmul.f32 %v3621_v48, %v3590_v26 }
 0x693   : > { %3188 = vset.pattern.permute.xlu1 %v3402_v15  ;;  %v507_v15 = vsel %vm316_vm3, %v3709_v43, %v3804_v1  ;;  %v651_v43 = vsel %vm385_vm6, %v3727_v54, %v3828_v59 }
 0x6fd   : > { %v3922_v21 = vpop.permute.xlu1 %987 }
 0x70a   : > { %v1001_v53 = vpop.permute.xlu1 %1000 }
 0x70b   : > { %v1003_v23 = vmul.f32 %v1001_v53, %v3588_v25  ;;  %v1004_v51 = vmul.f32 %v1001_v53, %v3590_v26  ;;  %v1005_v14 = vmul.f32 %v1001_v53, %v3594_v30 }
 0x70d   : > { %1011 = vrot.lane.b32.xlu1 %v1004_v51, %s3381_s16  ;;  %1009 = vrot.lane.b32.xlu0 %v1003_v23, %s3381_s16  ;;  %v434_v51 = vmul.f32 %v3621_v48, %v3594_v30  ;;  %v458_v23 = vsel %vm293_vm2, %v3701_v39, %v3791_v49  ;;  %v603_v39 = vsel %vm362_vm5, %v3717_v47, %v3820_v13 }
 0x70f   : > { %v465_v53 = vadd.f32 %v3703_v40, %v434_v51 }
 0x711   : > { %1024 = vperm.xlu1 %3188, %v3561_v0   ;;  %1013 = vrot.lane.b32.xlu0 %v1005_v14, %s3381_s16  ;;  %v464_v14 = vadd.f32 %v459_v37, %v433_v7  ;;  %v513_v40 = vadd.f32 %v3804_v1, %v465_v53  ;;  %v3171_v1 = vunpack.i.l.bf16 %v3834_v4 }
 0x713   : > { %v512_v46 = vadd.f32 %v507_v15, %v464_v14  ;;  %v561_v7 = vadd.f32 %v3812_v9, %v513_v40 }
 0x715   : > { %3189 = vset.pattern.permute.xlu1 %v3403_v33  ;;  %v432_v33 = vmul.f32 %v3621_v48, %v3588_v25  ;;  %v554_v48 = vsel %vm339_vm4, %v3810_v5, %v3713_v45  ;;  %v560_v37 = vadd.f32 %v555_v11, %v512_v46  ;;  %v609_v53 = vadd.f32 %v3820_v13, %v561_v7 }
 0x716   : > { %v602_v45 = vsel %vm362_vm5, %v3818_v12, %v3717_v47  ;;  %v675_v46 = vsel %vm408_vm7, %v3748_v6, %v3832_v63  ;;  %v708_v13 = vsel %vm707_vm8, %v3171_v1, %v3172_v62  ;;  %v674_v12 = vsel %vm408_vm7, %v3830_v61, %v3748_v6 }
 0x717   : > { %v463_v51 = vadd.f32 %v458_v23, %v432_v33  ;;  %v608_v15 = vadd.f32 %v603_v39, %v560_v37  ;;  %vm724_vm8 = vcmask 1039360  }
 0x719   : > { %v511_v3 = vadd.f32 %v506_v10, %v463_v51  ;;  %v656_v9 = vadd.f32 %v651_v43, %v608_v15  ;;  %v657_v10 = vadd.f32 %v3828_v59, %v609_v53  ;;  %v5728_v15 = vmov 0.0  }
 0x71a   : > { %v231_v53 = vsel %vm230_vm9, 1.0, %v5728_v15  ;;  %vm1108_vm9 = vcmask 277504  }
 0x71b   : > { %v559_v23 = vadd.f32 %v554_v48, %v511_v3  ;;  %v650_v3 = vsel %vm385_vm6, %v3826_v56, %v3727_v54  ;;  %v680_v33 = vadd.f32 %v675_v46, %v656_v9  ;;  %v681_v47 = vadd.f32 %v3832_v63, %v657_v10  ;;  %v4019_v10 = vpop.permute.xlu0 %821 }
 0x71c   : > { %v3405_v63 = vmov 87  }
 0x71d   : > { %v607_v14 = vadd.f32 %v602_v45, %v559_v23  ;;  %v714_v40 = vmul.f32 %v3172_v62, %v681_v47  ;;  %v713_v51 = vmul.f32 %v708_v13, %v680_v33  ;;  %v1099_v23 = vrot.slane %v231_v53, %v3732_v58 }
 0x71e   : > { %v1103_v45 = vrot.slane %v231_v53, %v3730_v57 }
 0x71f   : > { %v655_v59 = vadd.f32 %v650_v3, %v607_v14 }
 0x721   : > { %v679_v39 = vadd.f32 %v674_v12, %v655_v59 }
 0x723   : > { %v712_v54 = vmul.f32 %v3171_v1, %v679_v39 }
 0x77f   : > { %v3957_v49 = vpop.permute.xlu1 %1011 }
 0x78c   : > { %v1025_v5 = vpop.permute.xlu1 %1024 }
 0x78d   : > { %v1027_v4 = vmul.f32 %v1025_v5, %v3588_v25  ;;  %v1028_v11 = vmul.f32 %v1025_v5, %v3590_v26  ;;  %v1029_v56 = vmul.f32 %v1025_v5, %v3594_v30 }
 0x78f   : > { %1035 = vrot.lane.b32.xlu1 %v1028_v11, %s3381_s16  ;;  %1033 = vrot.lane.b32.xlu0 %v1027_v4, %s3381_s16  ;;  %v4023_v4 = vpop.permute.xlu0 %841 }
 0x790   : > { %5729 = vst [vmem:[#allocation48_spill] sm:$0xff] %v4023_v4 }
 0x793   : > { %722 = vrot.lane.b32.xlu1 %v714_v40, %s3404_s7  ;;  %720 = vrot.lane.b32.xlu0 %v713_v51, %s3404_s7  ;;  %v4026_v11 = vpop.permute.xlu0 %845 }
 0x794   : > { %5730 = vst [vmem:[#allocation49_spill] sm:$0xff] %v4026_v11 }
 0x797   : > { %718 = vrot.lane.b32.xlu1 %v712_v54, %s3404_s7  ;;  %1037 = vrot.lane.b32.xlu0 %v1029_v56, %s3381_s16  ;;  %v4028_v3 = vpop.permute.xlu0 %865 }
 0x798   : > { %5731 = vst [vmem:[#allocation50_spill] sm:$0xff] %v4028_v3 }
 0x79b   : > { %1048 = vperm.xlu1 %3189, %v3561_v0   ;;  %v4030_v13 = vpop.permute.xlu0 %869 }
 0x79c   : > { %5732 = vst [vmem:[#allocation51_spill] sm:$0xff] %v4030_v13 }
 0x79f   : > { %3190 = vset.pattern.permute.xlu1 %v3405_v63  ;;  %v890_v14 = vpop.permute.xlu0 %889 }
 0x7a3   : > { %v894_v33 = vpop.permute.xlu0 %893 }
 0x7a7   : > { %v4032_v47 = vpop.permute.xlu0 %913 }
 0x7ab   : > { %v4034_v12 = vpop.permute.xlu0 %917 }
 0x7af   : > { %v4036_v59 = vpop.permute.xlu0 %937 }
 0x7b0   : > { %5733 = vst [vmem:[#allocation52_spill] sm:$0xff] %v4036_v59 }
 0x7b3   : > { %v4038_v40 = vpop.permute.xlu0 %941 }
 0x7b4   : > { %5734 = vst [vmem:[#allocation53_spill] sm:$0xff] %v4038_v40  ;;  %v3456_v40 = vmov 77  }
 0x7b7   : > { %v4040_v51 = vpop.permute.xlu0 %961 }
 0x7b8   : > { %5735 = vst [vmem:[#allocation54_spill] sm:$0xff] %v4040_v51 }
 0x7bb   : > { %v4042_v39 = vpop.permute.xlu0 %965 }
 0x7bc   : > { %5736 = vst [vmem:[#allocation55_spill] sm:$0xff] %v4042_v39 }
 0x7bf   : > { %v986_v54 = vpop.permute.xlu0 %985 }
 0x7c0   : > { %v991_v2 = vsel %vm339_vm4, %v986_v54, %v3922_v21 }
 0x7c3   : > { %v990_v56 = vpop.permute.xlu0 %989 }
 0x7c4   : > { %v992_v50 = vsel %vm339_vm4, %v3922_v21, %v990_v56 }
 0x7c7   : > { %v4044_v63 = vpop.permute.xlu0 %1009 }
 0x801   : > { %v3993_v6 = vpop.permute.xlu1 %1035 }
 0x805   : > { %v3995_v61 = vpop.permute.xlu1 %722 }
 0x806   : > { %5726 = vst [vmem:[#allocation46_spill] sm:$0xff] %v3995_v61  ;;  %v895_v61 = vsel %vm316_vm3, %v890_v14, %v3886_v16 }
 0x809   : > { %v3997_v48 = vpop.permute.xlu1 %718 }
 0x80a   : > { %5727 = vst [vmem:[#allocation47_spill] sm:$0xff] %v3997_v48 }
 0x816   : > { %v1049_v37 = vpop.permute.xlu1 %1048 }
 0x817   : > { %v1051_v7 = vmul.f32 %v1049_v37, %v3588_v25  ;;  %v1052_v43 = vmul.f32 %v1049_v37, %v3590_v26  ;;  %v1053_v62 = vmul.f32 %v1049_v37, %v3594_v30  ;;  %v4046_v37 = vpop.permute.xlu0 %1013 }
 0x819   : > { %1059 = vrot.lane.b32.xlu1 %v1052_v43, %s3382_s17  ;;  %1057 = vrot.lane.b32.xlu0 %v1051_v7, %s3382_s17 }
 0x81b   : > { %v1034_v7 = vpop.permute.xlu0 %1033 }
 0x81c   : > { %v1039_v14 = vsel %vm362_vm5, %v1034_v7, %v3993_v6 }
 0x81d   : > { %1072 = vperm.xlu1 %3190, %v3561_v0   ;;  %1061 = vrot.lane.b32.xlu0 %v1053_v62, %s3382_s17  ;;  %v4016_v0 = vpack.i.bf16 %v1103_v45, %v1099_v23  ;;  %v799_v45 = vsel %vm293_vm2, %v3853_v20, %v3844_v27 }
 0x81f   : > { %v4048_v43 = vpop.permute.xlu0 %720 }
 0x820   : > { %5737 = vst [vmem:[#allocation56_spill] sm:$0xff] %v4048_v43  ;;  %v896_v43 = vsel %vm316_vm3, %v3886_v16, %v894_v33 }
 0x823   : > { %v1038_v62 = vpop.permute.xlu0 %1037 }
 0x88b   : > { %v4007_v1 = vpop.permute.xlu1 %1059  ;;  %v4050_v53 = vpop.permute.xlu0 %1057 }
 0x88f   : > { %v4052_v23 = vpop.permute.xlu0 %1061 }
 0x898   : > { %v1073_v46 = vpop.permute.xlu1 %1072 }
 0x899   : > { %v1075_v5 = vmul.f32 %v1073_v46, %v3588_v25  ;;  %v1076_v9 = vmul.f32 %v1073_v46, %v3590_v26  ;;  %v1077_v52 = vmul.f32 %v1073_v46, %v3594_v30 }
 0x89b   : > { %1083 = vrot.lane.b32.xlu1 %v1076_v9, %s3383_s23  ;;  %1081 = vrot.lane.b32.xlu0 %v1075_v5, %s3383_s23  ;;  %v742_v5 = vmul.f32 %v3752_v8, %v3588_v25  ;;  %v800_v9 = vsel %vm293_vm2, %v3844_v27, %v3855_v19 }
 0x89d   : > { %v804_v48 = vadd.f32 %v799_v45, %v742_v5  ;;  %v806_v45 = vadd.f32 %v3855_v19, %v744_v60  ;;  %v1040_v5 = vsel %vm362_vm5, %v3993_v6, %v1038_v62  ;;  %v762_v60 = vsel %vm293_vm2, %v3785_v29, %v3840_v28 }
 0x89e   : > { %v823_v6 = vsel %vm316_vm3, %v3857_v35, %v3859_v18  ;;  %v1015_v35 = vsel %vm362_vm5, %v4044_v63, %v3957_v49 }
 0x89f   : > { %3192 = vrot.lane.b32.xlu1 %v4016_v0, %s3406_s8  ;;  %1085 = vrot.lane.b32.xlu0 %v1077_v52, %s3383_s23  ;;  %v743_v52 = vmul.f32 %v3752_v8, %v3590_v26  ;;  %v900_v27 = vadd.f32 %v895_v61, %v804_v48  ;;  %s3466_s8 = smov 20  }
 0x8a1   : > { %v805_v20 = vadd.f32 %v800_v9, %v743_v52  ;;  %v996_v16 = vadd.f32 %v991_v2, %v900_v27  ;;  %v902_v52 = vadd.f32 %v894_v33, %v806_v45  ;;  %v736_v2 = vmul.f32 %v3836_v55, %v3590_v26 }
 0x8a3   : > { %3197 = vrot.lane.b32.xlu0 %v4016_v0, %s3407_s9  ;;  %v901_v41 = vadd.f32 %v896_v43, %v805_v20  ;;  %v1044_v42 = vadd.f32 %v1039_v14, %v996_v16  ;;  %v998_v39 = vadd.f32 %v990_v56, %v902_v52  ;;  %v3408_v20 = vmov 46   ;;  %s3467_s9 = smov 21  }
 0x8a4   : > { %3206 = vset.pattern.permute.xlu0 %v3408_v20  ;;  %v920_v56 = vsel %vm339_vm4, %v3895_v36, %v4034_v12 }
 0x8a5   : > { %v997_v54 = vadd.f32 %v992_v50, %v901_v41  ;;  %v1046_v51 = vadd.f32 %v1038_v62, %v998_v39  ;;  %v3409_v50 = vmov 20   ;;  %v761_v41 = vsel %vm293_vm2, %v3838_v31, %v3785_v29 }
 0x8a6   : > { %3207 = vset.pattern.permute.xlu1 %v3409_v50  ;;  %v767_v31 = vadd.f32 %v762_v60, %v736_v2  ;;  %v737_v29 = vmul.f32 %v3836_v55, %v3594_v30  ;;  %v3414_v50 = vmov 1  }
 0x8a7   : > { %v1045_v48 = vadd.f32 %v1040_v5, %v997_v54 }
 0x90d   : > { %v4057_v46 = vpop.permute.xlu0 %1081  ;;  %v1084_v14 = vpop.permute.xlu1 %1083 }
 0x90e   : > { %v1087_v54 = vsel %vm408_vm7, %v4057_v46, %v1084_v14 }
 0x911   : > { %v4072_v44 = vpop.permute.xlu0 %1085 }
 0x912   : > { %v1088_v52 = vsel %vm408_vm7, %v1084_v14, %v4072_v44 }
 0x915   : > { %v3198_v9 = vpop.permute.xlu0 %3197 }
 0x916   : > { %v3200_v8 = vunpack.i.h.bf16 %v3198_v9  ;;  %v3199_v61 = vunpack.i.l.bf16 %v3198_v9 }
 0x918   : > { %v1124_v21 = vsel %vm1123_vm10, %v3199_v61, %v3200_v8  ;;  %v1128_v43 = vmul.f32 %v3199_v61, %v1044_v42  ;;  %v1130_v19 = vmul.f32 %v3200_v8, %v1046_v51  ;;  %v735_v42 = vmul.f32 %v3836_v55, %v3588_v25 }
 0x919   : > { %v1129_v7 = vmul.f32 %v1124_v21, %v1045_v48  ;;  %v919_v51 = vsel %vm339_vm4, %v4032_v47, %v3895_v36  ;;  %v1016_v47 = vsel %vm362_vm5, %v3957_v49, %v4046_v37  ;;  %v1063_v55 = vsel %vm385_vm6, %v4050_v53, %v4007_v1 }
 0x91a   : > { %1134 = vrot.lane.b32.xlu1 %v1128_v43, %s3404_s7  ;;  %v766_v33 = vadd.f32 %v761_v41, %v735_v42  ;;  %v4146_v41 = vpop.permute.xlu1 %3192  ;;  %vm1169_vm10 = vcmask 1031168  }
 0x91b   : > { %1136 = vrot.lane.b32.xlu0 %v1129_v7, %s3404_s7  ;;  %5739 = vst [vmem:[#allocation58_spill] sm:$0xff] %v4146_v41  ;;  %v3453_v41 = vmov 21  }
 0x91c   : > { %v828_v39 = vadd.f32 %v823_v6, %v766_v33 }
 0x91e   : > { %1138 = vrot.lane.b32.xlu1 %v1130_v19, %s3404_s7  ;;  %v924_v27 = vadd.f32 %v919_v51, %v828_v39  ;;  %v3415_v39 = vmov 25  }
 0x91f   : > { %3202 = vrot.lane.b32.xlu0 %v4016_v0, %s3410_s10  ;;  %v824_v0 = vsel %vm316_vm3, %v3859_v18, %v4019_v10  ;;  %v768_v18 = vadd.f32 %v3840_v28, %v737_v29  ;;  %v1064_v28 = vsel %vm385_vm6, %v4007_v1, %v4052_v23  ;;  %s3475_s10 = smov 122  }
 0x920   : > { %v829_v62 = vadd.f32 %v824_v0, %v767_v31  ;;  %v1020_v5 = vadd.f32 %v1015_v35, %v924_v27 }
 0x921   : > { %v830_v36 = vadd.f32 %v4019_v10, %v768_v18 }
 0x922   : > { %v925_v45 = vadd.f32 %v920_v56, %v829_v62  ;;  %v1068_v9 = vadd.f32 %v1063_v55, %v1020_v5  ;;  %v3416_v56 = vmov 60  }
 0x923   : > { %v926_v49 = vadd.f32 %v4034_v12, %v830_v36 }
 0x924   : > { %v1021_v63 = vadd.f32 %v1016_v47, %v925_v45  ;;  %v1092_v61 = vadd.f32 %v1087_v54, %v1068_v9  ;;  %v3417_v45 = vmov 4  }
 0x925   : > { %v1022_v10 = vadd.f32 %v4046_v37, %v926_v49  ;;  %v4141_v37 = vld [vmem:[%s5622_s2] sm:$0xff] }
 0x926   : > { %v1069_v53 = vadd.f32 %v1064_v28, %v1021_v63 }
 0x927   : > { %v1070_v1 = vadd.f32 %v4052_v23, %v1022_v10  ;;  %v3412_v23 = vmov 53  }
 0x928   : > { %v1093_v43 = vadd.f32 %v1088_v52, %v1069_v53 }
 0x929   : > { %v1094_v12 = vadd.f32 %v4072_v44, %v1070_v1  ;;  %v3413_v44 = vmov 10  }
 0x98c   : > { %v4148_v42 = vpop.permute.xlu1 %1134 }
 0x98d   : > { %v4121_v16 = vpop.permute.xlu0 %1136  ;;  %5740 = vst [vmem:[#allocation59_spill] sm:$0xff] %v4148_v42 }
 0x98e   : > { %5738 = vst [vmem:[#allocation57_spill] sm:$0xff] %v4121_v16 }
 0x990   : > { %v4150_v60 = vpop.permute.xlu1 %1138 }
 0x991   : > { %v3203_v8 = vpop.permute.xlu0 %3202  ;;  %5741 = vst [vmem:[#allocation60_spill] sm:$0xff] %v4150_v60 }
 0x992   : > { %v3205_v48 = vunpack.i.h.bf16 %v3203_v8  ;;  %v3204_v21 = vunpack.i.l.bf16 %v3203_v8  ;;  %v3418_v8 = vmov 13  }
 0x994   : > { %v1153_v20 = vsel %vm1152_vm11, %v3204_v21, %v3205_v48  ;;  %v1157_v7 = vmul.f32 %v3204_v21, %v1092_v61  ;;  %v1159_v19 = vmul.f32 %v3205_v48, %v1094_v12  ;;  %vm2062_vm11 = vcmask 31744  }
 0x995   : > { %v1158_v46 = vmul.f32 %v1153_v20, %v1093_v43 }
 0x996   : > { %1163 = vrot.lane.b32.xlu1 %v1157_v7, %s3411_s11 }
 0x997   : > { %1165 = vrot.lane.b32.xlu0 %v1158_v46, %s3411_s11  ;;  %v3419_v46 = vmov 30  }
 0x99a   : > { %1167 = vrot.lane.b32.xlu1 %v1159_v19, %s3411_s11 }
 0x99b   : > { %1177 = vperm.xlu0 %3206, %v4141_v37  }
 0x99e   : > { %1184 = vperm.xlu1 %3207, %v4141_v37  }
 0x99f   : > { %3210 = vset.pattern.permute.xlu0 %v3413_v44 }
 0x9a2   : > { %3208 = vset.pattern.permute.xlu1 %v3412_v23 }
 0x9a3   : > { %1191 = vperm.xlu1 %3208, %v4141_v37  }
 0x9a7   : > { %3209 = vset.pattern.permute.xlu1 %v3414_v50 }
 0xa08   : > { %v4152_v2 = vpop.permute.xlu1 %1163 }
 0xa09   : > { %5742 = vst [vmem:[#allocation61_spill] sm:$0xff] %v4152_v2  ;;  %v4178_v55 = vpop.permute.xlu0 %1165 }
 0xa0a   : > { %5745 = vst [vmem:[#allocation64_spill] sm:$0xff] %v4178_v55 }
 0xa0c   : > { %v4154_v6 = vpop.permute.xlu1 %1167 }
 0xa0d   : > { %5743 = vst [vmem:[#allocation62_spill] sm:$0xff] %v4154_v6 }
 0xa16   : > { %v4180_v36 = vpop.permute.xlu0 %1177 }
 0xa17   : > { %5746 = vst [vmem:[#allocation65_spill] sm:$0xff] %v4180_v36 }
 0xa19   : > { %v4156_v33 = vpop.permute.xlu1 %1184 }
 0xa1e   : > { %v1192_v0 = vpop.permute.xlu1 %1191 }
 0xa1f   : > { %v1194_v31 = vmul.f32 %v1192_v0, %v3588_v25  ;;  %v1195_v51 = vmul.f32 %v1192_v0, %v3590_v26  ;;  %v1196_v29 = vmul.f32 %v1192_v0, %v3594_v30  ;;  %v3420_v0 = vmov 67  }
 0xa21   : > { %1202 = vrot.lane.b32.xlu1 %v1195_v51, %s3378_s13  ;;  %1200 = vrot.lane.b32.xlu0 %v1194_v31, %s3378_s13 }
 0xa25   : > { %1215 = vperm.xlu1 %3209, %v4141_v37   ;;  %1204 = vrot.lane.b32.xlu0 %v1196_v29, %s3378_s13 }
 0xa29   : > { %3211 = vset.pattern.permute.xlu1 %v3415_v39  ;;  %1222 = vperm.xlu0 %3210, %v4141_v37  }
 0xa2a   : > { %1229 = vperm.xlu1 %3211, %v4141_v37  }
 0xa2d   : > { %3212 = vset.pattern.permute.xlu0 %v3416_v56 }
 0xa2e   : > { %3213 = vset.pattern.permute.xlu1 %v3417_v45 }
 0xa93   : > { %v4167_v62 = vpop.permute.xlu1 %1202  ;;  %v4182_v5 = vpop.permute.xlu0 %1200 }
 0xa94   : > { %5744 = vst [vmem:[#allocation63_spill] sm:$0xff] %v4167_v62  ;;  %5747 = vst [vmem:[#allocation66_spill] sm:$0xff] %v4182_v5 }
 0xa97   : > { %v4184_v28 = vpop.permute.xlu0 %1204 }
 0xa98   : > { %5748 = vst [vmem:[#allocation67_spill] sm:$0xff] %v4184_v28 }
 0xaa0   : > { %v4169_v35 = vpop.permute.xlu1 %1215 }
 0xaa1   : > { %v1219_v24 = vmul.f32 %v4169_v35, %v3590_v26 }
 0xaa4   : > { %v4186_v63 = vpop.permute.xlu0 %1222 }
 0xaa5   : > { %v1230_v18 = vpop.permute.xlu1 %1229 }
 0xaa6   : > { %v1232_v27 = vmul.f32 %v1230_v18, %v3588_v25  ;;  %v1233_v47 = vmul.f32 %v1230_v18, %v3590_v26  ;;  %v1234_v14 = vmul.f32 %v1230_v18, %v3594_v30  ;;  %v3421_v18 = vmov 7  }
 0xaa8   : > { %1238 = vrot.lane.b32.xlu1 %v1232_v27, %s3378_s13  ;;  %1240 = vrot.lane.b32.xlu0 %v1233_v47, %s3378_s13 }
 0xaac   : > { %1242 = vrot.lane.b32.xlu1 %v1234_v14, %s3378_s13  ;;  %1253 = vperm.xlu0 %3212, %v4141_v37  }
 0xb1a   : > { %v4188_v54 = vpop.permute.xlu0 %1240  ;;  %v4197_v10 = vpop.permute.xlu1 %1238 }
 0xb1e   : > { %v4199_v61 = vpop.permute.xlu1 %1242 }
 0xb27   : > { %v1254_v49 = vpop.permute.xlu0 %1253 }
 0xb28   : > { %v1256_v9 = vmul.f32 %v1254_v49, %v3588_v25  ;;  %v1258_v52 = vmul.f32 %v1254_v49, %v3594_v30  ;;  %v1257_v53 = vmul.f32 %v1254_v49, %v3590_v26 }
 0xb2a   : > { %1266 = vrot.lane.b32.xlu0 %v1258_v52, %s3379_s14  ;;  %1262 = vrot.lane.b32.xlu1 %v1256_v9, %s3379_s14  ;;  %v3422_v9 = vmov 16  }
 0xb2e   : > { %1264 = vrot.lane.b32.xlu1 %v1257_v53, %s3379_s14 }
 0xb32   : > { %1277 = vperm.xlu1 %3213, %v4141_v37  }
 0xb36   : > { %3214 = vset.pattern.permute.xlu1 %v3418_v8 }
 0xb9c   : > { %v4201_v48 = vpop.permute.xlu1 %1262 }
 0xb9d   : > { %5749 = vst [vmem:[#allocation68_spill] sm:$0xff] %v4201_v48 }
 0xba0   : > { %v4203_v21 = vpop.permute.xlu1 %1264 }
 0xba1   : > { %5750 = vst [vmem:[#allocation69_spill] sm:$0xff] %v4203_v21 }
 0xbad   : > { %v1278_v43 = vpop.permute.xlu1 %1277 }
 0xbae   : > { %v1280_v1 = vmul.f32 %v1278_v43, %v3588_v25  ;;  %v1281_v20 = vmul.f32 %v1278_v43, %v3590_v26  ;;  %v1282_v7 = vmul.f32 %v1278_v43, %v3594_v30 }
 0xbb0   : > { %1288 = vrot.lane.b32.xlu1 %v1281_v20, %s3378_s13  ;;  %1286 = vrot.lane.b32.xlu0 %v1280_v1, %s3378_s13  ;;  %v3423_v20 = vmov 35  }
 0xbb4   : > { %1301 = vperm.xlu1 %3214, %v4141_v37   ;;  %1290 = vrot.lane.b32.xlu0 %v1282_v7, %s3378_s13 }
 0xbb8   : > { %3215 = vset.pattern.permute.xlu1 %v3419_v46 }
 0xc22   : > { %v4212_v12 = vpop.permute.xlu1 %1288 }
 0xc2f   : > { %v1302_v19 = vpop.permute.xlu1 %1301 }
 0xc30   : > { %v1304_v23 = vmul.f32 %v1302_v19, %v3588_v25  ;;  %v1305_v44 = vmul.f32 %v1302_v19, %v3590_v26  ;;  %v1306_v50 = vmul.f32 %v1302_v19, %v3594_v30 }
 0xc32   : > { %1312 = vrot.lane.b32.xlu1 %v1305_v44, %s3378_s13  ;;  %1310 = vrot.lane.b32.xlu0 %v1304_v23, %s3378_s13 }
 0xc36   : > { %1325 = vperm.xlu1 %3215, %v4141_v37   ;;  %1314 = vrot.lane.b32.xlu0 %v1306_v50, %s3378_s13  ;;  %v3424_v50 = vmov 74  }
 0xc3a   : > { %3216 = vset.pattern.permute.xlu1 %v3420_v0 }
 0xca4   : > { %v4221_v31 = vpop.permute.xlu1 %1312 }
 0xcb1   : > { %v1326_v51 = vpop.permute.xlu1 %1325 }
 0xcb2   : > { %v1328_v29 = vmul.f32 %v1326_v51, %v3588_v25  ;;  %v1329_v39 = vmul.f32 %v1326_v51, %v3590_v26  ;;  %v1330_v56 = vmul.f32 %v1326_v51, %v3594_v30 }
 0xcb4   : > { %1336 = vrot.lane.b32.xlu1 %v1329_v39, %s3379_s14  ;;  %1334 = vrot.lane.b32.xlu0 %v1328_v29, %s3379_s14 }
 0xcb8   : > { %1349 = vperm.xlu1 %3216, %v4141_v37   ;;  %1338 = vrot.lane.b32.xlu0 %v1330_v56, %s3379_s14 }
 0xcbc   : > { %3217 = vset.pattern.permute.xlu1 %v3421_v18  ;;  %v3425_v18 = vmov 40  }
 0xd26   : > { %v4230_v27 = vpop.permute.xlu1 %1336 }
 0xd33   : > { %v1350_v47 = vpop.permute.xlu1 %1349 }
 0xd34   : > { %v1352_v14 = vmul.f32 %v1350_v47, %v3588_v25  ;;  %v1353_v45 = vmul.f32 %v1350_v47, %v3590_v26  ;;  %v1354_v49 = vmul.f32 %v1350_v47, %v3594_v30 }
 0xd36   : > { %1360 = vrot.lane.b32.xlu1 %v1353_v45, %s3380_s15  ;;  %1358 = vrot.lane.b32.xlu0 %v1352_v14, %s3380_s15 }
 0xd3a   : > { %1373 = vperm.xlu1 %3217, %v4141_v37   ;;  %1362 = vrot.lane.b32.xlu0 %v1354_v49, %s3380_s15 }
 0xd3e   : > { %3218 = vset.pattern.permute.xlu1 %v3422_v9 }
 0xda8   : > { %v4239_v52 = vpop.permute.xlu1 %1360 }
 0xda9   : > { %5751 = vst [vmem:[#allocation70_spill] sm:$0xff] %v4239_v52  ;;  %v3458_v52 = vmov 90  }
 0xdb5   : > { %v1374_v53 = vpop.permute.xlu1 %1373 }
 0xdb6   : > { %v1376_v8 = vmul.f32 %v1374_v53, %v3588_v25  ;;  %v1377_v43 = vmul.f32 %v1374_v53, %v3590_v26  ;;  %v1378_v1 = vmul.f32 %v1374_v53, %v3594_v30  ;;  %v3426_v53 = vmov 26  }
 0xdb7   : > { %3223 = vset.pattern.permute.xlu0 %v3426_v53  ;;  %v3441_v53 = vmov 37  }
 0xdb8   : > { %1384 = vrot.lane.b32.xlu1 %v1377_v43, %s3379_s14  ;;  %1382 = vrot.lane.b32.xlu0 %v1376_v8, %s3379_s14  ;;  %v3427_v8 = vmov 5   ;;  %v3428_v43 = vmov 14  }
 0xdbc   : > { %1397 = vperm.xlu1 %3218, %v4141_v37   ;;  %1386 = vrot.lane.b32.xlu0 %v1378_v1, %s3379_s14  ;;  %v3429_v1 = vmov 8  }
 0xdc0   : > { %3219 = vset.pattern.permute.xlu1 %v3423_v20  ;;  %v3430_v20 = vmov 17  }
 0xe2a   : > { %v4248_v7 = vpop.permute.xlu1 %1384 }
 0xe37   : > { %v1398_v46 = vpop.permute.xlu1 %1397 }
 0xe38   : > { %v1400_v19 = vmul.f32 %v1398_v46, %v3588_v25  ;;  %v1401_v23 = vmul.f32 %v1398_v46, %v3590_v26  ;;  %v1402_v44 = vmul.f32 %v1398_v46, %v3594_v30  ;;  %v3431_v46 = vmov 27  }
 0xe3a   : > { %1408 = vrot.lane.b32.xlu1 %v1401_v23, %s3379_s14  ;;  %1406 = vrot.lane.b32.xlu0 %v1400_v19, %s3379_s14  ;;  %v3432_v19 = vmov 32   ;;  %v3433_v23 = vmov 41  }
 0xe3e   : > { %1421 = vperm.xlu1 %3219, %v4141_v37   ;;  %1410 = vrot.lane.b32.xlu0 %v1402_v44, %s3379_s14  ;;  %v3434_v44 = vmov 42  }
 0xe42   : > { %3220 = vset.pattern.permute.xlu1 %v3424_v50  ;;  %v3435_v50 = vmov 81  }
 0xeac   : > { %v4257_v0 = vpop.permute.xlu1 %1408 }
 0xeb9   : > { %v1422_v51 = vpop.permute.xlu1 %1421 }
 0xeba   : > { %v1424_v29 = vmul.f32 %v1422_v51, %v3588_v25  ;;  %v1425_v39 = vmul.f32 %v1422_v51, %v3590_v26  ;;  %v1426_v56 = vmul.f32 %v1422_v51, %v3594_v30 }
 0xebc   : > { %1432 = vrot.lane.b32.xlu1 %v1425_v39, %s3380_s15  ;;  %1430 = vrot.lane.b32.xlu0 %v1424_v29, %s3380_s15 }
 0xec0   : > { %1445 = vperm.xlu1 %3220, %v4141_v37   ;;  %1434 = vrot.lane.b32.xlu0 %v1426_v56, %s3380_s15 }
 0xec4   : > { %3221 = vset.pattern.permute.xlu1 %v3425_v18  ;;  %v3436_v18 = vmov 54  }
 0xf2e   : > { %v4266_v47 = vpop.permute.xlu1 %1432 }
 0xf3b   : > { %v1446_v14 = vpop.permute.xlu1 %1445 }
 0xf3c   : > { %v1448_v45 = vmul.f32 %v1446_v14, %v3588_v25  ;;  %v1449_v49 = vmul.f32 %v1446_v14, %v3590_v26  ;;  %v1450_v9 = vmul.f32 %v1446_v14, %v3594_v30  ;;  %v3437_v14 = vmov 31  }
 0xf3e   : > { %1456 = vrot.lane.b32.xlu1 %v1449_v49, %s3381_s16  ;;  %1454 = vrot.lane.b32.xlu0 %v1448_v45, %s3381_s16  ;;  %v3438_v45 = vmov 61   ;;  %v3439_v49 = vmov 36  }
 0xf42   : > { %1469 = vperm.xlu1 %3221, %v4141_v37   ;;  %1458 = vrot.lane.b32.xlu0 %v1450_v9, %s3381_s16  ;;  %v3440_v9 = vmov 55  }
 0xf46   : > { %3222 = vset.pattern.permute.xlu1 %v3427_v8 }
 0xf47   : > { %1708 = vperm.xlu1 %3222, %v4141_v37  }
 0xf4b   : > { %3224 = vset.pattern.permute.xlu1 %v3428_v43  ;;  %v3442_v43 = vmov 11  }
 0xf4c   : > { %1732 = vperm.xlu1 %3224, %v4141_v37  }
 0xf50   : > { %3225 = vset.pattern.permute.xlu1 %v3429_v1  ;;  %v3443_v1 = vmov 2  }
 0xf51   : > { %1804 = vperm.xlu1 %3225, %v4141_v37  }
 0xf55   : > { %3227 = vset.pattern.permute.xlu1 %v3430_v20  ;;  %v3444_v20 = vmov 68  }
 0xf56   : > { %1828 = vperm.xlu1 %3227, %v4141_v37  }
 0xf5a   : > { %3228 = vset.pattern.permute.xlu1 %v3431_v46  ;;  %v3445_v46 = vmov 56  }
 0xf5b   : > { %2125 = vperm.xlu1 %3228, %v4141_v37  }
 0xf5f   : > { %3230 = vset.pattern.permute.xlu1 %v3432_v19  ;;  %v3446_v19 = vmov 75  }
 0xf60   : > { %2173 = vperm.xlu1 %3230, %v4141_v37  }
 0xf64   : > { %3231 = vset.pattern.permute.xlu1 %v3433_v23  ;;  %v4302_v23 = vpop.permute.xlu0 %1266 }
 0xf65   : > { %1900 = vperm.xlu1 %3231, %v4141_v37   ;;  %5753 = vst [vmem:[#allocation72_spill] sm:$0xff] %v4302_v23 }
 0xf69   : > { %3233 = vset.pattern.permute.xlu1 %v3434_v44  ;;  %v4305_v44 = vpop.permute.xlu0 %1286 }
 0xf6a   : > { %2269 = vperm.xlu1 %3233, %v4141_v37  }
 0xf6e   : > { %3234 = vset.pattern.permute.xlu1 %v3435_v50  ;;  %v3447_v50 = vmov 69  }
 0xfb0   : > { %v4283_v51 = vpop.permute.xlu1 %1456 }
 0xfb1   : > { %5752 = vst [vmem:[#allocation71_spill] sm:$0xff] %v4283_v51 }
 0xfbd   : > { %v1470_v29 = vpop.permute.xlu1 %1469 }
 0xfbe   : > { %v1472_v39 = vmul.f32 %v1470_v29, %v3588_v25  ;;  %v1473_v56 = vmul.f32 %v1470_v29, %v3590_v26  ;;  %v1474_v8 = vmul.f32 %v1470_v29, %v3594_v30 }
 0xfc0   : > { %1480 = vrot.lane.b32.xlu1 %v1473_v56, %s3381_s16  ;;  %1478 = vrot.lane.b32.xlu0 %v1472_v39, %s3381_s16  ;;  %v3448_v39 = vmov 63   ;;  %v4310_v56 = vpop.permute.xlu0 %1290 }
 0xfc2   : > { %v4308_v29 = vpop.permute.xlu1 %1708 }
 0xfc4   : > { %1493 = vperm.xlu1 %3234, %v4141_v37   ;;  %1660 = vperm.xlu0 %3223, %v4141_v37  }
 0xfc8   : > { %3235 = vset.pattern.permute.xlu1 %v3436_v18  ;;  %3226 = vset.pattern.permute.xlu0 %v3437_v14  ;;  %v1712_v18 = vmul.f32 %v4308_v29, %v3590_v26  ;;  %v4315_v14 = vpop.permute.xlu0 %1310 }
 0xfc9   : > { %1622 = vperm.xlu1 %3235, %v4141_v37   ;;  %1756 = vperm.xlu0 %3226, %v4141_v37  }
 0xfcd   : > { %3237 = vset.pattern.permute.xlu1 %v3438_v45  ;;  %3229 = vset.pattern.permute.xlu0 %v3439_v49  ;;  %v3449_v45 = vmov 82   ;;  %v4319_v49 = vpop.permute.xlu0 %1314 }
 0xfce   : > { %1684 = vperm.xlu1 %3237, %v4141_v37   ;;  %1852 = vperm.xlu0 %3229, %v4141_v37  }
 0xfd2   : > { %3238 = vset.pattern.permute.xlu1 %v3440_v9  ;;  %3232 = vset.pattern.permute.xlu0 %v3441_v53  ;;  %v3450_v9 = vmov 70   ;;  %v4322_v53 = vpop.permute.xlu0 %1334 }
 0xfd3   : > { %2101 = vperm.xlu1 %3238, %v4141_v37   ;;  %2221 = vperm.xlu0 %3232, %v4141_v37  }
 0xfd7   : > { %3240 = vset.pattern.permute.xlu1 %v3442_v43  ;;  %1482 = vrot.lane.b32.xlu0 %v1474_v8, %s3381_s16  ;;  %v3451_v8 = vmov 88   ;;  %v4325_v43 = vpop.permute.xlu0 %1338 }
 0xfd8   : > { %1653 = vperm.xlu1 %3240, %v4141_v37   ;;  %3236 = vset.pattern.permute.xlu0 %v3443_v1  ;;  %v3452_v1 = vmov 89  }
 0xfdc   : > { %3241 = vset.pattern.permute.xlu1 %v3444_v20  ;;  %v4327_v20 = vpop.permute.xlu0 %1358 }
 0xfdd   : > { %1780 = vperm.xlu1 %3241, %v4141_v37   ;;  %5754 = vst [vmem:[#allocation73_spill] sm:$0xff] %v4327_v20 }
 0xfe1   : > { %3243 = vset.pattern.permute.xlu1 %v3445_v46  ;;  %v4329_v46 = vpop.permute.xlu0 %1362 }
 0xfe2   : > { %2414 = vperm.xlu1 %3243, %v4141_v37   ;;  %5755 = vst [vmem:[#allocation74_spill] sm:$0xff] %v4329_v46 }
 0xfe6   : > { %3244 = vset.pattern.permute.xlu1 %v3446_v19  ;;  %v4331_v19 = vpop.permute.xlu0 %1382 }
 0xfe7   : > { %1876 = vperm.xlu1 %3244, %v4141_v37  }
 0xfeb   : > { %3246 = vset.pattern.permute.xlu1 %v3447_v50  ;;  %v4333_v50 = vpop.permute.xlu1 %1732 }
 0xfec   : > { %2197 = vperm.xlu1 %3246, %v4141_v37  }
 0xff0   : > { %3247 = vset.pattern.permute.xlu1 %v3448_v39  ;;  %v4335_v39 = vpop.permute.xlu0 %1386 }
 0xff1   : > { %2438 = vperm.xlu1 %3247, %v4141_v37  }
 0xff5   : > { %1719 = vrot.lane.b32.xlu1 %v1712_v18, %s3378_s13  ;;  %v4337_v18 = vpop.permute.xlu1 %1804 }
 0xff6   : > { %3248 = vset.pattern.permute.xlu1 %v3449_v45  ;;  %v4339_v45 = vpop.permute.xlu0 %1406 }
 0xff9   : > { %1924 = vperm.xlu1 %3248, %v4141_v37  }
 0xffd   : > { %3250 = vset.pattern.permute.xlu1 %v3450_v9  ;;  %v4341_v9 = vpop.permute.xlu1 %1828 }
 0xffe   : > { %2462 = vperm.xlu1 %3250, %v4141_v37  }
0x1001   : > { %v4345_v6 = vpop.permute.xlu1 %2125 }
0x1002   : > { %3251 = vset.pattern.permute.xlu1 %v3451_v8  ;;  %v4343_v8 = vpop.permute.xlu0 %1410 }
0x1003   : > { %1517 = vperm.xlu1 %3251, %v4141_v37  }
0x1005   : > { %v4349_v2 = vpop.permute.xlu1 %2173 }
0x1007   : > { %3252 = vset.pattern.permute.xlu1 %v3452_v1  ;;  %v4347_v1 = vpop.permute.xlu0 %1430 }
0x1009   : > { %v4355_v42 = vpop.permute.xlu1 %1900 }
0x100b   : > { %v4351_v55 = vpop.permute.xlu0 %1434 }
0x100d   : > { %v4359_v34 = vpop.permute.xlu1 %2269 }
0x100f   : > { %v4353_v60 = vpop.permute.xlu0 %1454 }
0x1010   : > { %5756 = vst [vmem:[#allocation75_spill] sm:$0xff] %v4353_v60  ;;  %v1737_v60 = vmul.f32 %v4333_v50, %v3594_v30 }
0x1013   : > { %v4357_v16 = vpop.permute.xlu0 %1458 }
0x1014   : > { %5757 = vst [vmem:[#allocation76_spill] sm:$0xff] %v4357_v16  ;;  %v1735_v16 = vmul.f32 %v4333_v50, %v3588_v25 }
0x1032   : > { %v4361_v13 = vpop.permute.xlu1 %1480  ;;  %v4363_v38 = vpop.permute.xlu0 %1478 }
0x103f   : > { %v4365_v3 = vpop.permute.xlu1 %1493  ;;  %v1661_v22 = vpop.permute.xlu0 %1660 }
0x1040   : > { %v1496_v46 = vmul.f32 %v4365_v3, %v3588_v25  ;;  %v1664_v51 = vmul.f32 %v1661_v22, %v3590_v26 }
0x1042   : > { %1502 = vrot.lane.b32.xlu0 %v1496_v46, %s3382_s17  ;;  %1671 = vrot.lane.b32.xlu1 %v1664_v51, %s3378_s13  ;;  %v1808_v46 = vmul.f32 %v4337_v18, %v3590_v26  ;;  %v3454_v51 = vmov 62  }
0x1046   : > { %1646 = vperm.xlu0 %3236, %v4141_v37   ;;  %1741 = vrot.lane.b32.xlu1 %v1735_v16, %s3378_s13  ;;  %v3455_v16 = vmov 22  }
0x104a   : > { %3239 = vset.pattern.permute.xlu0 %v3453_v41  ;;  %1745 = vrot.lane.b32.xlu1 %v1737_v60, %s3378_s13  ;;  %v1757_v41 = vpop.permute.xlu0 %1756  ;;  %v1711_v60 = vmul.f32 %v4308_v29, %v3588_v25 }
0x104b   : > { %1615 = vperm.xlu0 %3239, %v4141_v37  }
0x104e   : > { %1815 = vrot.lane.b32.xlu1 %v1808_v46, %s3379_s14  ;;  %v1759_v46 = vmul.f32 %v1757_v41, %v3588_v25 }
0x104f   : > { %3242 = vset.pattern.permute.xlu0 %v3454_v51  ;;  %v4394_v51 = vld [vmem:[%s5621_s1] sm:$0x3] }
0x1050   : > { %2149 = vperm.xlu0 %3242, %v4141_v37   ;;  %5758 = vst [vmem:[#allocation77_spill] sm:$0xff] %v4394_v51  ;;  %vm232_vm12 = vcmp.lt.s32.totalorder %v4394_v51, 15  ;;  %vm234_vm13 = vcmp.lt.s32.totalorder %v4394_v51, 14 }
0x1051   : > { %v233_v20 = vsel %vm232_vm12, 1.0, %v5728_v15  ;;  %vm695_vm12 = vcmask 138240  }
0x1052   : > { %1948 = vperm.xlu1 %3252, %v4141_v37   ;;  %v1975_v23 = vrot.slane %v233_v20, %v3732_v58  ;;  %v1979_v48 = vrot.slane %v233_v20, %v3730_v57  ;;  %v2129_v20 = vmul.f32 %v4345_v6, %v3590_v26 }
0x1054   : > { %3245 = vset.pattern.permute.xlu0 %v3455_v16  ;;  %v3457_v16 = vmov 76  }
0x1055   : > { %2094 = vperm.xlu0 %3245, %v4141_v37  }
0x1056   : > { %3254 = vset.pattern.permute.xlu1 %v3456_v40  ;;  %v1713_v40 = vmul.f32 %v4308_v29, %v3594_v30  ;;  %v1663_v29 = vmul.f32 %v1661_v22, %v3588_v25 }
0x1057   : > { %2486 = vperm.xlu1 %3254, %v4141_v37  }
0x1059   : > { %1717 = vrot.lane.b32.xlu0 %v1711_v60, %s3378_s13  ;;  %v1761_v60 = vmul.f32 %v1757_v41, %v3594_v30 }
0x105a   : > { %3249 = vset.pattern.permute.xlu0 %v3457_v16  ;;  %v1832_v16 = vmul.f32 %v4341_v9, %v3590_v26 }
0x105b   : > { %1765 = vrot.lane.b32.xlu1 %v1759_v46, %s3379_s14  ;;  %v3459_v46 = vmov 83  }
0x105c   : > { %3260 = vset.pattern.permute.xlu1 %v3458_v52  ;;  %v4411_v52 = vpack.i.bf16 %v1979_v48, %v1975_v23  ;;  %v1853_v48 = vpop.permute.xlu0 %1852 }
0x105d   : > { %1721 = vrot.lane.b32.xlu0 %v1713_v40, %s3378_s13  ;;  %v1665_v40 = vmul.f32 %v1661_v22, %v3594_v30  ;;  %v1807_v22 = vmul.f32 %v4337_v18, %v3588_v25 }
0x105f   : > { %1769 = vrot.lane.b32.xlu1 %v1761_v60, %s3379_s14  ;;  %v1736_v60 = vmul.f32 %v4333_v50, %v3590_v26  ;;  %v1809_v50 = vmul.f32 %v4337_v18, %v3594_v30  ;;  %v2178_v18 = vmul.f32 %v4349_v2, %v3594_v30 }
0x1061   : > { %2245 = vperm.xlu0 %3249, %v4141_v37  }
0x1063   : > { %1839 = vrot.lane.b32.xlu1 %v1832_v16, %s3379_s14  ;;  %v4421_v16 = vpop.permute.xlu1 %1622 }
0x1065   : > { %1669 = vrot.lane.b32.xlu0 %v1663_v29, %s3378_s13  ;;  %v1855_v29 = vmul.f32 %v1853_v48, %v3588_v25 }
0x1066   : > { %3253 = vset.pattern.permute.xlu0 %v3459_v46  ;;  %v3461_v46 = vmov 47  }
0x1067   : > { %3256 = vrot.lane.b32.xlu1 %v4411_v52, %s3460_s6  ;;  %v4428_v23 = vpop.permute.xlu1 %1684 }
0x1069   : > { %1673 = vrot.lane.b32.xlu0 %v1665_v40, %s3378_s13  ;;  %v1856_v40 = vmul.f32 %v1853_v48, %v3590_v26 }
0x106b   : > { %2136 = vrot.lane.b32.xlu1 %v2129_v20, %s3378_s13  ;;  %v4437_v20 = vpop.permute.xlu1 %2101 }
0x106c   : > { %v2104_v5 = vmul.f32 %v4437_v20, %v3588_v25 }
0x106d   : > { %1743 = vrot.lane.b32.xlu0 %v1736_v60, %s3378_s13  ;;  %v2176_v60 = vmul.f32 %v4349_v2, %v3588_v25 }
0x106f   : > { %2317 = vperm.xlu1 %3260, %v4141_v37  }
0x1071   : > { %1813 = vrot.lane.b32.xlu0 %v1807_v22, %s3379_s14  ;;  %v1760_v22 = vmul.f32 %v1757_v41, %v3590_v26  ;;  %v1833_v41 = vmul.f32 %v4341_v9, %v3594_v30 }
0x1073   : > { %1861 = vrot.lane.b32.xlu1 %v1855_v29, %s3380_s15  ;;  %v4447_v29 = vpop.permute.xlu1 %1653 }
0x1074   : > { %3273 = vset.pattern.permute.xlu1 %v3461_v46  ;;  %v1831_v46 = vmul.f32 %v4341_v9, %v3588_v25  ;;  %v2130_v9 = vmul.f32 %v4345_v6, %v3594_v30 }
0x1075   : > { %1817 = vrot.lane.b32.xlu0 %v1809_v50, %s3379_s14  ;;  %v3462_v50 = vmov 84  }
0x1077   : > { %1863 = vrot.lane.b32.xlu1 %v1856_v40, %s3380_s15  ;;  %v1903_v40 = vmul.f32 %v4355_v42, %v3588_v25 }
0x1079   : > { %2293 = vperm.xlu0 %3253, %v4141_v37  }
0x107b   : > { %2182 = vrot.lane.b32.xlu1 %v2176_v60, %s3379_s14  ;;  %v4458_v60 = vpop.permute.xlu1 %1780 }
0x107d   : > { %1767 = vrot.lane.b32.xlu0 %v1760_v22, %s3379_s14  ;;  %v1904_v22 = vmul.f32 %v4355_v42, %v3590_v26 }
0x107e   : > { %3261 = vset.pattern.permute.xlu0 %v3462_v50  ;;  %v2222_v50 = vpop.permute.xlu0 %2221 }
0x107f   : > { %2186 = vrot.lane.b32.xlu1 %v2178_v18, %s3379_s14  ;;  %v2128_v18 = vmul.f32 %v4345_v6, %v3588_v25  ;;  %v4468_v21 = vpop.permute.xlu1 %2414  ;;  %v2274_v6 = vmul.f32 %v4359_v34, %v3594_v30 }
0x1081   : > { %1837 = vrot.lane.b32.xlu0 %v1831_v46, %s3379_s14  ;;  %v2224_v46 = vmul.f32 %v2222_v50, %v3588_v25 }
0x1083   : > { %1909 = vrot.lane.b32.xlu1 %v1903_v40, %s3381_s16  ;;  %v2226_v40 = vmul.f32 %v2222_v50, %v3594_v30 }
0x1085   : > { %1841 = vrot.lane.b32.xlu0 %v1833_v41, %s3379_s14  ;;  %v4476_v41 = vpop.permute.xlu1 %1876 }
0x1087   : > { %1911 = vrot.lane.b32.xlu1 %v1904_v22, %s3381_s16  ;;  %v2272_v22 = vmul.f32 %v4359_v34, %v3588_v25 }
0x1089   : > { %2134 = vrot.lane.b32.xlu0 %v2128_v18, %s3378_s13  ;;  %v1857_v18 = vmul.f32 %v1853_v48, %v3594_v30  ;;  %v1905_v48 = vmul.f32 %v4355_v42, %v3594_v30  ;;  %v5759_v42 = vmov 0  }
0x108b   : > { %2230 = vrot.lane.b32.xlu1 %v2224_v46, %s3380_s15  ;;  %v4486_v46 = vpop.permute.xlu1 %2197 }
0x108d   : > { %2138 = vrot.lane.b32.xlu0 %v2130_v9, %s3378_s13  ;;  %v3463_v9 = vmov 91  }
0x108f   : > { %2234 = vrot.lane.b32.xlu1 %v2226_v40, %s3380_s15  ;;  %v2177_v40 = vmul.f32 %v4349_v2, %v3590_v26  ;;  %v4493_v28 = vpop.permute.xlu1 %2438  ;;  %v1625_v2 = vmul.f32 %v4421_v16, %v3588_v25 }
0x1091   : > { %2510 = vperm.xlu0 %3261, %v4141_v37  }
0x1093   : > { %2278 = vrot.lane.b32.xlu1 %v2272_v22, %s3381_s16  ;;  %v3464_v22 = vmov 49  }
0x1095   : > { %1865 = vrot.lane.b32.xlu0 %v1857_v18, %s3380_s15  ;;  %v4500_v18 = vpop.permute.xlu1 %1719 }
0x1096   : > { %3262 = vset.pattern.permute.xlu0 %v3463_v9  ;;  %v2225_v9 = vmul.f32 %v2222_v50, %v3590_v26 }
0x1097   : > { %2282 = vrot.lane.b32.xlu1 %v2274_v6, %s3381_s16  ;;  %v3465_v6 = vmov 48  }
0x1099   : > { %2184 = vrot.lane.b32.xlu0 %v2177_v40, %s3379_s14  ;;  %v1627_v40 = vmul.f32 %v4421_v16, %v3594_v30 }
0x109b   : > { %1608 = vperm.xlu1 %3273, %v4141_v37  }
0x109d   : > { %2534 = vperm.xlu0 %3262, %v4141_v37  }
0x109f   : > { %3275 = vset.pattern.permute.xlu1 %v3464_v22  ;;  %v4513_v22 = vpop.permute.xlu1 %1924 }
0x10a0   : > { %2407 = vperm.xlu1 %3275, %v4141_v37  }
0x10a1   : > { %1913 = vrot.lane.b32.xlu0 %v1905_v48, %s3381_s16  ;;  %v235_v48 = vsel %vm234_vm13, 1.0, %v5728_v15  ;;  %vm2382_vm13 = vcmask 39936  }
0x10a2   : > { %3274 = vset.pattern.permute.xlu0 %v3465_v6  ;;  %v2344_v50 = vrot.slane %v235_v48, %v3732_v58  ;;  %v1688_v6 = vmul.f32 %v4428_v23, %v3590_v26 }
0x10a3   : > { %v4524_v36 = vpop.permute.xlu1 %2462 }
0x10a4   : > { %1631 = vrot.lane.b32.xlu1 %v1625_v2, %s3378_s13  ;;  %v2348_v2 = vrot.slane %v235_v48, %v3730_v57  ;;  %v2106_v48 = vmul.f32 %v4437_v20, %v3594_v30  ;;  %v2419_v57 = vmul.f32 %v4468_v21, %v3594_v30 }
0x10a5   : > { %2232 = vrot.lane.b32.xlu0 %v2225_v9, %s3380_s15  ;;  %3291 = vset.pattern.permute.xlu1 %v5759_v42  ;;  %v2273_v9 = vmul.f32 %v4359_v34, %v3590_v26 }
0x10a7   : > { %v4535_v34 = vpop.permute.xlu1 %1517 }
0x10a8   : > { %1635 = vrot.lane.b32.xlu1 %v1627_v40, %s3378_s13  ;;  %v4527_v40 = vpack.i.bf16 %v2348_v2, %v2344_v50  ;;  %v1784_v50 = vmul.f32 %v4458_v60, %v3590_v26  ;;  %v1626_v2 = vmul.f32 %v4421_v16, %v3590_v26  ;;  %v1689_v16 = vmul.f32 %v4428_v23, %v3594_v30 }
0x10a9   : > { %3264 = vrot.lane.b32.xlu0 %v4411_v52, %s3466_s8 }
0x10aa   : > { %5760 = vst [vmem:[#allocation78_spill] sm:$0xff] %v4527_v40 }
0x10ac   : > { %1695 = vrot.lane.b32.xlu1 %v1688_v6, %s3379_s14 }
0x10ad   : > { %2280 = vrot.lane.b32.xlu0 %v2273_v9, %s3381_s16  ;;  %v1687_v9 = vmul.f32 %v4428_v23, %v3588_v25  ;;  %v1785_v23 = vmul.f32 %v4458_v60, %v3594_v30 }
0x10b0   : > { %2110 = vrot.lane.b32.xlu1 %v2104_v5, %s3378_s13  ;;  %v4545_v5 = vpop.permute.xlu0 %1482 }
0x10b1   : > { %3269 = vrot.lane.b32.xlu0 %v4527_v40, %s3467_s9  ;;  %v1498_v40 = vmul.f32 %v4365_v3, %v3594_v30  ;;  %s215_s9 = sand.u32 1, %s3348_s19  }
0x10b4   : > { %2114 = vrot.lane.b32.xlu1 %v2106_v48, %s3378_s13  ;;  %v4543_v6 = vpop.permute.xlu1 %1671 }
0x10b5   : > { %2087 = vperm.xlu0 %3274, %v4141_v37   ;;  %v4552_v37 = vpop.permute.xlu0 %1502 }
0x10b6   : > { %5761 = vst [vmem:[#allocation79_spill] sm:$0xff] %v4552_v37  ;;  %v1783_v37 = vmul.f32 %v4458_v60, %v3588_v25  ;;  %v1292_v60 = vsel %vm293_vm2, %v4305_v44, %v4212_v12  ;;  %v1293_v44 = vsel %vm293_vm2, %v4212_v12, %v4310_v56 }
0x10b7   : > { %v1298_v12 = vadd.f32 %v1293_v44, %v1219_v24  ;;  %v1880_v24 = vmul.f32 %v4476_v41, %v3590_v26  ;;  %v2201_v44 = vmul.f32 %v4486_v46, %v3590_v26 }
0x10b8   : > { %1791 = vrot.lane.b32.xlu1 %v1784_v50, %s3380_s15  ;;  %v4554_v48 = vpop.permute.xlu1 %1741  ;;  %v2105_v50 = vmul.f32 %v4437_v20, %v3590_v26 }
0x10b9   : > { %1633 = vrot.lane.b32.xlu0 %v1626_v2, %s3378_s13 }
0x10ba   : > { %3292 = vset.pattern.permute.xlu0 %v5759_v42 }
0x10bc   : > { %v4564_v2 = vpop.permute.xlu1 %1745 }
0x10bd   : > { %1693 = vrot.lane.b32.xlu0 %v1687_v9, %s3379_s14 }
0x10c0   : > { %v4571_v9 = vpop.permute.xlu1 %1815 }
0x10c1   : > { %v4559_v62 = vpop.permute.xlu0 %1646  ;;  %1697 = vrot.lane.b32.xlu0 %v1689_v16, %s3379_s14 }
0x10c5   : > { %2112 = vrot.lane.b32.xlu0 %v2105_v50, %s3378_s13 }
0x10c6   : > { %v4567_v42 = vpop.permute.xlu0 %1615 }
0x10c9   : > { %1789 = vrot.lane.b32.xlu0 %v1783_v37, %s3380_s15 }
0x10cb   : > { %v2150_v16 = vpop.permute.xlu0 %2149 }
0x10cc   : > { %v2152_v59 = vmul.f32 %v2150_v16, %v3588_v25  ;;  %v2153_v50 = vmul.f32 %v2150_v16, %v3590_v26  ;;  %v2154_v17 = vmul.f32 %v2150_v16, %v3594_v30  ;;  %v2418_v16 = vmul.f32 %v4468_v21, %v3590_v26 }
0x10cd   : > { %v4577_v20 = vpop.permute.xlu1 %1948  ;;  %1793 = vrot.lane.b32.xlu0 %v1785_v23, %s3380_s15  ;;  %v2417_v23 = vmul.f32 %v4468_v21, %v3588_v25 }
0x10ce   : > { %2158 = vrot.lane.b32.xlu1 %v2152_v59, %s3379_s14  ;;  %v1218_v59 = vmul.f32 %v4169_v35, %v3588_v25 }
0x10d0   : > { %v4583_v11 = vpop.permute.xlu0 %2094 }
0x10d1   : > { %2160 = vrot.lane.b32.xlu0 %v2153_v50, %s3379_s14  ;;  %v1388_v50 = vsel %vm316_vm3, %v4331_v19, %v4248_v7  ;;  %v1220_v19 = vmul.f32 %v4169_v35, %v3594_v30 }
0x10d2   : > { %v4586_v37 = vpop.permute.xlu1 %2486  ;;  %2162 = vrot.lane.b32.xlu1 %v2154_v17, %s3379_s14  ;;  %v1297_v17 = vadd.f32 %v1292_v60, %v1218_v59  ;;  %v1389_v60 = vsel %vm316_vm3, %v4248_v7, %v4335_v39 }
0x10d3   : > { %v1299_v59 = vadd.f32 %v4310_v56, %v1220_v19  ;;  %v1394_v21 = vadd.f32 %v1389_v60, %v1298_v12  ;;  %v1881_v56 = vmul.f32 %v4476_v41, %v3594_v30  ;;  %v2202_v19 = vmul.f32 %v4486_v46, %v3594_v30 }
0x10d4   : > { %v4598_v32 = vpop.permute.xlu0 %1717  ;;  %v1393_v58 = vadd.f32 %v1388_v50, %v1297_v17  ;;  %v2441_v12 = vmul.f32 %v4493_v28, %v3588_v25 }
0x10d5   : > { %2423 = vrot.lane.b32.xlu0 %v2417_v23, %s3378_s13  ;;  %v1395_v15 = vadd.f32 %v4335_v39, %v1299_v59  ;;  %v2442_v59 = vmul.f32 %v4493_v28, %v3590_v26 }
0x10d6   : > { %v4607_v4 = vpop.permute.xlu1 %1765  ;;  %2425 = vrot.lane.b32.xlu1 %v2418_v16, %s3378_s13 }
0x10d8   : > { %v4619_v23 = vpop.permute.xlu0 %1721 }
0x10d9   : > { %2427 = vrot.lane.b32.xlu0 %v2419_v57, %s3378_s13  ;;  %v1879_v57 = vmul.f32 %v4476_v41, %v3588_v25  ;;  %s3468_s13 = smov 4  }
0x10da   : > { %v4623_v16 = vpop.permute.xlu1 %1769  ;;  %1543 = vrot.lane.b32.xlu1 %v1393_v58, %s3404_s7 }
0x10dc   : > { %v4627_v35 = vpop.permute.xlu0 %2245 }
0x10dd   : > { %1545 = vrot.lane.b32.xlu0 %v1394_v21, %s3404_s7 }
0x10de   : > { %v4630_v50 = vpop.permute.xlu1 %1839  ;;  %1547 = vrot.lane.b32.xlu1 %v1395_v15, %s3404_s7  ;;  %v2200_v15 = vmul.f32 %v4486_v46, %v3588_v25  ;;  %v1316_v46 = vsel %vm293_vm2, %v4315_v14, %v4221_v31  ;;  %v1317_v14 = vsel %vm293_vm2, %v4221_v31, %v4319_v49 }
0x10e0   : > { %v4637_v7 = vpop.permute.xlu0 %1669 }
0x10e1   : > { %1885 = vrot.lane.b32.xlu0 %v1879_v57, %s3381_s16 }
0x10e2   : > { %v4640_v58 = vpop.permute.xlu1 %3256  ;;  %1887 = vrot.lane.b32.xlu1 %v1880_v24, %s3381_s16  ;;  %v2443_v24 = vmul.f32 %v4493_v28, %v3594_v30  ;;  %v1226_v28 = vmul.f32 %v4186_v63, %v3590_v26 }
0x10e4   : > { %v4647_v39 = vpop.permute.xlu0 %1673  ;;  %v1322_v31 = vadd.f32 %v1317_v14, %v1226_v28  ;;  %v1651_v28 = vmul.f32 %v4559_v62, %v3594_v30 }
0x10e5   : > { %1889 = vrot.lane.b32.xlu0 %v1881_v56, %s3381_s16  ;;  %v1225_v56 = vmul.f32 %v4186_v63, %v3588_v25 }
0x10e6   : > { %v4650_v17 = vpop.permute.xlu1 %2136  ;;  %2206 = vrot.lane.b32.xlu1 %v2200_v15, %s3380_s15  ;;  %v1497_v15 = vmul.f32 %v4365_v3, %v3590_v26 }
0x10e8   : > { %v4657_v60 = vpop.permute.xlu0 %1743 }
0x10e9   : > { %2208 = vrot.lane.b32.xlu0 %v2201_v44, %s3380_s15 }
0x10ea   : > { %v4660_v41 = vpop.permute.xlu1 %2317  ;;  %2210 = vrot.lane.b32.xlu1 %v2202_v19, %s3380_s15  ;;  %v1412_v19 = vsel %vm316_vm3, %v4339_v45, %v4257_v0  ;;  %v1227_v45 = vmul.f32 %v4186_v63, %v3594_v30  ;;  %v1723_v63 = vsel %vm293_vm2, %v4598_v32, %v4500_v18  ;;  %v1927_v32 = vmul.f32 %v4513_v22, %v3588_v25 }
0x10ec   : > { %v1814_v21 = vpop.permute.xlu0 %1813 }
0x10ed   : > { %2447 = vrot.lane.b32.xlu0 %v2441_v12, %s3379_s14  ;;  %v1321_v12 = vadd.f32 %v1316_v46, %v1225_v56  ;;  %v1413_v46 = vsel %vm316_vm3, %v4257_v0, %v4343_v8  ;;  %v1323_v56 = vadd.f32 %v4319_v49, %v1227_v45  ;;  %v1649_v0 = vmul.f32 %v4559_v62, %v3588_v25 }
0x10ee   : > { %v4668_v57 = vpop.permute.xlu1 %1861  ;;  %2449 = vrot.lane.b32.xlu1 %v2442_v59, %s3379_s14  ;;  %v1418_v3 = vadd.f32 %v1413_v46, %v1322_v31 }
0x10ef   : > { %v1417_v51 = vadd.f32 %v1412_v19, %v1321_v12  ;;  %v1419_v19 = vadd.f32 %v4343_v8, %v1323_v56  ;;  %v1728_v49 = vadd.f32 %v1723_v63, %v1649_v0  ;;  %v1650_v8 = vmul.f32 %v4559_v62, %v3590_v26 }
0x10f0   : > { %v1818_v44 = vpop.permute.xlu0 %1817  ;;  %v1730_v56 = vadd.f32 %v4619_v23, %v1651_v28  ;;  %v4739_v63 = vunpack.i.l.bf16 %v4640_v58  ;;  %v1929_v62 = vmul.f32 %v4513_v22, %v3594_v30 }
0x10f1   : > { %2451 = vrot.lane.b32.xlu0 %v2443_v24, %s3379_s14  ;;  %s3469_s14 = smov 125  }
0x10f2   : > { %v4687_v59 = vpop.permute.xlu1 %1863  ;;  %1504 = vrot.lane.b32.xlu1 %v1497_v15, %s3382_s17 }
0x10f4   : > { %v4699_v24 = vpop.permute.xlu0 %2293 }
0x10f5   : > { %1506 = vrot.lane.b32.xlu0 %v1498_v40, %s3382_s17  ;;  %v1819_v40 = vsel %vm316_vm3, %v1814_v21, %v4571_v9  ;;  %v1928_v21 = vmul.f32 %v4513_v22, %v3590_v26 }
0x10f6   : > { %v4703_v15 = vpop.permute.xlu1 %2182  ;;  %1560 = vrot.lane.b32.xlu1 %v1417_v51, %s3404_s7  ;;  %v1724_v51 = vsel %vm293_vm2, %v4500_v18, %v4619_v23  ;;  %v1824_v45 = vadd.f32 %v1819_v40, %v1728_v49  ;;  %v1820_v18 = vsel %vm316_vm3, %v4571_v9, %v1818_v44  ;;  %v1826_v40 = vadd.f32 %v1818_v44, %v1730_v56 }
0x10f7   : > { %v1729_v31 = vadd.f32 %v1724_v51, %v1650_v8  ;;  %v2248_v44 = vmul.f32 %v4627_v35, %v3588_v25 }
0x10f8   : > { %v4712_v12 = vpop.permute.xlu0 %1767  ;;  %v1989_v0 = vmul.f32 %v4739_v63, %v1824_v45 }
0x10f9   : > { %1562 = vrot.lane.b32.xlu0 %v1418_v3, %s3404_s7  ;;  %v4736_v3 = vunpack.i.h.bf16 %v4640_v58  ;;  %v1825_v9 = vadd.f32 %v1820_v18, %v1729_v31  ;;  %v2250_v18 = vmul.f32 %v4627_v35, %v3594_v30  ;;  %v2465_v31 = vmul.f32 %v4524_v36, %v3588_v25 }
0x10fa   : > { %v4720_v14 = vpop.permute.xlu1 %2186  ;;  %1564 = vrot.lane.b32.xlu1 %v1419_v19, %s3404_s7  ;;  %s3474_s7 = smov 123  }
0x10fb   : > { %v1985_v23 = vsel %vm1984_vm14, %v4739_v63, %v4736_v3  ;;  %vm1600_vm14 = vcmask 1022976  }
0x10fc   : > { %v1838_v46 = vpop.permute.xlu0 %1837  ;;  %v1990_v51 = vmul.f32 %v1985_v23, %v1825_v9  ;;  %v2466_v9 = vmul.f32 %v4524_v36, %v3590_v26 }
0x10fd   : > { %1933 = vrot.lane.b32.xlu0 %v1927_v32, %s3382_s17  ;;  %v1991_v32 = vmul.f32 %v4736_v3, %v1826_v40 }
0x10fe   : > { %v4741_v19 = vpop.permute.xlu1 %1909  ;;  %1935 = vrot.lane.b32.xlu1 %v1928_v21, %s3382_s17  ;;  %v2249_v21 = vmul.f32 %v4627_v35, %v3590_v26 }
0x1100   : > { %v1842_v49 = vpop.permute.xlu0 %1841 }
0x1101   : > { %1937 = vrot.lane.b32.xlu0 %v1929_v62, %s3382_s17 }
0x1102   : > { %v4750_v58 = vpop.permute.xlu1 %1911  ;;  %1995 = vrot.lane.b32.xlu1 %v1989_v0, %s3411_s11  ;;  %v2467_v0 = vmul.f32 %v4524_v36, %v3594_v30  ;;  %v1747_v36 = vsel %vm293_vm2, %v4554_v48, %v4657_v60  ;;  %v1951_v48 = vmul.f32 %v4577_v20, %v3588_v25 }
0x1104   : > { %v4754_v8 = vpop.permute.xlu0 %2134 }
0x1105   : > { %1997 = vrot.lane.b32.xlu0 %v1990_v51, %s3411_s11  ;;  %v1520_v51 = vmul.f32 %v4535_v34, %v3588_v25 }
0x1106   : > { %v4757_v22 = vpop.permute.xlu1 %2230  ;;  %1999 = vrot.lane.b32.xlu1 %v1991_v32, %s3411_s11  ;;  %v1521_v32 = vmul.f32 %v4535_v34, %v3590_v26 }
0x1107   : > { %5762 = vst [vmem:[#allocation80_spill] sm:$0xff] %v4757_v22 }
0x1108   : > { %v4764_v28 = vpop.permute.xlu0 %2138 }
0x1109   : > { %2254 = vrot.lane.b32.xlu0 %v2248_v44, %s3381_s16 }
0x110a   : > { %v4767_v45 = vpop.permute.xlu1 %2234  ;;  %2256 = vrot.lane.b32.xlu1 %v2249_v21, %s3381_s16 }
0x110b   : > { %5763 = vst [vmem:[#allocation81_spill] sm:$0xff] %v4767_v45 }
0x110c   : > { %v4774_v56 = vpop.permute.xlu0 %2510 }
0x110d   : > { %2258 = vrot.lane.b32.xlu0 %v2250_v18, %s3381_s16  ;;  %v1656_v18 = vmul.f32 %v4447_v29, %v3588_v25 }
0x110e   : > { %v4777_v62 = vpop.permute.xlu1 %2278  ;;  %2471 = vrot.lane.b32.xlu1 %v2465_v31, %s3380_s15  ;;  %v1522_v31 = vmul.f32 %v4535_v34, %v3594_v30 }
0x110f   : > { %5764 = vst [vmem:[#allocation82_spill] sm:$0xff] %v4777_v62  ;;  %v1952_v62 = vmul.f32 %v4577_v20, %v3590_v26 }
0x1110   : > { %v4784_v40 = vpop.permute.xlu0 %1865 }
0x1111   : > { %2473 = vrot.lane.b32.xlu0 %v2466_v9, %s3380_s15  ;;  %v1748_v9 = vsel %vm293_vm2, %v4657_v60, %v4564_v2  ;;  %v1658_v60 = vmul.f32 %v4447_v29, %v3594_v30 }
0x1112   : > { %v4787_v35 = vpop.permute.xlu1 %2282  ;;  %2475 = vrot.lane.b32.xlu1 %v2467_v0, %s3380_s15  ;;  %v1657_v0 = vmul.f32 %v4447_v29, %v3590_v26  ;;  %s3470_s15 = smov 5  }
0x1113   : > { %5765 = vst [vmem:[#allocation83_spill] sm:$0xff] %v4787_v35  ;;  %v1844_v35 = vsel %vm316_vm3, %v4630_v50, %v1842_v49 }
0x1114   : > { %v4794_v44 = vpop.permute.xlu0 %2184  ;;  %v1753_v34 = vadd.f32 %v1748_v9, %v1657_v0 }
0x1115   : > { %1526 = vrot.lane.b32.xlu0 %v1520_v51, %s3383_s23  ;;  %v1843_v51 = vsel %vm316_vm3, %v1838_v46, %v4630_v50  ;;  %v1953_v46 = vmul.f32 %v4577_v20, %v3594_v30  ;;  %v1754_v50 = vadd.f32 %v4564_v2, %v1658_v60  ;;  %v2296_v2 = vmul.f32 %v4699_v24, %v3588_v25 }
0x1116   : > { %v4800_v21 = vpop.permute.xlu1 %1608  ;;  %1528 = vrot.lane.b32.xlu1 %v1521_v32, %s3383_s23  ;;  %v1436_v60 = vsel %vm339_vm4, %v4347_v1, %v4266_v47  ;;  %v1484_v1 = vsel %vm362_vm5, %v4363_v38, %v4361_v13  ;;  %v1485_v38 = vsel %vm362_vm5, %v4361_v13, %v4545_v5  ;;  %v1675_v13 = vsel %vm293_vm2, %v4637_v7, %v4543_v6 }
0x1117   : > { %5766 = vst [vmem:[#allocation84_spill] sm:$0xff] %v4800_v21  ;;  %v1752_v21 = vadd.f32 %v1747_v36, %v1656_v18  ;;  %v1849_v36 = vadd.f32 %v1844_v35, %v1753_v34  ;;  %v1676_v7 = vsel %vm293_vm2, %v4543_v6, %v4647_v39 }
0x1118   : > { %v4816_v32 = vpop.permute.xlu0 %2534 }
0x1119   : > { %1530 = vrot.lane.b32.xlu0 %v1522_v31, %s3383_s23  ;;  %v1848_v45 = vadd.f32 %v1843_v51, %v1752_v21  ;;  %v1850_v31 = vadd.f32 %v1842_v49, %v1754_v50  ;;  %v2010_v21 = vmul.f32 %v1985_v23, %v1849_v36  ;;  %v2297_v49 = vmul.f32 %v4699_v24, %v3590_v26 }
0x111a   : > { %1957 = vrot.lane.b32.xlu1 %v1951_v48, %s3383_s23  ;;  %v2298_v23 = vmul.f32 %v4699_v24, %v3594_v30  ;;  %v1340_v48 = vsel %vm316_vm3, %v4322_v53, %v4230_v27  ;;  %v1188_v24 = vmul.f32 %v4156_v33, %v3590_v26  ;;  %v2489_v53 = vmul.f32 %v4586_v37, %v3588_v25 }
0x111b   : > { %v4826_v22 = vpop.permute.xlu1 %2407  ;;  %v2009_v29 = vmul.f32 %v4739_v63, %v1848_v45  ;;  %v2011_v20 = vmul.f32 %v4736_v3, %v1850_v31  ;;  %v1244_v63 = vsel %vm293_vm2, %v4197_v10, %v4188_v54  ;;  %v1187_v3 = vmul.f32 %v4156_v33, %v3588_v25 }
0x111c   : > { %v4830_v18 = vpop.permute.xlu0 %1913  ;;  %v1245_v10 = vsel %vm293_vm2, %v4188_v54, %v4199_v61  ;;  %v1341_v54 = vsel %vm316_vm3, %v4230_v27, %v4325_v43  ;;  %v2490_v50 = vmul.f32 %v4586_v37, %v3590_v26 }
0x111d   : > { %1959 = vrot.lane.b32.xlu0 %v1952_v62, %s3383_s23  ;;  %v1249_v51 = vadd.f32 %v1244_v63, %v1187_v3  ;;  %v1250_v31 = vadd.f32 %v1245_v10, %v1188_v24  ;;  %v2320_v10 = vmul.f32 %v4660_v41, %v3588_v25 }
0x111e   : > { %1961 = vrot.lane.b32.xlu1 %v1953_v46, %s3383_s23  ;;  %v1189_v46 = vmul.f32 %v4156_v33, %v3594_v30 }
0x111f   : > { %v4836_v9 = vpop.permute.xlu1 %1631  ;;  %v1345_v36 = vadd.f32 %v1340_v48, %v1249_v51  ;;  %v1346_v27 = vadd.f32 %v1341_v54, %v1250_v31  ;;  %v2322_v54 = vmul.f32 %v4660_v41, %v3594_v30 }
0x1120   : > { %v4838_v0 = vpop.permute.xlu0 %2232 }
0x1121   : > { %2015 = vrot.lane.b32.xlu0 %v2009_v29, %s3411_s11  ;;  %v1441_v33 = vadd.f32 %v1436_v60, %v1345_v36  ;;  %v1619_v36 = vmul.f32 %v4567_v42, %v3590_v26 }
0x1122   : > { %2017 = vrot.lane.b32.xlu1 %v2010_v21, %s3411_s11  ;;  %v1251_v21 = vadd.f32 %v4199_v61, %v1189_v46 }
0x1123   : > { %v4845_v62 = vpop.permute.xlu1 %1635  ;;  %v1681_v31 = vadd.f32 %v1676_v7, %v1619_v36 }
0x1124   : > { %v4847_v35 = vpop.permute.xlu0 %3264  ;;  %v1347_v63 = vadd.f32 %v4325_v43, %v1251_v21  ;;  %v1772_v21 = vsel %vm316_vm3, %v4712_v12, %v4623_v16 }
0x1125   : > { %2019 = vrot.lane.b32.xlu0 %v2011_v20, %s3411_s11  ;;  %v1437_v20 = vsel %vm339_vm4, %v4266_v47, %v4351_v55 }
0x1126   : > { %2302 = vrot.lane.b32.xlu1 %v2296_v2, %s3382_s17  ;;  %v2491_v2 = vmul.f32 %v4586_v37, %v3594_v30  ;;  %v1443_v47 = vadd.f32 %v4351_v55, %v1347_v63  ;;  %v1618_v55 = vmul.f32 %v4567_v42, %v3588_v25 }
0x1127   : > { %v4869_v34 = vpop.permute.xlu1 %1695 }
0x1128   : > { %v4860_v45 = vpop.permute.xlu0 %2280  ;;  %v1491_v37 = vadd.f32 %v4545_v5, %v1443_v47  ;;  %v1771_v5 = vsel %vm316_vm3, %v4607_v4, %v4712_v12  ;;  %v1680_v60 = vadd.f32 %v1675_v13, %v1618_v55  ;;  %v1620_v4 = vmul.f32 %v4567_v42, %v3594_v30 }
0x1129   : > { %2304 = vrot.lane.b32.xlu0 %v2297_v49, %s3382_s17  ;;  %v1489_v49 = vadd.f32 %v1484_v1, %v1441_v33  ;;  %v1867_v1 = vsel %vm339_vm4, %v4668_v57, %v4687_v59  ;;  %v2513_v33 = vmul.f32 %v4774_v56, %v3588_v25  ;;  %v2514_v57 = vmul.f32 %v4774_v56, %v3590_v26 }
0x112a   : > { %2306 = vrot.lane.b32.xlu1 %v2298_v23, %s3382_s17  ;;  %v1442_v23 = vadd.f32 %v1437_v20, %v1346_v27  ;;  %v1776_v46 = vadd.f32 %v1771_v5, %v1680_v60  ;;  %v1682_v6 = vadd.f32 %v4647_v39, %v1620_v4  ;;  %v1868_v12 = vsel %vm339_vm4, %v4687_v59, %v4784_v40 }
0x112b   : > { %v4903_v3 = vpop.permute.xlu1 %2110  ;;  %v3267_v20 = vunpack.i.h.bf16 %v4847_v35  ;;  %v3266_v27 = vunpack.i.l.bf16 %v4847_v35  ;;  %v2515_v59 = vmul.f32 %v4774_v56, %v3594_v30 }
0x112c   : > { %v4886_v29 = vpop.permute.xlu0 %3269  ;;  %v1490_v48 = vadd.f32 %v1485_v38, %v1442_v23  ;;  %v1872_v42 = vadd.f32 %v1867_v1, %v1776_v46  ;;  %v1778_v38 = vadd.f32 %v4623_v16, %v1682_v6  ;;  %v1916_v23 = vsel %vm362_vm5, %v4750_v58, %v4830_v18 }
0x112d   : > { %2495 = vrot.lane.b32.xlu0 %v2489_v53, %s3381_s16  ;;  %v2321_v53 = vmul.f32 %v4660_v41, %v3590_v26  ;;  %v1915_v41 = vsel %vm362_vm5, %v4741_v19, %v4750_v58  ;;  %v1777_v19 = vadd.f32 %v1772_v21, %v1681_v31  ;;  %v2140_v58 = vsel %vm293_vm2, %v4754_v8, %v4650_v17 }
0x112e   : > { %2497 = vrot.lane.b32.xlu1 %v2490_v50, %s3381_s16  ;;  %v2141_v46 = vsel %vm293_vm2, %v4650_v17, %v4764_v28  ;;  %v2188_v8 = vsel %vm316_vm3, %v4703_v15, %v4794_v44  ;;  %v2099_v31 = vmul.f32 %v4583_v11, %v3594_v30  ;;  %v5767_v15 = vld [vmem:[#allocation77_spill] sm:$0xff] }
0x112f   : > { %v4917_v51 = vpop.permute.xlu1 %2114  ;;  %v1873_v35 = vadd.f32 %v1868_v12, %v1777_v19  ;;  %vm236_vm1 = vcmp.lt.s32.totalorder %v5767_v15, 13 }
0x1130   : > { %v4905_v61 = vpop.permute.xlu0 %2087 }
0x1131   : > { %2499 = vrot.lane.b32.xlu0 %v2491_v2, %s3381_s16  ;;  %v2092_v39 = vmul.f32 %v4905_v61, %v3594_v30  ;;  %v1921_v5 = vadd.f32 %v1916_v23, %v1873_v35  ;;  %v2091_v17 = vmul.f32 %v4905_v61, %v3590_v26  ;;  %s3471_s16 = smov 124  }
0x1132   : > { %1577 = vrot.lane.b32.xlu1 %v1489_v49, %s3411_s11  ;;  %v1920_v49 = vadd.f32 %v1915_v41, %v1872_v42  ;;  %v5768_v41 = vld [vmem:[#allocation80_spill] sm:$0xff] }
0x1133   : > { %v2123_v47 = vadd.f32 %v4917_v51, %v2092_v39  ;;  %v5769_v39 = vld [vmem:[#allocation81_spill] sm:$0xff] }
0x1134   : > { %v4911_v43 = vpop.permute.xlu0 %1633  ;;  %v2038_v13 = vmul.f32 %v3266_v27, %v1920_v49 }
0x1135   : > { %1579 = vrot.lane.b32.xlu0 %v1490_v48, %s3411_s11  ;;  %v1874_v48 = vadd.f32 %v4784_v40, %v1778_v38  ;;  %v2097_v40 = vmul.f32 %v4583_v11, %v3588_v25  ;;  %v5770_v38 = vld [vmem:[#allocation78_spill] sm:$0xff] }
0x1136   : > { %1581 = vrot.lane.b32.xlu1 %v1491_v37, %s3411_s11  ;;  %v2034_v37 = vsel %vm2033_vm15, %v3266_v27, %v3267_v20  ;;  %v3272_v27 = vunpack.i.h.bf16 %v4886_v29  ;;  %vm2570_vm15 = vcmask 48128   ;;  %s3476_s11 = smov 111  }
0x1137   : > { %v1922_v56 = vadd.f32 %v4830_v18, %v1874_v48  ;;  %v2039_v7 = vmul.f32 %v2034_v37, %v1921_v5  ;;  %v2538_v48 = vmul.f32 %v4816_v32, %v3590_v26 }
0x1138   : > { %v4927_v24 = vpop.permute.xlu0 %1693 }
0x1139   : > { %3277 = vrot.lane.b32.xlu0 %v4411_v52, %s3468_s13  ;;  %v1792_v52 = vpop.permute.xlu1 %1791  ;;  %v2040_v36 = vmul.f32 %v3267_v20, %v1922_v56  ;;  %s2960_s13 = sshll.u32 %s215_s9, 5 }
0x113a   : > { %2326 = vrot.lane.b32.xlu1 %v2320_v10, %s3383_s23 }
0x113c   : > { %v4942_v50 = vpop.permute.xlu0 %1697 }
0x113d   : > { %2328 = vrot.lane.b32.xlu0 %v2321_v53, %s3383_s23  ;;  %v2098_v53 = vmul.f32 %v4583_v11, %v3590_v26  ;;  %v2147_v11 = vadd.f32 %v4764_v28, %v2099_v31 }
0x113e   : > { %2330 = vrot.lane.b32.xlu1 %v2322_v54, %s3383_s23  ;;  %v2145_v54 = vadd.f32 %v2140_v58, %v2097_v40 }
0x113f   : > { %v2146_v21 = vadd.f32 %v2141_v46, %v2098_v53  ;;  %v5774_v46 = vld [vmem:[#allocation19_spill] sm:$0xff] }
0x1140   : > { %v2159_v2 = vpop.permute.xlu1 %2158  ;;  %v4967_v63 = vpop.permute.xlu0 %2112  ;;  %v2193_v42 = vadd.f32 %v2188_v8, %v2145_v54 }
0x1141   : > { %2519 = vrot.lane.b32.xlu0 %v2513_v33, %s3382_s17  ;;  %v2117_v6 = vsel %vm293_vm2, %v4967_v63, %v4917_v51  ;;  %v2189_v51 = vsel %vm316_vm3, %v4794_v44, %v4720_v14  ;;  %v2236_v33 = vsel %vm339_vm4, %v5768_v41, %v4838_v0  ;;  %v3271_v44 = vunpack.i.l.bf16 %v4886_v29 }
0x1142   : > { %2521 = vrot.lane.b32.xlu1 %v2514_v57, %s3382_s17  ;;  %v2237_v57 = vsel %vm339_vm4, %v4838_v0, %v5769_v39  ;;  %v2122_v12 = vadd.f32 %v2117_v6, %v2091_v17  ;;  %v2194_v23 = vadd.f32 %v2189_v51, %v2146_v21  ;;  %v2241_v37 = vadd.f32 %v2236_v33, %v2193_v42  ;;  %v5776_v51 = vld [vmem:[#allocation84_spill] sm:$0xff] }
0x1143   : > { %v1637_v21 = vsel %vm293_vm2, %v4836_v9, %v4911_v43  ;;  %v1611_v42 = vmul.f32 %v5776_v51, %v3588_v25  ;;  %v1699_v33 = vsel %vm316_vm3, %v4927_v24, %v4869_v34  ;;  %v1613_v9 = vmul.f32 %v5776_v51, %v3594_v30 }
0x1144   : > { %v2163_v55 = vpop.permute.xlu1 %2162  ;;  %v1790_v10 = vpop.permute.xlu0 %1789  ;;  %v2242_v5 = vadd.f32 %v2237_v57, %v2194_v23 }
0x1145   : > { %v4979_v16 = vadd.f32 %v2163_v55, %v2123_v47  ;;  %v4982_v60 = vsel %vm339_vm4, %v1790_v10, %v1792_v52  ;;  %2523 = vrot.lane.b32.xlu0 %v2515_v59, %s3382_s17  ;;  %v5771_v59 = vld [vmem:[#allocation82_spill] sm:$0xff]  ;;  %v5772_v47 = vmov 0.0   ;;  %v2539_v10 = vmul.f32 %v4816_v32, %v3594_v30  ;;  %s3472_s17 = smov 6  }
0x1146   : > { %2044 = vrot.lane.b32.xlu1 %v2038_v13, %s3469_s14  ;;  %v2284_v0 = vsel %vm362_vm5, %v5771_v59, %v4860_v45  ;;  %v237_v29 = vsel %vm236_vm1, 1.0, %v5772_v47  ;;  %v5773_v13 = vld [vmem:[#allocation83_spill] sm:$0xff]  ;;  %v1644_v24 = vadd.f32 %v4845_v62, %v1613_v9  ;;  %vm2606_vm1 = vcmask 769024  }
0x1147   : > { %v2289_v40 = vadd.f32 %v2284_v0, %v2241_v37  ;;  %v2561_v8 = vrot.slane %v237_v29, %v5774_v46 }
0x1148   : > { %v2426_v18 = vpop.permute.xlu1 %2425  ;;  %v5000_v4 = vpop.permute.xlu0 %1793 }
0x1149   : > { %v5009_v1 = vsel %vm339_vm4, %v1792_v52, %v5000_v4  ;;  %2046 = vrot.lane.b32.xlu0 %v2039_v7, %s3469_s14  ;;  %v2537_v52 = vmul.f32 %v4816_v32, %v3588_v25  ;;  %v2354_v7 = vsel %vm2353_vm0, %v3271_v44, %v3272_v27  ;;  %v2358_v54 = vmul.f32 %v3271_v44, %v2289_v40 }
0x114a   : > { %2048 = vrot.lane.b32.xlu1 %v2040_v36, %s3469_s14  ;;  %v1700_v44 = vsel %vm316_vm3, %v4869_v34, %v4942_v50  ;;  %vm2079_vm0 = vcmask 1014784  }
0x114c   : > { %v5028_v20 = vpop.permute.xlu1 %1543  ;;  %v2161_v28 = vpop.permute.xlu0 %2160 }
0x114d   : > { %v5033_v19 = vsel %vm316_vm3, %v2159_v2, %v2161_v28  ;;  %v2165_v49 = vsel %vm316_vm3, %v2161_v28, %v2163_v55  ;;  %3282 = vrot.lane.b32.xlu0 %v5770_v38, %s3470_s15  ;;  %v2195_v2 = vadd.f32 %v4720_v14, %v2147_v11  ;;  %v2285_v55 = vsel %vm362_vm5, %v4860_v45, %v5773_v13  ;;  %v5775_v45 = vld [vmem:[#allocation18_spill] sm:$0xff] }
0x114e   : > { %v5040_v35 = vadd.f32 %v2165_v49, %v2122_v12  ;;  %2543 = vrot.lane.b32.xlu1 %v2537_v52, %s3383_s23  ;;  %v2290_v53 = vadd.f32 %v2285_v55, %v2242_v5  ;;  %v2565_v36 = vrot.slane %v237_v29, %v5775_v45  ;;  %v1612_v28 = vmul.f32 %v5776_v51, %v3590_v26 }
0x114f   : > { %v2243_v32 = vadd.f32 %v5769_v39, %v2195_v2  ;;  %v1642_v39 = vadd.f32 %v1637_v21, %v1611_v42 }
0x1150   : > { %v5054_v58 = vpop.permute.xlu1 %1547  ;;  %v2424_v56 = vpop.permute.xlu0 %2423  ;;  %v2359_v17 = vmul.f32 %v2354_v7, %v2290_v53  ;;  %v3286_v52 = vpack.i.bf16 %v2565_v36, %v2561_v8 }
0x1151   : > { %v2429_v14 = vsel %vm293_vm2, %v2424_v56, %v2426_v18  ;;  %2545 = vrot.lane.b32.xlu0 %v2538_v48, %s3383_s23  ;;  %v2291_v15 = vadd.f32 %v5773_v13, %v2243_v32  ;;  %v2412_v32 = vmul.f32 %v4826_v22, %v3594_v30 }
0x1152   : > { %2547 = vrot.lane.b32.xlu1 %v2539_v10, %s3383_s23  ;;  %s3473_s23 = smov 94  }
0x1153   : > { %v2360_v41 = vmul.f32 %v3272_v27, %v2291_v15  ;;  %v1704_v27 = vadd.f32 %v1699_v33, %v1642_v39 }
0x1154   : > { %v1888_v31 = vpop.permute.xlu1 %1887  ;;  %v2428_v6 = vpop.permute.xlu0 %2427 }
0x1155   : > { %v2430_v11 = vsel %vm293_vm2, %v2426_v18, %v2428_v6  ;;  %2364 = vrot.lane.b32.xlu0 %v2358_v54, %s3471_s16  ;;  %v1638_v18 = vsel %vm293_vm2, %v4911_v43, %v4845_v62  ;;  %v1800_v38 = vadd.f32 %v4982_v60, %v1704_v27  ;;  %v1706_v43 = vadd.f32 %v4942_v50, %v1644_v24 }
0x1156   : > { %2366 = vrot.lane.b32.xlu1 %v2359_v17, %s3471_s16  ;;  %v1643_v49 = vadd.f32 %v1638_v18, %v1612_v28  ;;  %v2116_v62 = vsel %vm293_vm2, %v4903_v3, %v4967_v63  ;;  %v2090_v60 = vmul.f32 %v4905_v61, %v3588_v25  ;;  %v2410_v61 = vmul.f32 %v4826_v22, %v3588_v25 }
0x1157   : > { %v1802_v34 = vadd.f32 %v5000_v4, %v1706_v43  ;;  %v2411_v54 = vmul.f32 %v4826_v22, %v3590_v26  ;;  %v2436_v17 = vadd.f32 %v2428_v6, %v2412_v32 }
0x1158   : > { %v2207_v57 = vpop.permute.xlu1 %2206  ;;  %v5075_v12 = vpop.permute.xlu0 %1545  ;;  %v1705_v2 = vadd.f32 %v1700_v44, %v1643_v49  ;;  %v2121_v10 = vadd.f32 %v2116_v62, %v2090_v60  ;;  %v2434_v53 = vadd.f32 %v2429_v14, %v2410_v61  ;;  %v5780_v62 = vld [vmem:[#allocation49_spill] sm:$0xff] }
0x1159   : > { %2368 = vrot.lane.b32.xlu0 %v2360_v41, %s3471_s16  ;;  %v2435_v15 = vadd.f32 %v2430_v11, %v2411_v54  ;;  %v5785_v61 = vld [vmem:[#allocation65_spill] sm:$0xff] }
0x115a   : > { %3287 = vrot.lane.b32.xlu1 %v3286_v52, %s3472_s17  ;;  %v1801_v37 = vadd.f32 %v5009_v1, %v1705_v2  ;;  %v2169_v56 = vadd.f32 %v5033_v19, %v2121_v10  ;;  %v5783_v10 = vld [vmem:[#allocation63_spill] sm:$0xff] }
0x115c   : > { %v2211_v23 = vpop.permute.xlu1 %2210  ;;  %v1886_v59 = vpop.permute.xlu0 %1885 }
0x115d   : > { %v5092_v0 = vadd.f32 %v2211_v23, %v4979_v16  ;;  %v1891_v29 = vsel %vm362_vm5, %v1886_v59, %v1888_v31  ;;  %v5778_v59 = vld [vmem:[#allocation48_spill] sm:$0xff] }
0x115e   : > { %v1896_v48 = vadd.f32 %v1891_v29, %v1800_v38  ;;  %v5779_v29 = vld [vmem:[#allocation33_spill] sm:$0xff] }
0x115f   : > { %v774_v2 = vmul.f32 %v5779_v29, %v3590_v26 }
0x1160   : > { %v2450_v13 = vpop.permute.xlu1 %2449  ;;  %v1890_v50 = vpop.permute.xlu0 %1889 }
0x1161   : > { %v1892_v16 = vsel %vm362_vm5, %v1888_v31, %v1890_v50  ;;  %v5103_v55 = vadd.f32 %v1890_v50, %v1802_v34  ;;  %v5782_v50 = vld [vmem:[#allocation52_spill] sm:$0xff] }
0x1162   : > { %v1897_v5 = vadd.f32 %v1892_v16, %v1801_v37 }
0x1164   : > { %v5106_v40 = vpop.permute.xlu1 %1504  ;;  %v2209_v3 = vpop.permute.xlu0 %2208 }
0x1165   : > { %v2212_v63 = vsel %vm339_vm4, %v2207_v57, %v2209_v3  ;;  %v2213_v4 = vsel %vm339_vm4, %v2209_v3, %v2211_v23  ;;  %v5777_v23 = vld [vmem:[#allocation42_spill] sm:$0xff] }
0x1166   : > { %v2217_v1 = vadd.f32 %v2212_v63, %v2169_v56  ;;  %v2218_v7 = vadd.f32 %v2213_v4, %v5040_v35  ;;  %v847_v43 = vsel %vm293_vm2, %v5778_v59, %v5777_v23  ;;  %v848_v34 = vsel %vm293_vm2, %v5777_v23, %v5780_v62  ;;  %v5790_v23 = vld [vmem:[#allocation70_spill] sm:$0xff]  ;;  %v5791_v59 = vld [vmem:[#allocation73_spill] sm:$0xff] }
0x1167   : > { %v853_v32 = vadd.f32 %v848_v34, %v774_v2 }
0x1168   : > { %v1561_v8 = vpop.permute.xlu1 %1560  ;;  %v2448_v36 = vpop.permute.xlu0 %2447 }
0x1169   : > { %v2453_v19 = vsel %vm316_vm3, %v2448_v36, %v2450_v13  ;;  %v775_v36 = vmul.f32 %v5779_v29, %v3594_v30 }
0x116a   : > { %v5118_v31 = vadd.f32 %v2453_v19, %v2434_v53  ;;  %v1180_v53 = vmul.f32 %v5785_v61, %v3588_v25  ;;  %v5786_v19 = vld [vmem:[#allocation67_spill] sm:$0xff] }
0x116b   : > { %v1207_v54 = vsel %vm293_vm2, %v5783_v10, %v5786_v19 }
0x116c   : > { %v5120_v21 = vpop.permute.xlu1 %1564  ;;  %v2452_v51 = vpop.permute.xlu0 %2451 }
0x116d   : > { %v2454_v35 = vsel %vm316_vm3, %v2450_v13, %v2452_v51  ;;  %v2460_v14 = vadd.f32 %v2452_v51, %v2436_v17  ;;  %v5781_v13 = vld [vmem:[#allocation44_spill] sm:$0xff]  ;;  %v5787_v17 = vld [vmem:[#allocation69_spill] sm:$0xff] }
0x116e   : > { %v5123_v42 = vadd.f32 %v2454_v35, %v2435_v15  ;;  %v943_v16 = vsel %vm316_vm3, %v5782_v50, %v5781_v13  ;;  %v5788_v15 = vld [vmem:[#allocation68_spill] sm:$0xff] }
0x116f   : > { %v1268_v51 = vsel %vm316_vm3, %v5788_v15, %v5787_v17  ;;  %v5797_v15 = vld [vmem:[#allocation79_spill] sm:$0xff] }
0x1170   : > { %v1936_v52 = vpop.permute.xlu1 %1935  ;;  %v5125_v41 = vpop.permute.xlu0 %1506 }
0x1174   : > { %v5127_v33 = vpop.permute.xlu1 %1995  ;;  %v1563_v39 = vpop.permute.xlu0 %1562 }
0x1175   : > { %v5130_v22 = vsel %vm724_vm8, %v1561_v8, %v1563_v39  ;;  %v5134_v6 = vsel %vm724_vm8, %v1563_v39, %v5120_v21 }
0x1178   : > { %v5136_v11 = vpop.permute.xlu1 %1999  ;;  %v1934_v57 = vpop.permute.xlu0 %1933 }
0x1179   : > { %v1939_v9 = vsel %vm385_vm6, %v1934_v57, %v1936_v52 }
0x117a   : > { %v5139_v18 = vadd.f32 %v1939_v9, %v1896_v48  ;;  %v773_v48 = vmul.f32 %v5779_v29, %v3588_v25  ;;  %v5789_v9 = vld [vmem:[#allocation72_spill] sm:$0xff] }
0x117c   : > { %v2257_v28 = vpop.permute.xlu1 %2256  ;;  %v5141_v27 = vpop.permute.xlu0 %1937  ;;  %v852_v4 = vadd.f32 %v847_v43, %v773_v48  ;;  %v1364_v43 = vsel %vm339_vm4, %v5791_v59, %v5790_v23  ;;  %v854_v59 = vadd.f32 %v5780_v62, %v775_v36  ;;  %v1549_v62 = vsel %vm724_vm8, %v5028_v20, %v5075_v12 }
0x117d   : > { %v1940_v24 = vsel %vm385_vm6, %v1936_v52, %v5141_v27  ;;  %v1550_v36 = vsel %vm724_vm8, %v5075_v12, %v5054_v58 }
0x117e   : > { %v5145_v44 = vadd.f32 %v1940_v24, %v1897_v5  ;;  %v5784_v5 = vld [vmem:[#allocation66_spill] sm:$0xff]  ;;  %v948_v35 = vadd.f32 %v943_v16, %v852_v4  ;;  %v1269_v24 = vsel %vm316_vm3, %v5787_v17, %v5789_v9  ;;  %v5792_v16 = vld [vmem:[#allocation53_spill] sm:$0xff]  ;;  %v5795_v4 = vld [vmem:[#allocation75_spill] sm:$0xff] }
0x117f   : > { %v1206_v56 = vsel %vm293_vm2, %v5784_v5, %v5783_v10  ;;  %v944_v10 = vsel %vm316_vm3, %v5781_v13, %v5792_v16  ;;  %v5793_v5 = vld [vmem:[#allocation58_spill] sm:$0xff] }
0x1180   : > { %v2472_v49 = vpop.permute.xlu1 %2471  ;;  %v5147_v38 = vpop.permute.xlu0 %1997  ;;  %v1211_v52 = vadd.f32 %v1206_v56, %v1180_v53  ;;  %v5201_v56 = vunpack.i.h.bf16 %v5793_v5  ;;  %v5796_v17 = vld [vmem:[#allocation74_spill] sm:$0xff] }
0x1181   : > { %v1365_v13 = vsel %vm339_vm4, %v5790_v23, %v5796_v17  ;;  %v949_v23 = vadd.f32 %v944_v10, %v853_v32  ;;  %v1509_v32 = vsel %vm385_vm6, %v5106_v40, %v5125_v41  ;;  %v2001_v20 = vsel %vm1169_vm10, %v5127_v33, %v5147_v38 }
0x1182   : > { %v2002_v12 = vsel %vm1169_vm10, %v5147_v38, %v5136_v11 }
0x1184   : > { %v2476_v60 = vpop.permute.xlu1 %2475  ;;  %v2255_v37 = vpop.permute.xlu0 %2254 }
0x1185   : > { %v5165_v3 = vadd.f32 %v2476_v60, %v2460_v14  ;;  %v2260_v63 = vsel %vm362_vm5, %v2255_v37, %v2257_v28  ;;  %v1181_v14 = vmul.f32 %v5785_v61, %v3590_v26  ;;  %v1273_v37 = vadd.f32 %v1268_v51, %v1211_v52 }
0x1186   : > { %v5170_v8 = vadd.f32 %v2260_v63, %v2217_v1  ;;  %v1182_v1 = vmul.f32 %v5785_v61, %v3594_v30  ;;  %v5204_v63 = vunpack.i.l.bf16 %v5793_v5  ;;  %v1508_v51 = vsel %vm385_vm6, %v5797_v15, %v5106_v40 }
0x1187   : > { %v1212_v48 = vadd.f32 %v1207_v54, %v1181_v14 }
0x1188   : > { %v1529_v39 = vpop.permute.xlu1 %1528  ;;  %v2259_v57 = vpop.permute.xlu0 %2258  ;;  %v1213_v34 = vadd.f32 %v5786_v19, %v1182_v1  ;;  %v1369_v19 = vadd.f32 %v1364_v43, %v1273_v37  ;;  %v5798_v43 = vld [vmem:[#allocation76_spill] sm:$0xff] }
0x1189   : > { %v2261_v29 = vsel %vm362_vm5, %v2257_v28, %v2259_v57  ;;  %v5192_v2 = vadd.f32 %v2259_v57, %v5092_v0  ;;  %v5794_v28 = vld [vmem:[#allocation71_spill] sm:$0xff]  ;;  %v1274_v53 = vadd.f32 %v1269_v24, %v1212_v48 }
0x118a   : > { %v5195_v50 = vadd.f32 %v2261_v29, %v2218_v7  ;;  %v1460_v0 = vsel %vm362_vm5, %v5795_v4, %v5794_v28  ;;  %v1275_v61 = vadd.f32 %v5789_v9, %v1213_v34  ;;  %v1461_v29 = vsel %vm362_vm5, %v5794_v28, %v5798_v43 }
0x118b   : > { %v1465_v57 = vadd.f32 %v1460_v0, %v1369_v19  ;;  %v950_v0 = vadd.f32 %v5792_v16, %v854_v59 }
0x118c   : > { %v5210_v7 = vpop.permute.xlu1 %1957  ;;  %v2474_v54 = vpop.permute.xlu0 %2473  ;;  %v1371_v1 = vadd.f32 %v5796_v17, %v1275_v61 }
0x118d   : > { %v2477_v14 = vsel %vm339_vm4, %v2472_v49, %v2474_v54  ;;  %v2478_v52 = vsel %vm339_vm4, %v2474_v54, %v2476_v60  ;;  %v5233_v49 = vsel %vm1108_vm9, %v5204_v63, %v5201_v56  ;;  %v1370_v60 = vadd.f32 %v1365_v13, %v1274_v53 }
0x118e   : > { %v5222_v9 = vadd.f32 %v2477_v14, %v5118_v31  ;;  %v5225_v24 = vadd.f32 %v2478_v52, %v5123_v42  ;;  %v1467_v48 = vadd.f32 %v5798_v43, %v1371_v1  ;;  %v1113_v31 = vmul.f32 %v5204_v63, %v948_v35 }
0x118f   : > { %v1513_v34 = vadd.f32 %v1508_v51, %v1465_v57  ;;  %v1466_v35 = vadd.f32 %v1461_v29, %v1370_v60  ;;  %v1114_v5 = vmul.f32 %v5233_v49, %v949_v23  ;;  %v1115_v13 = vmul.f32 %v5201_v56, %v950_v0 }
0x1190   : > { %v5237_v37 = vpop.permute.xlu1 %1961  ;;  %v1527_v42 = vpop.permute.xlu0 %1526  ;;  %v1515_v4 = vadd.f32 %v5125_v41, %v1467_v48  ;;  %v1554_v40 = vadd.f32 %v1549_v62, %v1113_v31  ;;  %v5800_v62 = vld [vmem:[#allocation50_spill] sm:$0xff]  ;;  %vm2613_vm9 = vcmask 1043456  }
0x1191   : > { %v1532_v10 = vsel %vm408_vm7, %v1527_v42, %v1529_v39  ;;  %v1555_v61 = vadd.f32 %v1550_v36, %v1114_v5  ;;  %v1514_v53 = vadd.f32 %v1509_v32, %v1466_v35  ;;  %v1556_v38 = vadd.f32 %v5054_v58, %v1115_v13  ;;  %v5799_v42 = vld [vmem:[#allocation43_spill] sm:$0xff]  ;;  %v5801_v32 = vld [vmem:[#allocation41_spill] sm:$0xff] }
0x1192   : > { %v1537_v28 = vadd.f32 %v1532_v10, %v1513_v34  ;;  %v2006_v33 = vadd.f32 %v2001_v20, %v1554_v40  ;;  %v871_v36 = vsel %vm293_vm2, %v5800_v62, %v5799_v42  ;;  %v780_v10 = vmul.f32 %v5801_v32, %v3588_v25  ;;  %v5802_v35 = vld [vmem:[#allocation51_spill] sm:$0xff] }
0x1193   : > { %v2007_v15 = vadd.f32 %v2002_v12, %v1555_v61  ;;  %v2008_v52 = vadd.f32 %v5136_v11, %v1556_v38  ;;  %v872_v5 = vsel %vm293_vm2, %v5799_v42, %v5802_v35  ;;  %v781_v12 = vmul.f32 %v5801_v32, %v3590_v26 }
0x1194   : > { %v5258_v19 = vpop.permute.xlu1 %2017  ;;  %v1531_v54 = vpop.permute.xlu0 %1530  ;;  %1594 = vrot.lane.b32.xlu0 %v1537_v28, %s3469_s14  ;;  %v2594_v1 = vpack.c.bf16 %v2006_v33, %v2006_v33  ;;  %v5803_v28 = vld [vmem:[#allocation45_spill] sm:$0xff]  ;;  %v876_v0 = vadd.f32 %v871_v36, %v780_v10 }
0x1195   : > { %v1533_v41 = vsel %vm408_vm7, %v1529_v39, %v1531_v54  ;;  %v1539_v17 = vadd.f32 %v1531_v54, %v1515_v4  ;;  %v2595_v57 = vpack.c.bf16 %v2007_v15, %v2007_v15  ;;  %v2596_v58 = vpack.c.bf16 %v2008_v52, %v2008_v52  ;;  %v5804_v4 = vld [vmem:[#allocation54_spill] sm:$0xff] }
0x1196   : > { %v1538_v51 = vadd.f32 %v1533_v41, %v1514_v53  ;;  %v967_v20 = vsel %vm316_vm3, %v5804_v4, %v5803_v28  ;;  %v5805_v53 = vld [vmem:[#allocation55_spill] sm:$0xff]  ;;  %v782_v41 = vmul.f32 %v5801_v32, %v3594_v30 }
0x1197   : > { %v968_v54 = vsel %vm316_vm3, %v5803_v28, %v5805_v53  ;;  %v972_v13 = vadd.f32 %v967_v20, %v876_v0 }
0x1198   : > { %v5264_v14 = vpop.permute.xlu1 %2302  ;;  %v1960_v16 = vpop.permute.xlu0 %1959  ;;  %1596 = vrot.lane.b32.xlu1 %v1538_v51, %s3469_s14  ;;  %1598 = vrot.lane.b32.xlu0 %v1539_v17, %s3469_s14  ;;  %v877_v17 = vadd.f32 %v872_v5, %v781_v12  ;;  %v878_v51 = vadd.f32 %v5802_v35, %v782_v41  ;;  %v5809_v41 = vld [vmem:[#allocation34_spill] sm:$0xff]  ;;  %s217_s14 = scalar_lea.vmem [#allocation2], %s2960_s13 }
0x1199   : > { %v1963_v33 = vsel %vm408_vm7, %v5210_v7, %v1960_v16  ;;  %v1964_v15 = vsel %vm408_vm7, %v1960_v16, %v5237_v37  ;;  %v1116_v52 = vmul.f32 %v5204_v63, %v972_v13  ;;  %v1946_v63 = vadd.f32 %v5141_v27, %v5103_v55  ;;  %v5808_v27 = vld [vmem:[#allocation6_spill] sm:$0xff]  ;;  %s2894_s15 = sshll.u32 %s217_s14, 4  ;;  %s5571_s15 = int_to_ptr.vmem [resolvable:$true] %s2894_s15 }
0x119a   : > { %v973_v38 = vadd.f32 %v968_v54, %v877_v17  ;;  %v974_v7 = vadd.f32 %v5805_v53, %v878_v51  ;;  %v1969_v32 = vadd.f32 %v1964_v15, %v5145_v44  ;;  %v5807_v44 = vld [vmem:[#allocation13_spill] sm:$0xff]  ;;  %v441_v53 = vmul.f32 %v5808_v27, %v3594_v30  ;;  %v5811_v17 = vld [vmem:[#allocation35_spill] sm:$0xff] }
0x119b   : > { %v1571_v16 = vadd.f32 %v5130_v22, %v1116_v52  ;;  %v5806_v22 = vld [vmem:[#allocation14_spill] sm:$0xff]  ;;  %v1970_v55 = vadd.f32 %v5237_v37, %v1946_v63  ;;  %v5810_v37 = vld [vmem:[#allocation15_spill] sm:$0xff] }
0x119c   : > { %v5269_v39 = vpop.permute.xlu1 %2306  ;;  %v2016_v59 = vpop.permute.xlu0 %2015  ;;  %2600 = vrot.lane.b32.xlu1 %v2594_v1, %s3473_s23  ;;  %2602 = vrot.lane.b32.xlu0 %v2595_v57, %s3473_s23  ;;  %v1117_v10 = vmul.f32 %v5233_v49, %v973_v38  ;;  %v482_v49 = vsel %vm293_vm2, %v5807_v44, %v5806_v22  ;;  %v530_v13 = vsel %vm316_vm3, %v5811_v17, %v5810_v37  ;;  %v5815_v63 = vld [vmem:[#allocation38_spill] sm:$0xff] }
0x119d   : > { %v2021_v42 = vsel %vm1169_vm10, %v2016_v59, %v5258_v19  ;;  %v489_v38 = vadd.f32 %v5809_v41, %v441_v53 }
0x119e   : > { %v2026_v28 = vadd.f32 %v2021_v42, %v1571_v16  ;;  %v1572_v0 = vadd.f32 %v5134_v6, %v1117_v10  ;;  %v483_v6 = vsel %vm293_vm2, %v5806_v22, %v5809_v41 }
0x11a0   : > { %v5273_v23 = vpop.permute.xlu1 %2497  ;;  %v2020_v43 = vpop.permute.xlu0 %2019  ;;  %2604 = vrot.lane.b32.xlu1 %v2596_v58, %s3473_s23  ;;  %v1968_v58 = vadd.f32 %v1963_v33, %v5139_v18  ;;  %v1118_v18 = vmul.f32 %v5201_v56, %v974_v7  ;;  %v439_v56 = vmul.f32 %v5808_v27, %v3588_v25  ;;  %v2677_v52 = vpack.c.bf16 %v2026_v28, %v2026_v28  ;;  %v5814_v7 = vld [vmem:[#allocation37_spill] sm:$0xff]  ;;  %v5818_v28 = vld [vmem:[#allocation20_spill] sm:$0xff] }
0x11a1   : > { %v2022_v59 = vsel %vm1169_vm10, %v5258_v19, %v2020_v43  ;;  %v440_v19 = vmul.f32 %v5808_v27, %v3590_v26 }
0x11a2   : > { %v1573_v54 = vadd.f32 %v5120_v21, %v1118_v18  ;;  %v2027_v33 = vadd.f32 %v2022_v59, %v1572_v0  ;;  %v487_v51 = vadd.f32 %v482_v49, %v439_v56  ;;  %v5812_v21 = vld [vmem:[#allocation36_spill] sm:$0xff]  ;;  %v3167_v59 = vunpack.i.h.bf16 %v5818_v28 }
0x11a3   : > { %v531_v42 = vsel %vm316_vm3, %v5810_v37, %v5812_v21  ;;  %v537_v10 = vadd.f32 %v5812_v21, %v489_v38  ;;  %v5819_v56 = vld [vmem:[#allocation40_spill] sm:$0xff]  ;;  %v5821_v37 = vld [vmem:[#allocation59_spill] sm:$0xff] }
0x11a4   : > { %v5276_v29 = vpop.permute.xlu1 %1577  ;;  %v5278_v60 = vpop.permute.xlu0 %2304  ;;  %v2678_v22 = vpack.c.bf16 %v2027_v33, %v2027_v33 }
0x11a5   : > { %v2308_v33 = vsel %vm385_vm6, %v5264_v14, %v5278_v60  ;;  %v2309_v21 = vsel %vm385_vm6, %v5278_v60, %v5269_v39  ;;  %v5822_v14 = vld [vmem:[#allocation60_spill] sm:$0xff] }
0x11a8   : > { %v5280_v11 = vpop.permute.xlu1 %1581  ;;  %v5282_v48 = vpop.permute.xlu0 %2495 }
0x11ac   : > { %v5284_v31 = vpop.permute.xlu1 %2326  ;;  %v5286_v34 = vpop.permute.xlu0 %2499 }
0x11ad   : > { %v2502_v60 = vsel %vm362_vm5, %v5273_v23, %v5286_v34 }
0x11b0   : > { %v5301_v40 = vpop.permute.xlu1 %2330  ;;  %v5303_v61 = vpop.permute.xlu0 %1579 }
0x11b4   : > { %v5316_v1 = vpop.permute.xlu1 %2521  ;;  %v3278_v57 = vpop.permute.xlu0 %3277 }
0x11b5   : > { %v3280_v62 = vunpack.i.h.bf16 %v3278_v57  ;;  %v3279_v36 = vunpack.i.l.bf16 %v3278_v57  ;;  %v2028_v57 = vadd.f32 %v2020_v43, %v1573_v54  ;;  %v585_v54 = vadd.f32 %v5815_v63, %v537_v10 }
0x11b6   : > { %v2501_v10 = vsel %vm362_vm5, %v5282_v48, %v5273_v23 }
0x11b7   : > { %v2063_v35 = vsel %vm2062_vm11, %v3279_v36, %v3280_v62  ;;  %v2067_v5 = vmul.f32 %v3279_v36, %v1968_v58  ;;  %v2069_v15 = vmul.f32 %v3280_v62, %v1970_v55  ;;  %v5813_v36 = vld [vmem:[#allocation16_spill] sm:$0xff]  ;;  %v535_v62 = vadd.f32 %v530_v13, %v487_v51 }
0x11b8   : > { %v2068_v4 = vmul.f32 %v2063_v35, %v1969_v32  ;;  %v5330_v20 = vpop.permute.xlu0 %2328  ;;  %v5332_v12 = vpop.permute.xlu1 %2044  ;;  %v578_v16 = vsel %vm339_vm4, %v5814_v7, %v5813_v36  ;;  %v488_v32 = vadd.f32 %v483_v6, %v440_v19  ;;  %v579_v43 = vsel %vm339_vm4, %v5813_v36, %v5815_v63  ;;  %v5816_v35 = vld [vmem:[#allocation17_spill] sm:$0xff] }
0x11b9   : > { %2073 = vrot.lane.b32.xlu0 %v2067_v5, %s3471_s16  ;;  %v5817_v5 = vld [vmem:[#allocation39_spill] sm:$0xff]  ;;  %v583_v49 = vadd.f32 %v578_v16, %v535_v62  ;;  %v2679_v0 = vpack.c.bf16 %v2028_v57, %v2028_v57  ;;  %v627_v19 = vsel %vm362_vm5, %v5816_v35, %v5819_v56  ;;  %v5820_v6 = vld [vmem:[#allocation57_spill] sm:$0xff]  ;;  %v633_v51 = vadd.f32 %v5819_v56, %v585_v54 }
0x11ba   : > { %2075 = vrot.lane.b32.xlu1 %v2068_v4, %s3471_s16  ;;  %v626_v18 = vsel %vm362_vm5, %v5817_v5, %v5816_v35  ;;  %v3166_v4 = vunpack.i.l.bf16 %v5818_v28  ;;  %v536_v44 = vadd.f32 %v531_v42, %v488_v32  ;;  %v1140_v17 = vsel %vm724_vm8, %v5821_v37, %v5820_v6 }
0x11bb   : > { %v631_v41 = vadd.f32 %v626_v18, %v583_v49  ;;  %v2332_v42 = vsel %vm408_vm7, %v5284_v31, %v5330_v20  ;;  %v702_v16 = vmul.f32 %v3167_v59, %v633_v51  ;;  %v2313_v32 = vadd.f32 %v2308_v33, %v5170_v8 }
0x11bc   : > { %v2520_v30 = vpop.permute.xlu0 %2519  ;;  %v5355_v58 = vpop.permute.xlu1 %2048  ;;  %v584_v53 = vadd.f32 %v579_v43, %v536_v44  ;;  %v696_v13 = vsel %vm695_vm12, %v3166_v4, %v3167_v59  ;;  %v1141_v62 = vsel %vm724_vm8, %v5820_v6, %v5822_v14  ;;  %v2333_v31 = vsel %vm408_vm7, %v5330_v20, %v5301_v40 }
0x11bd   : > { %2077 = vrot.lane.b32.xlu0 %v2069_v15, %s3471_s16  ;;  %v700_v38 = vmul.f32 %v3166_v4, %v631_v41  ;;  %v2315_v63 = vadd.f32 %v5269_v39, %v5192_v2  ;;  %v2314_v8 = vadd.f32 %v2309_v21, %v5195_v50  ;;  %v2337_v43 = vadd.f32 %v2332_v42, %v2313_v32  ;;  %s2983_s16 = sshll.u32 %s3531_s22, 9  ;;  %s5580_s22 = scalar_lea.sflag [#allocation3], %s215_s9 }
0x11be   : > { %2683 = vrot.lane.b32.xlu1 %v2677_v52, %s3473_s23  ;;  %v632_v15 = vadd.f32 %v627_v19, %v584_v53  ;;  %v2525_v48 = vsel %vm385_vm6, %v2520_v30, %v5316_v1  ;;  %v2506_v20 = vadd.f32 %v2501_v10, %v5222_v9  ;;  %v2507_v59 = vadd.f32 %v2502_v60, %v5225_v24 }
0x11bf   : > { %v1145_v36 = vadd.f32 %v1140_v17, %v700_v38  ;;  %v2338_v2 = vadd.f32 %v2333_v31, %v2314_v8  ;;  %v2339_v50 = vadd.f32 %v5301_v40, %v2315_v63  ;;  %v1583_v30 = vsel %vm1169_vm10, %v5276_v29, %v5303_v61 }
0x11c0   : > { %v5374_v55 = vpop.permute.xlu0 %2523  ;;  %v2544_v27 = vpop.permute.xlu1 %2543  ;;  %v701_v7 = vmul.f32 %v696_v13, %v632_v15  ;;  %v2508_v40 = vadd.f32 %v5286_v34, %v5165_v3  ;;  %v1584_v54 = vsel %vm1169_vm10, %v5303_v61, %v5280_v11  ;;  %v1147_v34 = vadd.f32 %v5822_v14, %v702_v16 }
0x11c1   : > { %2685 = vrot.lane.b32.xlu0 %v2678_v22, %s3473_s23  ;;  %v2526_v23 = vsel %vm385_vm6, %v5316_v1, %v5374_v55  ;;  %v2530_v22 = vadd.f32 %v2525_v48, %v2506_v20  ;;  %v1588_v41 = vadd.f32 %v1583_v30, %v1145_v36  ;;  %v238_v48 = vld [vmem:[%s5623_s3] sm:$0xff]  ;;  %vm2609_vm11 = vcmask 64512  }
0x11c2   : > { %2687 = vrot.lane.b32.xlu1 %v2679_v0, %s3473_s23  ;;  %v2531_v44 = vadd.f32 %v2526_v23, %v2507_v59  ;;  %v1146_v37 = vadd.f32 %v1141_v62, %v701_v7  ;;  %v2532_v17 = vadd.f32 %v5374_v55, %v2508_v40  ;;  %v1590_v21 = vadd.f32 %v5280_v11, %v1147_v34  ;;  %v253_v11 = vld [vmem:[%s5624_s4] sm:$0xff]  ;;  %v239_v23 = vld [vmem:[%s5623_s3 + $0x8] sm:$0xff]  ;;  %v5835_v34 = vld [vmem:[#allocation27_spill] sm:$0xff] }
0x11c3   : > { %v240_v59 = vpack.c.bf16 %v239_v23, %v238_v48 }
0x11c4   : > { %v2548_v52 = vpop.permute.xlu1 %2547  ;;  %v2047_v57 = vpop.permute.xlu0 %2046  ;;  %v1589_v61 = vadd.f32 %v1584_v54, %v1146_v37  ;;  %v2057_v16 = vadd.f32 %v5355_v58, %v1590_v21 }
0x11c5   : > { %v2050_v53 = vsel %vm1600_vm14, %v5332_v12, %v2047_v57  ;;  %v2051_v12 = vsel %vm1600_vm14, %v2047_v57, %v5355_v58  ;;  %v2556_v38 = vadd.f32 %v2548_v52, %v2532_v17  ;;  %v254_v58 = vld [vmem:[%s5624_s4 + $0x8] sm:$0xff] }
0x11c6   : > { %v2055_v15 = vadd.f32 %v2050_v53, %v1588_v41  ;;  %v2056_v36 = vadd.f32 %v2051_v12, %v1589_v61  ;;  %v5830_v53 = vld [vmem:[#allocation24_spill] sm:$0xff] }
0x11c8   : > { %v2367_v35 = vpop.permute.xlu1 %2366  ;;  %v3283_v5 = vpop.permute.xlu0 %3282 }
0x11c9   : > { %v3285_v18 = vunpack.i.h.bf16 %v3283_v5  ;;  %v3284_v28 = vunpack.i.l.bf16 %v3283_v5 }
0x11cb   : > { %v2383_v39 = vsel %vm2382_vm13, %v3284_v28, %v3285_v18  ;;  %v2387_v4 = vmul.f32 %v3284_v28, %v2337_v43  ;;  %v2389_v6 = vmul.f32 %v3285_v18, %v2339_v50 }
0x11cc   : > { %v2388_v1 = vmul.f32 %v2383_v39, %v2338_v2  ;;  %v3288_v49 = vpop.permute.xlu1 %3287  ;;  %v2546_v0 = vpop.permute.xlu0 %2545  ;;  %v5823_v2 = vmov 0   ;;  %v5824_v39 = vld [vmem:[#allocation7_spill] sm:$0xff] }
0x11cd   : > { %v3290_v56 = vunpack.i.h.bf16 %v3288_v49  ;;  %v3289_v9 = vunpack.i.l.bf16 %v3288_v49  ;;  %v2549_v24 = vsel %vm408_vm7, %v2544_v27, %v2546_v0  ;;  %v2550_v19 = vsel %vm408_vm7, %v2546_v0, %v2548_v52  ;;  %2393 = vrot.lane.b32.xlu0 %v2387_v4, %s3474_s7  ;;  %v5825_v4 = vld [vmem:[#allocation21_spill] sm:$0xff]  ;;  %v5827_v49 = vld [vmem:[#allocation22_spill] sm:$0xff] }
0x11ce   : > { %v2554_v29 = vadd.f32 %v2549_v24, %v2530_v22  ;;  %2395 = vrot.lane.b32.xlu1 %v2388_v1, %s3474_s7  ;;  %v2555_v27 = vadd.f32 %v2550_v19, %v2531_v44  ;;  %v294_v30 = vsel %vm293_vm2, %v5825_v4, %v5824_v39  ;;  %v5826_v44 = vld [vmem:[#allocation5_spill] sm:$0xff]  ;;  %v295_v0 = vsel %vm293_vm2, %v5824_v39, %v5827_v49  ;;  %v5829_v24 = vld [vmem:[#allocation23_spill] sm:$0xff] }
0x11cf   : > { %v2571_v13 = vsel %vm2570_vm15, %v3289_v9, %v3290_v56  ;;  %v2577_v7 = vmul.f32 %v3290_v56, %v2556_v38  ;;  %v275_v1 = vmul.f32 %v5826_v44, %v3588_v25  ;;  %v276_v56 = vmul.f32 %v5826_v44, %v3590_v26  ;;  %v5832_v25 = vld [vmem:[#allocation25_spill] sm:$0xff] }
0x11d0   : > { %v2575_v33 = vmul.f32 %v3289_v9, %v2554_v29  ;;  %v2365_v3 = vpop.permute.xlu0 %2364  ;;  %v2576_v55 = vmul.f32 %v2571_v13, %v2555_v27  ;;  %v5828_v9 = vld [vmem:[#allocation8_spill] sm:$0xff]  ;;  %v5833_v13 = vld [vmem:[#allocation26_spill] sm:$0xff]  ;;  %v3295_v38 = vld [vmem:[%s5621_s1] sm:$0x3] }
0x11d1   : > { %v2370_v51 = vsel %vm2079_vm0, %v2365_v3, %v2367_v35  ;;  %2397 = vrot.lane.b32.xlu0 %v2389_v6, %s3474_s7  ;;  %v317_v19 = vsel %vm316_vm3, %v5829_v24, %v5828_v9  ;;  %v298_v40 = vadd.f32 %v294_v30, %v275_v1  ;;  %v318_v29 = vsel %vm316_vm3, %v5828_v9, %v5830_v53  ;;  %v5831_v6 = vld [vmem:[#allocation9_spill] sm:$0xff]  ;;  %v5834_v3 = vld [vmem:[#allocation10_spill] sm:$0xff]  ;;  %v5844_v1 = vld [vmem:[#allocation47_spill] sm:$0xff]  ;;  %s5576_s7 = scalar_lea.hbm %s5625_s5, %s2983_s16 }
0x11d2   : > { %2581 = vrot.lane.b32.xlu1 %v2575_v33, %s3475_s10  ;;  %v2375_v42 = vadd.f32 %v2370_v51, %v2055_v15  ;;  %v299_v41 = vadd.f32 %v295_v0, %v276_v56  ;;  %v340_v27 = vsel %vm339_vm4, %v5832_v25, %v5831_v6  ;;  %v341_v26 = vsel %vm339_vm4, %v5831_v6, %v5833_v13  ;;  %v5836_v51 = vld [vmem:[#allocation28_spill] sm:$0xff]  ;;  %v5845_v0 = vld [vmem:[#allocation46_spill] sm:$0xff] }
0x11d3   : > { %v321_v17 = vadd.f32 %v317_v19, %v298_v40  ;;  %v363_v12 = vsel %vm362_vm5, %v5835_v34, %v5834_v3  ;;  %v364_v61 = vsel %vm362_vm5, %v5834_v3, %v5836_v51  ;;  %vm226_vm2 = vcmp.ge.s32.totalorder %v3295_v38, 3  ;;  %v5846_v19 = vld [vmem:[#allocation64_spill] sm:$0xff]  ;;  %v5847_v40 = vld [vmem:[#allocation61_spill] sm:$0xff]  ;;  %v5848_v53 = vld [vmem:[#allocation62_spill] sm:$0xff] }
0x11d4   : > { %v2369_v32 = vpop.permute.xlu0 %2368  ;;  %v2747_v62 = vpack.c.bf16 %v2375_v42, %v2375_v42  ;;  %v322_v33 = vadd.f32 %v318_v29, %v299_v41  ;;  %v2964_v42 = vld [vmem:[%s5623_s3 + $0x18] sm:$0xff]  ;;  %v227_v48 = vsel %vm226_vm2, 1.0, %v5772_v47  ;;  %v1171_v29 = vsel %vm1169_vm10, %v5846_v19, %v5848_v53 }
0x11d5   : > { %v2371_v14 = vsel %vm2079_vm0, %v2367_v35, %v2369_v32  ;;  %2583 = vrot.lane.b32.xlu0 %v2576_v55, %s3475_s10  ;;  %v2377_v10 = vadd.f32 %v2369_v32, %v2057_v16  ;;  %v344_v15 = vadd.f32 %v340_v27, %v321_v17  ;;  %v2963_v55 = vld [vmem:[%s5623_s3 + $0x10] sm:$0xff]  ;;  %v5838_v32 = vld [vmem:[#allocation29_spill] sm:$0xff]  ;;  %v419_v4 = vrot.slane %v227_v48, %v5774_v46  ;;  %v5843_v47 = vld [vmem:[#allocation56_spill] sm:$0xff] }
0x11d6   : > { %v2376_v57 = vadd.f32 %v2371_v14, %v2056_v36  ;;  %2585 = vrot.lane.b32.xlu1 %v2577_v7, %s3475_s10  ;;  %v345_v36 = vadd.f32 %v341_v26, %v322_v33  ;;  %v5837_v7 = vld [vmem:[#allocation11_spill] sm:$0xff]  ;;  %v244_v23 = vpack.c.bf16 %v2964_v42, %v2963_v55  ;;  %v423_v30 = vrot.slane %v227_v48, %v5775_v45  ;;  %s3296_s10 = scalar_lea.vmem %s5571_s15, 512 }
0x11d7   : > { %v2749_v52 = vpack.c.bf16 %v2377_v10, %v2377_v10  ;;  %v386_v16 = vsel %vm385_vm6, %v5838_v32, %v5837_v7  ;;  %v5839_v10 = vld [vmem:[#allocation30_spill] sm:$0xff]  ;;  %v725_v49 = vsel %vm724_vm8, %v5844_v1, %v5843_v47  ;;  %v726_v56 = vsel %vm724_vm8, %v5843_v47, %v5845_v0  ;;  %p3297_p11 = scmp.ne.s32.totalorder %s5571_s15, %s3296_s10 }
0x11d8   : > { %v2748_v60 = vpack.c.bf16 %v2376_v57, %v2376_v57  ;;  %v1170_v46 = vsel %vm1169_vm10, %v5847_v40, %v5846_v19  ;;  %vm2399_vm3 = vcmask 1006592   ;;  %vm2587_vm4 = vcmask 998400  }
0x11d9   : > { %2753 = vrot.lane.b32.xlu0 %v2747_v62, %s3476_s11  ;;  %v367_v62 = vadd.f32 %v363_v12, %v344_v15  ;;  %vm2759_vm5 = vcmask 908288   ;;  %p3298_p12 = pnand %p3297_p11, %p3548_p5 }
0x11da   : > { %2755 = vrot.lane.b32.xlu1 %v2748_v60, %s3476_s11  ;;  %v387_v60 = vsel %vm385_vm6, %v5837_v7, %v5839_v10  ;;  %v2965_v10 = vld [vmem:[%s5623_s3 + $0x20] sm:$0xff] }
0x11db   : > { %p3299_p13 = pneg %p3298_p12 }
0x11dd   : > { %2757 = vrot.lane.b32.xlu0 %v2749_v52, %s3476_s11  ;;  %s3477_s11 = smov [#allocation2]  }
0x11de   : > { %2665 = vperm.xlu1 %3291, %v253_v11   ;;  %s3300_s12 = sshll.u32 %s3477_s11, 4  ;;  %s3301_s12 = int_to_ptr.vmem [resolvable:$false] %s3300_s12 }
0x11df   : > { %s3302_s25 = scalar_lea.vmem %s3301_s12, 1024  ;;  %p3303_p0 = scmp.lt.s32.totalorder %s5571_s15, %s3301_s12 }
0x11e0   : > { %p3304_p1 = scmp.lt.s32.totalorder %s3302_s25, %s3296_s10 }
0x11e1   : > { %2670 = vperm.xlu0 %3292, %v254_v58   ;;  %v368_v58 = vadd.f32 %v364_v61, %v345_v36 }
0x11e2   : > { %p3305_p2 = por %p3304_p1, %p3303_p0 }
0x11e4   : > { %p3306_p3 = pnand %p3305_p2, %p3299_p13 }
0x1206   : > { %v5446_v31 = vpop.permute.xlu0 %1594 }
0x120a   : > { %v5448_v63 = vpop.permute.xlu1 %1596  ;;  %v5450_v8 = vpop.permute.xlu0 %1598 }
0x120b   : > { %v1601_v6 = vsel %vm1600_vm14, %v5446_v31, %v5448_v63 }
0x120e   : > { %v2601_v43 = vpop.permute.xlu1 %2600  ;;  %v2603_v35 = vpop.permute.xlu0 %2602 }
0x120f   : > { %v2607_v5 = vsel %vm2606_vm1, %v2601_v43, %v2603_v35  ;;  %v5840_v43 = vld [vmem:[#allocation12_spill] sm:$0xff] }
0x1210   : > { %v2615_v20 = vsel %vm2613_vm9, %v2607_v5, 0 }
0x1212   : > { %v2605_v18 = vpop.permute.xlu1 %2604 }
0x1213   : > { %v2608_v28 = vsel %vm2606_vm1, %v2603_v35, %v2605_v18  ;;  %v5841_v35 = vld [vmem:[#allocation31_spill] sm:$0xff]  ;;  %v390_v18 = vadd.f32 %v386_v16, %v367_v62 }
0x1214   : > { %2969 = vmatprep.subr.msk.bf16.mxu0 %vm2613_vm9, %v2608_v28  ;;  %v409_v5 = vsel %vm408_vm7, %v5841_v35, %v5840_v43  ;;  %v5842_v28 = vld [vmem:[#allocation32_spill] sm:$0xff] }
0x1215   : > { %2635 = vmatpush1.bf16.msra.mxu0 %v2615_v20  ;;  %v410_v20 = vsel %vm408_vm7, %v5840_v43, %v5842_v28  ;;  %v413_v39 = vadd.f32 %v409_v5, %v390_v18 }
0x1217   : > { %v426_v9 = vmul.f32 %v419_v4, %v413_v39 }
0x1218   : > { %2970 = vmatmul.mubr.msk.bf16.vlgmr.msra.gmra.mxu0 %vm2609_vm11, %v240_v59  ;;  %v391_v59 = vadd.f32 %v387_v60, %v368_v58  ;;  %v2966_v60 = vld [vmem:[%s5623_s3 + $0x28] sm:$0xff] }
0x1219   : > { %2803 = vmatprep.mubr.bf16.mxu0 %v5823_v2  ;;  %v729_v45 = vadd.f32 %v725_v49, %v426_v9  ;;  %v248_v35 = vpack.c.bf16 %v2966_v60, %v2965_v10 }
0x121a   : > { %v414_v44 = vadd.f32 %v410_v20, %v391_v59 }
0x121b   : > { %v1174_v27 = vadd.f32 %v1170_v46, %v729_v45 }
0x121c   : > { %v427_v24 = vmul.f32 %v423_v30, %v414_v44 }
0x121d   : > { %v1605_v26 = vadd.f32 %v1601_v6, %v1174_v27 }
0x121e   : > { %v730_v41 = vadd.f32 %v726_v56, %v427_v24 }
0x1220   : > { %v1175_v17 = vadd.f32 %v1171_v29, %v730_v41 }
0x122b   : > { %v5464_v50 = vpop.permute.xlu0 %2073 }
0x122c   : > { %v5469_v22 = vpop.permute.xlu1 %2075 }
0x122d   : > { %v2080_v13 = vsel %vm2079_vm0, %v5464_v50, %v5469_v22 }
0x122e   : > { %v2084_v15 = vadd.f32 %v2080_v13, %v1605_v26 }
0x122f   : > { %v2078_v54 = vpop.permute.xlu0 %2077 }
0x1230   : > { %v2684_v37 = vpop.permute.xlu1 %2683  ;;  %v2081_v33 = vsel %vm2079_vm0, %v5469_v22, %v2078_v54  ;;  %v2967_v22 = vld [vmem:[%s5623_s3 + $0x30] sm:$0xff]  ;;  %v2968_v54 = vld [vmem:[%s5623_s3 + $0x38] sm:$0xff] }
0x1233   : > { %v2686_v21 = vpop.permute.xlu0 %2685 }
0x1234   : > { %v2688_v14 = vpop.permute.xlu1 %2687  ;;  %v2689_v57 = vsel %vm2606_vm1, %v2684_v37, %v2686_v21  ;;  %v1602_v37 = vsel %vm1600_vm14, %v5448_v63, %v5450_v8 }
0x1235   : > { %v2690_v52 = vsel %vm2606_vm1, %v2686_v21, %v2688_v14  ;;  %v2695_v11 = vsel %vm2613_vm9, %v2689_v57, 0  ;;  %v1606_v34 = vadd.f32 %v1602_v37, %v1175_v17 }
0x1236   : > { %2971 = vmatprep.subr.msk.bf16.mxu1 %vm2613_vm9, %v2690_v52  ;;  %v252_v52 = vpack.c.bf16 %v2968_v54, %v2967_v22 }
0x1237   : > { %2715 = vmatpush1.bf16.msra.mxu1 %v2695_v11  ;;  %v2085_v61 = vadd.f32 %v2081_v33, %v1606_v34 }
0x123a   : > { %2972 = vmatmul.mubr.msk.bf16.vlgmr.msra.gmra.mxu1 %vm2609_vm11, %v244_v23 }
0x123b   : > { %2861 = vmatprep.mubr.bf16.mxu1 %v5823_v2 }
0x123f   : > { %v2394_v2 = vpop.permute.xlu0 %2393 }
0x1240   : > { %v2396_v25 = vpop.permute.xlu1 %2395 }
0x1241   : > { %v2400_v12 = vsel %vm2399_vm3, %v2394_v2, %v2396_v25 }
0x1242   : > { %v2404_v38 = vadd.f32 %v2400_v12, %v2084_v15 }
0x1243   : > { %v2398_v3 = vpop.permute.xlu0 %2397 }
0x1244   : > { %v2582_v31 = vpop.permute.xlu1 %2581  ;;  %v2401_v51 = vsel %vm2399_vm3, %v2396_v25, %v2398_v3 }
0x1245   : > { %v2405_v8 = vadd.f32 %v2401_v51, %v2085_v61 }
0x1247   : > { %v2584_v63 = vpop.permute.xlu0 %2583 }
0x1248   : > { %v2588_v21 = vsel %vm2587_vm4, %v2582_v31, %v2584_v63  ;;  %v2586_v55 = vpop.permute.xlu1 %2585 }
0x1249   : > { %v2592_v42 = vadd.f32 %v2588_v21, %v2404_v38  ;;  %v2589_v36 = vsel %vm2587_vm4, %v2584_v63, %v2586_v55 }
0x124a   : > { %v2593_v50 = vadd.f32 %v2589_v36, %v2405_v8 }
0x124b   : > { %v2818_v7 = vpack.c.bf16 %v2592_v42, %v2592_v42  ;;  %v2754_v32 = vpop.permute.xlu0 %2753 }
0x124c   : > { %v2819_v16 = vpack.c.bf16 %v2593_v50, %v2593_v50  ;;  %v2756_v14 = vpop.permute.xlu1 %2755 }
0x124d   : > { %v2824_v57 = vsel %vm2613_vm9, %v2818_v7, 0  ;;  %v2760_v62 = vsel %vm2759_vm5, %v2754_v32, %v2756_v14 }
0x124e   : > { %2975 = vmatprep.subr.msk.bf16.mxu1 %vm2613_vm9, %v2819_v16  ;;  %v2766_v43 = vsel %vm2613_vm9, %v2760_v62, 0 }
0x124f   : > { %v2758_v11 = vpop.permute.xlu0 %2757  ;;  %2844 = vmatpush1.bf16.msra.mxu1 %v2824_v57 }
0x1250   : > { %v2761_v58 = vsel %vm2759_vm5, %v2756_v14, %v2758_v11 }
0x1251   : > { %2973 = vmatprep.subr.msk.bf16.mxu0 %vm2613_vm9, %v2761_v58 }
0x1252   : > { %2786 = vmatpush1.bf16.msra.mxu0 %v2766_v43  ;;  %2976 = vmatmul.mubr.msk.bf16.vlgmr.msra.gmra.mxu1 %vm2609_vm11, %v252_v52 }
0x1255   : > { %2974 = vmatmul.mubr.msk.bf16.vlgmr.msra.gmra.mxu0 %vm2609_vm11, %v248_v35 }
0x1259   : > { %v2666_v20 = vpop.permute.xlu1 %2665 }
0x125c   : > { %v2671_v30 = vpop.permute.xlu0 %2670 }
0x12d8   : > { %v2654_v23 = vpop.f32.mrf.mxu0 }
0x12d9   : > { %v2673_v4 = vadd.f32 %v2666_v20, %v2654_v23 }
0x12da   : > { %v2656_v28 = vpop.f32.mrf.mxu0 }
0x12db   : > { %v2674_v44 = vadd.f32 %v2666_v20, %v2656_v28 }
0x12dc   : > { %v2658_v39 = vpop.f32.mrf.mxu0 }
0x12dd   : > { %v2675_v49 = vadd.f32 %v2671_v30, %v2658_v39 }
0x12de   : > { %v2660_v1 = vpop.f32.mrf.mxu0 }
0x12df   : > { %v2676_v24 = vadd.f32 %v2671_v30, %v2660_v1 }
0x12fa   : > { %v2734_v5 = vpop.f32.mrf.mxu1 }
0x12fb   : > { %v2743_v0 = vadd.f32 %v2734_v5, %v2673_v4 }
0x12fc   : > { %v2736_v48 = vpop.f32.mrf.mxu1 }
0x12fd   : > { %v2744_v40 = vadd.f32 %v2736_v48, %v2674_v44 }
0x12fe   : > { %v2738_v18 = vpop.f32.mrf.mxu1 }
0x12ff   : > { %v2745_v29 = vadd.f32 %v2738_v18, %v2675_v49 }
0x1300   : > { %v2740_v59 = vpop.f32.mrf.mxu1 }
0x1301   : > { %v2746_v6 = vadd.f32 %v2740_v59, %v2676_v24 }
0x1312   : > { %v2863_v47 = vpop.f32.mrf.mxu1 }
0x1314   : > { %v2865_v9 = vpop.f32.mrf.mxu1 }
0x1315   : > { %v2805_v56 = vpop.f32.mrf.mxu0 }
0x1316   : > { %v2814_v19 = vadd.f32 %v2805_v56, %v2743_v0  ;;  %v2867_v41 = vpop.f32.mrf.mxu1 }
0x1317   : > { %v2807_v46 = vpop.f32.mrf.mxu0 }
0x1318   : > { %v2872_v45 = vadd.f32 %v2863_v47, %v2814_v19  ;;  %v2815_v53 = vadd.f32 %v2807_v46, %v2744_v40  ;;  %v2869_v26 = vpop.f32.mrf.mxu1 }
0x1319   : > { %v2809_v2 = vpop.f32.mrf.mxu0 }
0x131a   : > { %2876 = vst [vmem:[%s217_s14] sm:$0xff] %v2872_v45  ;;  %v2873_v25 = vadd.f32 %v2865_v9, %v2815_v53  ;;  %v2816_v27 = vadd.f32 %v2809_v2, %v2745_v29 }
0x131b   : > { %v2811_v37 = vpop.f32.mrf.mxu0 }
0x131c   : > { %2877 = vst [vmem:[%s217_s14 + $0x8] sm:$0xff] %v2873_v25  ;;  %v2874_v17 = vadd.f32 %v2867_v41, %v2816_v27  ;;  %v2817_v13 = vadd.f32 %v2811_v37, %v2746_v6 }
0x131e   : > { %2878 = vst [vmem:[%s217_s14 + $0x10] sm:$0xff] %v2874_v17  ;;  %v2875_v33 = vadd.f32 %v2869_v26, %v2817_v13 }
0x1320   : > { %2879 = vst [vmem:[%s217_s14 + $0x18] sm:$0xff] %v2875_v33 }
0x1321   : > { %3309 = shalt.err (!%p3306_p3)
}
0x1322   : > { %s3310_s26 = scalar_lea.hbm %s5576_s7, 512  ;;  %s3314_s8 = scalar_lea.hbm %s5625_s5, 1024 }
0x1323   : > { %p3311_p4 = scmp.ne.s32.totalorder %s5576_s7, %s3310_s26  ;;  %p3315_p9 = scmp.lt.s32.totalorder %s5576_s7, %s5625_s5 }
0x1324   : > { %p3316_p10 = scmp.lt.s32.totalorder %s3314_s8, %s3310_s26 }
0x1325   : > { %p3312_p7 = pnand %p3311_p4, %p3548_p5 }
0x1326   : > { %p3317_p11 = por %p3316_p10, %p3315_p9 }
0x1327   : > { %p3313_p8 = pneg %p3312_p7 }
0x1329   : > { %p3318_p12 = pnand %p3317_p11, %p3313_p8 }
0x132b   : > { %3321 = shalt.err (!%p3318_p12)
}
0x132c   : > { %s3478_s14 = smov 256   ;;  %s3479_s16 = smov 16  }
0x132d   : > { %2984 = dma.vmem_to_hbm [thread:$0]  (%p3548_p5), %s5571_s15, 512, %s5576_s7, %s5580_s22, %s3478_s14, %s3478_s14, %s3479_s16  }
0x132e PF: > { %p2990_p13 = scmp.ge.s32.totalorder %s3356_s21, 2  ;;  %s2909_s17 = sand.u32 1, %s3344_s18  }
0x132f   : > { %s2910_s23 = scalar_lea.sflag [#allocation3], %s2909_s17 }
0x1330   : > { %p2987_p0 = pnand %p2990_p13, %p3552_p6 }
0x1332   : > { %p2988_p1 = pneg %p2987_p0 }
0x1334   : > { %3339 = dma.done.wait (%p2988_p1), %s2910_s23, 512  }
0x1335   : > { %3341 = vsyncadd (%p2988_p1), %s2910_s23, 4294966784  ;;  %p15_p2 = scmp.ge.s32.totalorder %s3535_s24, 4   ;;  %s5849_s18 = smov %s3348_s19 }
0x1336   : > { %s5850_s19 = smov %s3352_s20  ;;  %s5851_s20 = smov %s3546_s27 }
0x1337   : > { %s5852_s21 = smov %s3535_s24  ;;  %17 = sbr.rel (!%p15_p2) target bundleno = 3 (0x3), region = 78 }
0x133c   :  { %2915 = vsyncpa [#allocation3], 1 }
0x133d   :  { %2917 = vsyncpa [#allocation3 + $0x1], 1 }

</bundles_post_ra>
